<compile_context>
chip_gen: v6e
topology: v6e:2x2x1
jax: 0.10.0
libtpu: 0.0.40
codegen_flags: <defaults>
</compile_context>

<pallas_src>
import numpy as np
import jax
import jax.numpy as jnp
from jax import lax
from jax.experimental import pallas as pl
from jax.experimental.pallas import tpu as pltpu

HIDDEN = 32    # hidden width of the synthetic denoiser
LANES = 128    # TPU lane count
CHUNK = 16     # rows per inner-loop chunk (1 bf16 vreg / 2 f32 vregs)
ACC_ROWS = 8


def _default_compute_dtype():
    """bf16 VALU exists on v6e/v7x; keep f32 on older chips (per perf review)."""
    try:
        kind = jax.devices()[0].device_kind.lower()
    except Exception:
        return jnp.float32
    for tag in ("v6", "v7", "trillium"):
        if tag in kind:
            return jnp.bfloat16
    return jnp.float32


def _pick_tile_rows(rows):
    """Largest row-tile that is a multiple of CHUNK, divides `rows`, <=1024."""
    for cand in (1024, 512, 256, 128, 64, 32, 16):
        if cand <= rows and rows % cand == 0:
            return cand
    return rows


def _make_kernel(tile_rows, hidden, hw, compute_dtype):
    n_chunks = tile_rows // CHUNK
    needs_mask = (tile_rows * 0 + hw) != 0 and True  # placeholder; set below
    cd = compute_dtype

    def kernel(x_ref,            # (1, 4, TR, 128) f32 VMEM: [HR, SR, mask, E]
               sa_ref, s1_ref,   # (N,) f32 SMEM: sqrt(a), sqrt(1-a)
               c1_ref,           # (N, HIDDEN) f32 SMEM: w1[:,3]*t + b1
               w1_ref,           # (HIDDEN, 3) f32 SMEM: w1[:, :3]
               w2_ref,           # (2, HIDDEN) f32 SMEM
               b2_ref,           # (2,) f32 SMEM
               out_ref):         # (1, 2, 8, 128) f32 VMEM per-sample partials
        b = pl.program_id(0)
        i = pl.program_id(1)

        @pl.when(i == 0)
        def _init():
            out_ref[...] = jnp.zeros_like(out_ref)

        sa = sa_ref[b].astype(cd)
        s1 = s1_ref[b].astype(cd)
        b2_0 = b2_ref[0].astype(cd)
        b2_1 = b2_ref[1].astype(cd)
        tile_row0 = i * tile_rows

        def chunk_body(k, carry):
            loss_p, mask_p = carry
            row0 = pl.multiple_of(k * CHUNK, CHUNK)
            sl = pl.ds(row0, CHUNK)
            hr32 = x_ref[0, 0, sl, :]
            sr32 = x_ref[0, 1, sl, :]
            m32 = x_ref[0, 2, sl, :]
            e32 = x_ref[0, 3, sl, :]

            sr = sr32.astype(cd)
            m = m32.astype(cd)
            # q_sample: x_noisy = x_start*sqrt(a) + e*sqrt(1-a)
            x_noisy = hr32.astype(cd) * sa + e32.astype(cd) * s1

            # Synthetic denoise_fn(cat([SR, mask, x_noisy], 1), t): per-pixel
            # MLP, channel loop unrolled (K=4 contraction -> VPU, not MXU).
            o0 = None
            o1 = None
            for c in range(hidden):
                h = jnp.maximum(
                    w1_ref[c, 0].astype(cd) * sr
                    + w1_ref[c, 1].astype(cd) * m
                    + w1_ref[c, 2].astype(cd) * x_noisy
                    + c1_ref[b, c].astype(cd),
                    0.0)
                v0 = w2_ref[0, c].astype(cd) * h
                v1 = w2_ref[1, c].astype(cd) * h
                if c == 0:
                    o0, o1 = v0, v1
                else:
                    o0, o1 = o0 + v0, o1 + v1
            x_recon = (o0 + b2_0).astype(jnp.float32)
            upd_mask = jax.nn.sigmoid(o1 + b2_1).astype(jnp.float32)

            # L1(reduction='sum') contributions, kept in f32.
            loss_c = jnp.abs(e32 - x_recon)
            # res = mean_c((HR+1)/2 - (SR+1)/2); C==1 so mean is identity.
            res = (hr32 - sr32) * 0.5
            res_map = (res >= 0.05).astype(jnp.float32)   # where(res<0.05,0,1)
            mask_c = jnp.abs(upd_mask - res_map)

            if needs_mask:
                sub = lax.broadcasted_iota(jnp.int32, (CHUNK, LANES), 0)
                lane = lax.broadcasted_iota(jnp.int32, (CHUNK, LANES), 1)
                flat = (tile_row0 + row0 + sub) * LANES + lane
                valid = flat < hw
                loss_c = jnp.where(valid, loss_c, 0.0)
                mask_c = jnp.where(valid, mask_c, 0.0)

            # Fold (CHUNK,128) -> (8,128) with pure vreg adds.
            loss_c = loss_c.reshape(CHUNK // ACC_ROWS, ACC_ROWS, LANES).sum(0)
            mask_c = mask_c.reshape(CHUNK // ACC_ROWS, ACC_ROWS, LANES).sum(0)
            return loss_p + loss_c, mask_p + mask_c

        zero = jnp.zeros((ACC_ROWS, LANES), jnp.float32)
        loss_p, mask_p = lax.fori_loop(0, n_chunks, chunk_body, (zero, zero))

        # Accumulate directly into the resident per-sample output block.
        out_ref[0, 0, :, :] = out_ref[0, 0, :, :] + loss_p
        out_ref[0, 1, :, :] = out_ref[0, 1, :, :] + mask_p

    return kernel


def gaussian_diffusion_loss(hr, sr, mask, e, sqrt_a, sqrt_1ma, t_float, params,
                            compute_dtype=None):
    """hr/sr/mask/e: (N,1,H,W) f32; sqrt_a/sqrt_1ma/t_float: (N,) f32."""
    n, c, h, w = hr.shape
    assert c == 1
    hw = c * h * w
    if compute_dtype is None:
        compute_dtype = _default_compute_dtype()

    # Pad the flattened pixel stream to a whole number of 16-row vreg chunks.
    rows_padded = -(-hw // (CHUNK * LANES)) * CHUNK
    padded = rows_padded * LANES

    def to_rows(x):
        xf = x.reshape(n, hw).astype(jnp.float32)
        if padded != hw:
            xf = jnp.pad(xf, ((0, 0), (0, padded - hw)))
        return xf.reshape(n, rows_padded, LANES)

    # One stacked input -> one DMA per grid step. Channel order: HR,SR,mask,E.
    x_stacked = jnp.stack([to_rows(hr), to_rows(sr), to_rows(mask), to_rows(e)],
                          axis=1)

    w1, b1, w2, b2 = params
    w1 = w1.astype(jnp.float32)
    # Precompute the per-(sample, channel) time constant: w1[:,3]*t + b1.
    const1 = (t_float.astype(jnp.float32)[:, None] * w1[None, :, 3]
              + b1.astype(jnp.float32)[None, :])                     # (N, HIDDEN)
    w1_3 = w1[:, :3]                                                 # (HIDDEN, 3)

    tr = _pick_tile_rows(rows_padded)
    n_tiles = rows_padded // tr

    kernel = _make_kernel(tr, HIDDEN, hw, compute_dtype)
    # Patch the static mask flag (only mask when padding was added).
    kernel = _make_kernel_with_mask(tr, HIDDEN, hw, compute_dtype,
                                    needs_mask=(padded != hw))

    img_spec = pl.BlockSpec((1, 4, tr, LANES), lambda bb, ii: (bb, 0, ii, 0))
    smem_spec = pl.BlockSpec(memory_space=pltpu.MemorySpace.SMEM)
    out_spec = pl.BlockSpec((1, 2, ACC_ROWS, LANES), lambda bb, ii: (bb, 0, 0, 0))

    out = pl.pallas_call(
        kernel,
        out_shape=jax.ShapeDtypeStruct((n, 2, ACC_ROWS, LANES), jnp.float32),
        grid=(n, n_tiles),
        in_specs=[img_spec, smem_spec, smem_spec, smem_spec,
                  smem_spec, smem_spec, smem_spec],
        out_specs=out_spec,
        compiler_params=pltpu.CompilerParams(
            dimension_semantics=("parallel", "arbitrary"),
            vmem_limit_bytes=32 * 1024 * 1024),
    )(x_stacked,
      sqrt_a.astype(jnp.float32), sqrt_1ma.astype(jnp.float32),
      const1, w1_3, w2.astype(jnp.float32), b2.astype(jnp.float32))

    loss_sum = out[:, 0].sum()
    mask_loss_sum = out[:, 1].sum()
    # Matches reference p_losses: only the noise L1 is divided by n*h*w;
    # the mask L1 is added un-normalized with weight 0.1.
    return loss_sum / (n * h * w) + 0.1 * mask_loss_sum


def _make_kernel_with_mask(tile_rows, hidden, hw, compute_dtype, needs_mask):
    """Thin wrapper so `needs_mask` is a clean static closure flag."""
    k = _make_kernel(tile_rows, hidden, hw, compute_dtype)
    # _make_kernel closes over a placeholder; rebuild with the real flag by
    # re-creating the closure via default-arg trick.
    n_chunks = tile_rows // CHUNK
    cd = compute_dtype

    def kernel(x_ref, sa_ref, s1_ref, c1_ref, w1_ref, w2_ref, b2_ref, out_ref):
        b = pl.program_id(0)
        i = pl.program_id(1)

        @pl.when(i == 0)
        def _init():
            out_ref[...] = jnp.zeros_like(out_ref)

        sa = sa_ref[b].astype(cd)
        s1 = s1_ref[b].astype(cd)
        b2_0 = b2_ref[0].astype(cd)
        b2_1 = b2_ref[1].astype(cd)
        tile_row0 = i * tile_rows

        def chunk_body(kk, carry):
            loss_p, mask_p = carry
            row0 = pl.multiple_of(kk * CHUNK, CHUNK)
            sl = pl.ds(row0, CHUNK)
            hr32 = x_ref[0, 0, sl, :]
            sr32 = x_ref[0, 1, sl, :]
            m32 = x_ref[0, 2, sl, :]
            e32 = x_ref[0, 3, sl, :]

            sr = sr32.astype(cd)
            m = m32.astype(cd)
            x_noisy = hr32.astype(cd) * sa + e32.astype(cd) * s1

            o0 = None
            o1 = None
            for cch in range(hidden):
                hvec = jnp.maximum(
                    w1_ref[cch, 0].astype(cd) * sr
                    + w1_ref[cch, 1].astype(cd) * m
                    + w1_ref[cch, 2].astype(cd) * x_noisy
                    + c1_ref[b, cch].astype(cd),
                    0.0)
                v0 = w2_ref[0, cch].astype(cd) * hvec
                v1 = w2_ref[1, cch].astype(cd) * hvec
                if cch == 0:
                    o0, o1 = v0, v1
                else:
                    o0, o1 = o0 + v0, o1 + v1
            x_recon = (o0 + b2_0).astype(jnp.float32)
            upd_mask = jax.nn.sigmoid(o1 + b2_1).astype(jnp.float32)

            loss_c = jnp.abs(e32 - x_recon)
            res = (hr32 - sr32) * 0.5
            res_map = (res >= 0.05).astype(jnp.float32)
            mask_c = jnp.abs(upd_mask - res_map)

            if needs_mask:
                sub = lax.broadcasted_iota(jnp.int32, (CHUNK, LANES), 0)
                lane = lax.broadcasted_iota(jnp.int32, (CHUNK, LANES), 1)
                flat = (tile_row0 + row0 + sub) * LANES + lane
                valid = flat < hw
                loss_c = jnp.where(valid, loss_c, 0.0)
                mask_c = jnp.where(valid, mask_c, 0.0)

            loss_c = loss_c.reshape(CHUNK // ACC_ROWS, ACC_ROWS, LANES).sum(0)
            mask_c = mask_c.reshape(CHUNK // ACC_ROWS, ACC_ROWS, LANES).sum(0)
            return loss_p + loss_c, mask_p + mask_c

        zero = jnp.zeros((ACC_ROWS, LANES), jnp.float32)
        loss_p, mask_p = lax.fori_loop(0, n_chunks, chunk_body, (zero, zero))
        out_ref[0, 0, :, :] = out_ref[0, 0, :, :] + loss_p
        out_ref[0, 1, :, :] = out_ref[0, 1, :, :] + mask_p

    return kernel


def _reference_loss(hr, sr, mask, e, sqrt_a, sqrt_1ma, t_float, params, cd):
    """Pure-JAX reference of p_losses with the synthetic denoiser."""
    n, c, h, w = hr.shape
    w1, b1, w2, b2 = params
    sa = sqrt_a.reshape(n, 1, 1, 1).astype(cd)
    s1 = sqrt_1ma.reshape(n, 1, 1, 1).astype(cd)
    x_noisy = hr.astype(cd) * sa + e.astype(cd) * s1
    tfeat = jnp.broadcast_to(t_float.reshape(n, 1, 1, 1).astype(cd), hr.shape)
    feats = jnp.stack([sr.astype(cd), mask.astype(cd), x_noisy, tfeat], axis=-1)
    hid = jnp.maximum(
        jnp.einsum('nchwk,mk->nchwm', feats, w1.astype(cd)) + b1.astype(cd), 0)
    out = jnp.einsum('nchwm,om->nchwo', hid, w2.astype(cd)) + b2.astype(cd)
    x_recon = out[..., 0].astype(jnp.float32)
    upd_mask = jax.nn.sigmoid(out[..., 1]).astype(jnp.float32)
    loss = jnp.abs(e - x_recon).sum() / (n * h * w)
    res = (hr - sr) * 0.5
    res_map = (res >= 0.05).astype(jnp.float32)
    return loss + 0.1 * jnp.abs(upd_mask - res_map).sum()


def make_linear_beta_schedule(n_timestep, linear_start=1e-4, linear_end=2e-2):
    betas = np.linspace(linear_start, linear_end, n_timestep, dtype=np.float64)
    alphas = 1.0 - betas
    alphas_cumprod = np.cumprod(alphas, axis=0)
    return betas, alphas_cumprod


if __name__ == "__main__":
    key = jax.random.PRNGKey(0)
    k_hr, k_sr, k_mask, k_e, k_t, k_w1, k_b1, k_w2, k_b2 = jax.random.split(key, 9)

    # Small shapes consistent with the module (channels forced to 1 in __init__).
    N, C, H, W = 2, 1, 16, 16
    n_timestep = 8

    hr = jax.random.uniform(k_hr, (N, C, H, W), jnp.float32, -1.0, 1.0)   # x_in['HR']
    sr = jax.random.uniform(k_sr, (N, C, H, W), jnp.float32, -1.0, 1.0)   # x_in['SR']
    mask0 = (jax.random.uniform(k_mask, (N, C, H, W)) > 0.5).astype(jnp.float32)
    e = jax.random.normal(k_e, (N, C, H, W), jnp.float32)                 # noise

    # t sampling as in p_losses: randint(n//2+1) concat with (T - t - 1), take n.
    t_half = jax.random.randint(k_t, (N // 2 + 1,), 0, n_timestep)
    t = jnp.concatenate([t_half, n_timestep - t_half - 1], axis=0)[:N]

    # noise schedule (linear), a = cumprod(1 - betas)[t]
    _, alphas_cumprod = make_linear_beta_schedule(n_timestep)
    a = jnp.take(jnp.asarray(alphas_cumprod, jnp.float32), t)
    sqrt_a = jnp.sqrt(a)
    sqrt_1ma = jnp.sqrt(1.0 - a)
    t_float = t.astype(jnp.float32)

    # Deterministic synthetic denoiser parameters (1x1-conv MLP).
    w1 = 0.1 * jax.random.normal(k_w1, (HIDDEN, 4), jnp.float32)
    b1 = 0.1 * jax.random.normal(k_b1, (HIDDEN,), jnp.float32)
    w2 = 0.1 * jax.random.normal(k_w2, (2, HIDDEN), jnp.float32)
    b2 = 0.1 * jax.random.normal(k_b2, (2,), jnp.float32)
    params = (w1, b1, w2, b2)

    cd = _default_compute_dtype()
    total_loss = gaussian_diffusion_loss(hr, sr, mask0, e,
                                         sqrt_a, sqrt_1ma, t_float, params,
                                         compute_dtype=cd)
    total_loss = jax.block_until_ready(total_loss)
    assert jnp.isfinite(total_loss)

    # Correctness check against a pure-JAX reference (same compute dtype).
    ref_loss = jax.block_until_ready(
        _reference_loss(hr, sr, mask0, e, sqrt_a, sqrt_1ma, t_float, params, cd))
    rtol = 5e-2 if cd == jnp.bfloat16 else 2e-4
    assert abs(float(total_loss) - float(ref_loss)) <= rtol * max(1.0, abs(float(ref_loss))), \
        (float(total_loss), float(ref_loss))

    print("KERNEL_OK")
</pallas_src>

<mosaic_0001>
module attributes {stable_mosaic.version = 11 : i64} {
  func.func @kernel(%arg0: i32, %arg1: i32, %arg2: memref<1x4x16x128xf32, #tpu.memory_space<vmem>>, %arg3: memref<2xf32, #tpu.memory_space<smem>>, %arg4: memref<2xf32, #tpu.memory_space<smem>>, %arg5: memref<2x32xf32, #tpu.memory_space<smem>>, %arg6: memref<32x3xf32, #tpu.memory_space<smem>>, %arg7: memref<2x32xf32, #tpu.memory_space<smem>>, %arg8: memref<2xf32, #tpu.memory_space<smem>>, %arg9: memref<1x2x8x128xf32, #tpu.memory_space<vmem>>) attributes {dimension_semantics = [#tpu.dimension_semantics<parallel>, #tpu.dimension_semantics<arbitrary>], iteration_bounds = array<i64: 2, 1>, scalar_prefetch = 0 : i64, scratch_operands = 0 : i64, tpu.core_type = #tpu.core_type<tc>, window_params = [{transform_indices = @transform_0, window_bounds = array<i64: 1, 4, 16, 128>}, {transform_indices = @transform_1, window_bounds = array<i64: 2>}, {transform_indices = @transform_2, window_bounds = array<i64: 2>}, {transform_indices = @transform_3, window_bounds = array<i64: 2, 32>}, {transform_indices = @transform_4, window_bounds = array<i64: 32, 3>}, {transform_indices = @transform_5, window_bounds = array<i64: 2, 32>}, {transform_indices = @transform_6, window_bounds = array<i64: 2>}, {transform_indices = @transform_7, window_bounds = array<i64: 1, 2, 8, 128>}]} {
    %c0_i32 = arith.constant 0 : i32
    %0 = arith.cmpi eq, %arg1, %c0_i32 : i32
    %1 = arith.extui %0 : i1 to i32
    %c0_i32_0 = arith.constant 0 : i32
    %2 = arith.cmpi ne, %1, %c0_i32_0 : i32
    scf.if %2 {
      %cst_392 = arith.constant 0.000000e+00 : f32
      %880 = vector.broadcast %cst_392 : f32 to vector<1x2x8x128xf32>
      %c0_393 = arith.constant 0 : index
      %c0_394 = arith.constant 0 : index
      %c0_395 = arith.constant 0 : index
      %c0_396 = arith.constant 0 : index
      %881 = vector.load %arg9[%c0_393, %c0_394, %c0_395, %c0_396] : memref<1x2x8x128xf32, #tpu.memory_space<vmem>>, vector<1x2x8x128xf32>
      tpu.vector_store %arg9[%c0_393, %c0_394, %c0_395, %c0_396], %880 {strides = array<i32>} : memref<1x2x8x128xf32, #tpu.memory_space<vmem>>, vector<1x2x8x128xf32>,
    } else {
    }
    %3 = arith.index_cast %arg0 : i32 to index
    %4 = memref.load %arg3[%3] : memref<2xf32, #tpu.memory_space<smem>>
    %5 = arith.index_cast %arg0 : i32 to index
    %6 = memref.load %arg4[%5] : memref<2xf32, #tpu.memory_space<smem>>
    %c0 = arith.constant 0 : index
    %7 = memref.load %arg8[%c0] : memref<2xf32, #tpu.memory_space<smem>>
    %c1 = arith.constant 1 : index
    %8 = memref.load %arg8[%c1] : memref<2xf32, #tpu.memory_space<smem>>
    %c16_i32 = arith.constant 16 : i32
    %9 = arith.muli %arg1, %c16_i32 : i32
    %cst = arith.constant 0.000000e+00 : f32
    %10 = vector.broadcast %cst : f32 to vector<8x128xf32>
    %c0_i32_1 = arith.constant 0 : i32
    %c16_i32_2 = arith.constant 16 : i32
    %11 = arith.muli %c0_i32_1, %c16_i32_2 : i32
    %12 = tpu.assume_multiple %11, 16 : i32
    %c0_3 = arith.constant 0 : index
    %c0_4 = arith.constant 0 : index
    %13 = arith.index_cast %12 : i32 to index
    %c0_5 = arith.constant 0 : index
    %14 = vector.load %arg2[%c0_3, %c0_4, %13, %c0_5] : memref<1x4x16x128xf32, #tpu.memory_space<vmem>>, vector<1x1x16x128xf32>
    %15 = vector.shape_cast %14 : vector<1x1x16x128xf32> to vector<16x128xf32>
    %c0_6 = arith.constant 0 : index
    %c1_7 = arith.constant 1 : index
    %16 = arith.index_cast %12 : i32 to index
    %c0_8 = arith.constant 0 : index
    %17 = vector.load %arg2[%c0_6, %c1_7, %16, %c0_8] : memref<1x4x16x128xf32, #tpu.memory_space<vmem>>, vector<1x1x16x128xf32>
    %18 = vector.shape_cast %17 : vector<1x1x16x128xf32> to vector<16x128xf32>
    %c0_9 = arith.constant 0 : index
    %c2 = arith.constant 2 : index
    %19 = arith.index_cast %12 : i32 to index
    %c0_10 = arith.constant 0 : index
    %20 = vector.load %arg2[%c0_9, %c2, %19, %c0_10] : memref<1x4x16x128xf32, #tpu.memory_space<vmem>>, vector<1x1x16x128xf32>
    %21 = vector.shape_cast %20 : vector<1x1x16x128xf32> to vector<16x128xf32>
    %c0_11 = arith.constant 0 : index
    %c3 = arith.constant 3 : index
    %22 = arith.index_cast %12 : i32 to index
    %c0_12 = arith.constant 0 : index
    %23 = vector.load %arg2[%c0_11, %c3, %22, %c0_12] : memref<1x4x16x128xf32, #tpu.memory_space<vmem>>, vector<1x1x16x128xf32>
    %24 = vector.shape_cast %23 : vector<1x1x16x128xf32> to vector<16x128xf32>
    %25 = vector.broadcast %4 : f32 to vector<16x128xf32>
    %26 = arith.mulf %15, %25 : vector<16x128xf32>
    %27 = vector.broadcast %6 : f32 to vector<16x128xf32>
    %28 = arith.mulf %24, %27 : vector<16x128xf32>
    %29 = arith.addf %26, %28 : vector<16x128xf32>
    %c0_13 = arith.constant 0 : index
    %c0_14 = arith.constant 0 : index
    %30 = memref.load %arg6[%c0_13, %c0_14] : memref<32x3xf32, #tpu.memory_space<smem>>
    %31 = vector.broadcast %30 : f32 to vector<16x128xf32>
    %32 = arith.mulf %31, %18 : vector<16x128xf32>
    %c0_15 = arith.constant 0 : index
    %c1_16 = arith.constant 1 : index
    %33 = memref.load %arg6[%c0_15, %c1_16] : memref<32x3xf32, #tpu.memory_space<smem>>
    %34 = vector.broadcast %33 : f32 to vector<16x128xf32>
    %35 = arith.mulf %34, %21 : vector<16x128xf32>
    %36 = arith.addf %32, %35 : vector<16x128xf32>
    %c0_17 = arith.constant 0 : index
    %c2_18 = arith.constant 2 : index
    %37 = memref.load %arg6[%c0_17, %c2_18] : memref<32x3xf32, #tpu.memory_space<smem>>
    %38 = vector.broadcast %37 : f32 to vector<16x128xf32>
    %39 = arith.mulf %38, %29 : vector<16x128xf32>
    %40 = arith.addf %36, %39 : vector<16x128xf32>
    %41 = arith.index_cast %arg0 : i32 to index
    %c0_19 = arith.constant 0 : index
    %42 = memref.load %arg5[%41, %c0_19] : memref<2x32xf32, #tpu.memory_space<smem>>
    %43 = vector.broadcast %42 : f32 to vector<16x128xf32>
    %44 = arith.addf %40, %43 : vector<16x128xf32>
    %cst_20 = arith.constant 0.000000e+00 : f32
    %45 = vector.broadcast %cst_20 : f32 to vector<16x128xf32>
    %46 = arith.maximumf %44, %45 : vector<16x128xf32>
    %c0_21 = arith.constant 0 : index
    %c0_22 = arith.constant 0 : index
    %47 = memref.load %arg7[%c0_21, %c0_22] : memref<2x32xf32, #tpu.memory_space<smem>>
    %48 = vector.broadcast %47 : f32 to vector<16x128xf32>
    %49 = arith.mulf %48, %46 : vector<16x128xf32>
    %c1_23 = arith.constant 1 : index
    %c0_24 = arith.constant 0 : index
    %50 = memref.load %arg7[%c1_23, %c0_24] : memref<2x32xf32, #tpu.memory_space<smem>>
    %51 = vector.broadcast %50 : f32 to vector<16x128xf32>
    %52 = arith.mulf %51, %46 : vector<16x128xf32>
    %c1_25 = arith.constant 1 : index
    %c0_26 = arith.constant 0 : index
    %53 = memref.load %arg6[%c1_25, %c0_26] : memref<32x3xf32, #tpu.memory_space<smem>>
    %54 = vector.broadcast %53 : f32 to vector<16x128xf32>
    %55 = arith.mulf %54, %18 : vector<16x128xf32>
    %c1_27 = arith.constant 1 : index
    %c1_28 = arith.constant 1 : index
    %56 = memref.load %arg6[%c1_27, %c1_28] : memref<32x3xf32, #tpu.memory_space<smem>>
    %57 = vector.broadcast %56 : f32 to vector<16x128xf32>
    %58 = arith.mulf %57, %21 : vector<16x128xf32>
    %59 = arith.addf %55, %58 : vector<16x128xf32>
    %c1_29 = arith.constant 1 : index
    %c2_30 = arith.constant 2 : index
    %60 = memref.load %arg6[%c1_29, %c2_30] : memref<32x3xf32, #tpu.memory_space<smem>>
    %61 = vector.broadcast %60 : f32 to vector<16x128xf32>
    %62 = arith.mulf %61, %29 : vector<16x128xf32>
    %63 = arith.addf %59, %62 : vector<16x128xf32>
    %64 = arith.index_cast %arg0 : i32 to index
    %c1_31 = arith.constant 1 : index
    %65 = memref.load %arg5[%64, %c1_31] : memref<2x32xf32, #tpu.memory_space<smem>>
    %66 = vector.broadcast %65 : f32 to vector<16x128xf32>
    %67 = arith.addf %63, %66 : vector<16x128xf32>
    %cst_32 = arith.constant 0.000000e+00 : f32
    %68 = vector.broadcast %cst_32 : f32 to vector<16x128xf32>
    %69 = arith.maximumf %67, %68 : vector<16x128xf32>
    %c0_33 = arith.constant 0 : index
    %c1_34 = arith.constant 1 : index
    %70 = memref.load %arg7[%c0_33, %c1_34] : memref<2x32xf32, #tpu.memory_space<smem>>
    %71 = vector.broadcast %70 : f32 to vector<16x128xf32>
    %72 = arith.mulf %71, %69 : vector<16x128xf32>
    %c1_35 = arith.constant 1 : index
    %c1_36 = arith.constant 1 : index
    %73 = memref.load %arg7[%c1_35, %c1_36] : memref<2x32xf32, #tpu.memory_space<smem>>
    %74 = vector.broadcast %73 : f32 to vector<16x128xf32>
    %75 = arith.mulf %74, %69 : vector<16x128xf32>
    %76 = arith.addf %49, %72 : vector<16x128xf32>
    %77 = arith.addf %52, %75 : vector<16x128xf32>
    %c2_37 = arith.constant 2 : index
    %c0_38 = arith.constant 0 : index
    %78 = memref.load %arg6[%c2_37, %c0_38] : memref<32x3xf32, #tpu.memory_space<smem>>
    %79 = vector.broadcast %78 : f32 to vector<16x128xf32>
    %80 = arith.mulf %79, %18 : vector<16x128xf32>
    %c2_39 = arith.constant 2 : index
    %c1_40 = arith.constant 1 : index
    %81 = memref.load %arg6[%c2_39, %c1_40] : memref<32x3xf32, #tpu.memory_space<smem>>
    %82 = vector.broadcast %81 : f32 to vector<16x128xf32>
    %83 = arith.mulf %82, %21 : vector<16x128xf32>
    %84 = arith.addf %80, %83 : vector<16x128xf32>
    %c2_41 = arith.constant 2 : index
    %c2_42 = arith.constant 2 : index
    %85 = memref.load %arg6[%c2_41, %c2_42] : memref<32x3xf32, #tpu.memory_space<smem>>
    %86 = vector.broadcast %85 : f32 to vector<16x128xf32>
    %87 = arith.mulf %86, %29 : vector<16x128xf32>
    %88 = arith.addf %84, %87 : vector<16x128xf32>
    %89 = arith.index_cast %arg0 : i32 to index
    %c2_43 = arith.constant 2 : index
    %90 = memref.load %arg5[%89, %c2_43] : memref<2x32xf32, #tpu.memory_space<smem>>
    %91 = vector.broadcast %90 : f32 to vector<16x128xf32>
    %92 = arith.addf %88, %91 : vector<16x128xf32>
    %cst_44 = arith.constant 0.000000e+00 : f32
    %93 = vector.broadcast %cst_44 : f32 to vector<16x128xf32>
    %94 = arith.maximumf %92, %93 : vector<16x128xf32>
    %c0_45 = arith.constant 0 : index
    %c2_46 = arith.constant 2 : index
    %95 = memref.load %arg7[%c0_45, %c2_46] : memref<2x32xf32, #tpu.memory_space<smem>>
    %96 = vector.broadcast %95 : f32 to vector<16x128xf32>
    %97 = arith.mulf %96, %94 : vector<16x128xf32>
    %c1_47 = arith.constant 1 : index
    %c2_48 = arith.constant 2 : index
    %98 = memref.load %arg7[%c1_47, %c2_48] : memref<2x32xf32, #tpu.memory_space<smem>>
    %99 = vector.broadcast %98 : f32 to vector<16x128xf32>
    %100 = arith.mulf %99, %94 : vector<16x128xf32>
    %101 = arith.addf %76, %97 : vector<16x128xf32>
    %102 = arith.addf %77, %100 : vector<16x128xf32>
    %c3_49 = arith.constant 3 : index
    %c0_50 = arith.constant 0 : index
    %103 = memref.load %arg6[%c3_49, %c0_50] : memref<32x3xf32, #tpu.memory_space<smem>>
    %104 = vector.broadcast %103 : f32 to vector<16x128xf32>
    %105 = arith.mulf %104, %18 : vector<16x128xf32>
    %c3_51 = arith.constant 3 : index
    %c1_52 = arith.constant 1 : index
    %106 = memref.load %arg6[%c3_51, %c1_52] : memref<32x3xf32, #tpu.memory_space<smem>>
    %107 = vector.broadcast %106 : f32 to vector<16x128xf32>
    %108 = arith.mulf %107, %21 : vector<16x128xf32>
    %109 = arith.addf %105, %108 : vector<16x128xf32>
    %c3_53 = arith.constant 3 : index
    %c2_54 = arith.constant 2 : index
    %110 = memref.load %arg6[%c3_53, %c2_54] : memref<32x3xf32, #tpu.memory_space<smem>>
    %111 = vector.broadcast %110 : f32 to vector<16x128xf32>
    %112 = arith.mulf %111, %29 : vector<16x128xf32>
    %113 = arith.addf %109, %112 : vector<16x128xf32>
    %114 = arith.index_cast %arg0 : i32 to index
    %c3_55 = arith.constant 3 : index
    %115 = memref.load %arg5[%114, %c3_55] : memref<2x32xf32, #tpu.memory_space<smem>>
    %116 = vector.broadcast %115 : f32 to vector<16x128xf32>
    %117 = arith.addf %113, %116 : vector<16x128xf32>
    %cst_56 = arith.constant 0.000000e+00 : f32
    %118 = vector.broadcast %cst_56 : f32 to vector<16x128xf32>
    %119 = arith.maximumf %117, %118 : vector<16x128xf32>
    %c0_57 = arith.constant 0 : index
    %c3_58 = arith.constant 3 : index
    %120 = memref.load %arg7[%c0_57, %c3_58] : memref<2x32xf32, #tpu.memory_space<smem>>
    %121 = vector.broadcast %120 : f32 to vector<16x128xf32>
    %122 = arith.mulf %121, %119 : vector<16x128xf32>
    %c1_59 = arith.constant 1 : index
    %c3_60 = arith.constant 3 : index
    %123 = memref.load %arg7[%c1_59, %c3_60] : memref<2x32xf32, #tpu.memory_space<smem>>
    %124 = vector.broadcast %123 : f32 to vector<16x128xf32>
    %125 = arith.mulf %124, %119 : vector<16x128xf32>
    %126 = arith.addf %101, %122 : vector<16x128xf32>
    %127 = arith.addf %102, %125 : vector<16x128xf32>
    %c4 = arith.constant 4 : index
    %c0_61 = arith.constant 0 : index
    %128 = memref.load %arg6[%c4, %c0_61] : memref<32x3xf32, #tpu.memory_space<smem>>
    %129 = vector.broadcast %128 : f32 to vector<16x128xf32>
    %130 = arith.mulf %129, %18 : vector<16x128xf32>
    %c4_62 = arith.constant 4 : index
    %c1_63 = arith.constant 1 : index
    %131 = memref.load %arg6[%c4_62, %c1_63] : memref<32x3xf32, #tpu.memory_space<smem>>
    %132 = vector.broadcast %131 : f32 to vector<16x128xf32>
    %133 = arith.mulf %132, %21 : vector<16x128xf32>
    %134 = arith.addf %130, %133 : vector<16x128xf32>
    %c4_64 = arith.constant 4 : index
    %c2_65 = arith.constant 2 : index
    %135 = memref.load %arg6[%c4_64, %c2_65] : memref<32x3xf32, #tpu.memory_space<smem>>
    %136 = vector.broadcast %135 : f32 to vector<16x128xf32>
    %137 = arith.mulf %136, %29 : vector<16x128xf32>
    %138 = arith.addf %134, %137 : vector<16x128xf32>
    %139 = arith.index_cast %arg0 : i32 to index
    %c4_66 = arith.constant 4 : index
    %140 = memref.load %arg5[%139, %c4_66] : memref<2x32xf32, #tpu.memory_space<smem>>
    %141 = vector.broadcast %140 : f32 to vector<16x128xf32>
    %142 = arith.addf %138, %141 : vector<16x128xf32>
    %cst_67 = arith.constant 0.000000e+00 : f32
    %143 = vector.broadcast %cst_67 : f32 to vector<16x128xf32>
    %144 = arith.maximumf %142, %143 : vector<16x128xf32>
    %c0_68 = arith.constant 0 : index
    %c4_69 = arith.constant 4 : index
    %145 = memref.load %arg7[%c0_68, %c4_69] : memref<2x32xf32, #tpu.memory_space<smem>>
    %146 = vector.broadcast %145 : f32 to vector<16x128xf32>
    %147 = arith.mulf %146, %144 : vector<16x128xf32>
    %c1_70 = arith.constant 1 : index
    %c4_71 = arith.constant 4 : index
    %148 = memref.load %arg7[%c1_70, %c4_71] : memref<2x32xf32, #tpu.memory_space<smem>>
    %149 = vector.broadcast %148 : f32 to vector<16x128xf32>
    %150 = arith.mulf %149, %144 : vector<16x128xf32>
    %151 = arith.addf %126, %147 : vector<16x128xf32>
    %152 = arith.addf %127, %150 : vector<16x128xf32>
    %c5 = arith.constant 5 : index
    %c0_72 = arith.constant 0 : index
    %153 = memref.load %arg6[%c5, %c0_72] : memref<32x3xf32, #tpu.memory_space<smem>>
    %154 = vector.broadcast %153 : f32 to vector<16x128xf32>
    %155 = arith.mulf %154, %18 : vector<16x128xf32>
    %c5_73 = arith.constant 5 : index
    %c1_74 = arith.constant 1 : index
    %156 = memref.load %arg6[%c5_73, %c1_74] : memref<32x3xf32, #tpu.memory_space<smem>>
    %157 = vector.broadcast %156 : f32 to vector<16x128xf32>
    %158 = arith.mulf %157, %21 : vector<16x128xf32>
    %159 = arith.addf %155, %158 : vector<16x128xf32>
    %c5_75 = arith.constant 5 : index
    %c2_76 = arith.constant 2 : index
    %160 = memref.load %arg6[%c5_75, %c2_76] : memref<32x3xf32, #tpu.memory_space<smem>>
    %161 = vector.broadcast %160 : f32 to vector<16x128xf32>
    %162 = arith.mulf %161, %29 : vector<16x128xf32>
    %163 = arith.addf %159, %162 : vector<16x128xf32>
    %164 = arith.index_cast %arg0 : i32 to index
    %c5_77 = arith.constant 5 : index
    %165 = memref.load %arg5[%164, %c5_77] : memref<2x32xf32, #tpu.memory_space<smem>>
    %166 = vector.broadcast %165 : f32 to vector<16x128xf32>
    %167 = arith.addf %163, %166 : vector<16x128xf32>
    %cst_78 = arith.constant 0.000000e+00 : f32
    %168 = vector.broadcast %cst_78 : f32 to vector<16x128xf32>
    %169 = arith.maximumf %167, %168 : vector<16x128xf32>
    %c0_79 = arith.constant 0 : index
    %c5_80 = arith.constant 5 : index
    %170 = memref.load %arg7[%c0_79, %c5_80] : memref<2x32xf32, #tpu.memory_space<smem>>
    %171 = vector.broadcast %170 : f32 to vector<16x128xf32>
    %172 = arith.mulf %171, %169 : vector<16x128xf32>
    %c1_81 = arith.constant 1 : index
    %c5_82 = arith.constant 5 : index
    %173 = memref.load %arg7[%c1_81, %c5_82] : memref<2x32xf32, #tpu.memory_space<smem>>
    %174 = vector.broadcast %173 : f32 to vector<16x128xf32>
    %175 = arith.mulf %174, %169 : vector<16x128xf32>
    %176 = arith.addf %151, %172 : vector<16x128xf32>
    %177 = arith.addf %152, %175 : vector<16x128xf32>
    %c6 = arith.constant 6 : index
    %c0_83 = arith.constant 0 : index
    %178 = memref.load %arg6[%c6, %c0_83] : memref<32x3xf32, #tpu.memory_space<smem>>
    %179 = vector.broadcast %178 : f32 to vector<16x128xf32>
    %180 = arith.mulf %179, %18 : vector<16x128xf32>
    %c6_84 = arith.constant 6 : index
    %c1_85 = arith.constant 1 : index
    %181 = memref.load %arg6[%c6_84, %c1_85] : memref<32x3xf32, #tpu.memory_space<smem>>
    %182 = vector.broadcast %181 : f32 to vector<16x128xf32>
    %183 = arith.mulf %182, %21 : vector<16x128xf32>
    %184 = arith.addf %180, %183 : vector<16x128xf32>
    %c6_86 = arith.constant 6 : index
    %c2_87 = arith.constant 2 : index
    %185 = memref.load %arg6[%c6_86, %c2_87] : memref<32x3xf32, #tpu.memory_space<smem>>
    %186 = vector.broadcast %185 : f32 to vector<16x128xf32>
    %187 = arith.mulf %186, %29 : vector<16x128xf32>
    %188 = arith.addf %184, %187 : vector<16x128xf32>
    %189 = arith.index_cast %arg0 : i32 to index
    %c6_88 = arith.constant 6 : index
    %190 = memref.load %arg5[%189, %c6_88] : memref<2x32xf32, #tpu.memory_space<smem>>
    %191 = vector.broadcast %190 : f32 to vector<16x128xf32>
    %192 = arith.addf %188, %191 : vector<16x128xf32>
    %cst_89 = arith.constant 0.000000e+00 : f32
    %193 = vector.broadcast %cst_89 : f32 to vector<16x128xf32>
    %194 = arith.maximumf %192, %193 : vector<16x128xf32>
    %c0_90 = arith.constant 0 : index
    %c6_91 = arith.constant 6 : index
    %195 = memref.load %arg7[%c0_90, %c6_91] : memref<2x32xf32, #tpu.memory_space<smem>>
    %196 = vector.broadcast %195 : f32 to vector<16x128xf32>
    %197 = arith.mulf %196, %194 : vector<16x128xf32>
    %c1_92 = arith.constant 1 : index
    %c6_93 = arith.constant 6 : index
    %198 = memref.load %arg7[%c1_92, %c6_93] : memref<2x32xf32, #tpu.memory_space<smem>>
    %199 = vector.broadcast %198 : f32 to vector<16x128xf32>
    %200 = arith.mulf %199, %194 : vector<16x128xf32>
    %201 = arith.addf %176, %197 : vector<16x128xf32>
    %202 = arith.addf %177, %200 : vector<16x128xf32>
    %c7 = arith.constant 7 : index
    %c0_94 = arith.constant 0 : index
    %203 = memref.load %arg6[%c7, %c0_94] : memref<32x3xf32, #tpu.memory_space<smem>>
    %204 = vector.broadcast %203 : f32 to vector<16x128xf32>
    %205 = arith.mulf %204, %18 : vector<16x128xf32>
    %c7_95 = arith.constant 7 : index
    %c1_96 = arith.constant 1 : index
    %206 = memref.load %arg6[%c7_95, %c1_96] : memref<32x3xf32, #tpu.memory_space<smem>>
    %207 = vector.broadcast %206 : f32 to vector<16x128xf32>
    %208 = arith.mulf %207, %21 : vector<16x128xf32>
    %209 = arith.addf %205, %208 : vector<16x128xf32>
    %c7_97 = arith.constant 7 : index
    %c2_98 = arith.constant 2 : index
    %210 = memref.load %arg6[%c7_97, %c2_98] : memref<32x3xf32, #tpu.memory_space<smem>>
    %211 = vector.broadcast %210 : f32 to vector<16x128xf32>
    %212 = arith.mulf %211, %29 : vector<16x128xf32>
    %213 = arith.addf %209, %212 : vector<16x128xf32>
    %214 = arith.index_cast %arg0 : i32 to index
    %c7_99 = arith.constant 7 : index
    %215 = memref.load %arg5[%214, %c7_99] : memref<2x32xf32, #tpu.memory_space<smem>>
    %216 = vector.broadcast %215 : f32 to vector<16x128xf32>
    %217 = arith.addf %213, %216 : vector<16x128xf32>
    %cst_100 = arith.constant 0.000000e+00 : f32
    %218 = vector.broadcast %cst_100 : f32 to vector<16x128xf32>
    %219 = arith.maximumf %217, %218 : vector<16x128xf32>
    %c0_101 = arith.constant 0 : index
    %c7_102 = arith.constant 7 : index
    %220 = memref.load %arg7[%c0_101, %c7_102] : memref<2x32xf32, #tpu.memory_space<smem>>
    %221 = vector.broadcast %220 : f32 to vector<16x128xf32>
    %222 = arith.mulf %221, %219 : vector<16x128xf32>
    %c1_103 = arith.constant 1 : index
    %c7_104 = arith.constant 7 : index
    %223 = memref.load %arg7[%c1_103, %c7_104] : memref<2x32xf32, #tpu.memory_space<smem>>
    %224 = vector.broadcast %223 : f32 to vector<16x128xf32>
    %225 = arith.mulf %224, %219 : vector<16x128xf32>
    %226 = arith.addf %201, %222 : vector<16x128xf32>
    %227 = arith.addf %202, %225 : vector<16x128xf32>
    %c8 = arith.constant 8 : index
    %c0_105 = arith.constant 0 : index
    %228 = memref.load %arg6[%c8, %c0_105] : memref<32x3xf32, #tpu.memory_space<smem>>
    %229 = vector.broadcast %228 : f32 to vector<16x128xf32>
    %230 = arith.mulf %229, %18 : vector<16x128xf32>
    %c8_106 = arith.constant 8 : index
    %c1_107 = arith.constant 1 : index
    %231 = memref.load %arg6[%c8_106, %c1_107] : memref<32x3xf32, #tpu.memory_space<smem>>
    %232 = vector.broadcast %231 : f32 to vector<16x128xf32>
    %233 = arith.mulf %232, %21 : vector<16x128xf32>
    %234 = arith.addf %230, %233 : vector<16x128xf32>
    %c8_108 = arith.constant 8 : index
    %c2_109 = arith.constant 2 : index
    %235 = memref.load %arg6[%c8_108, %c2_109] : memref<32x3xf32, #tpu.memory_space<smem>>
    %236 = vector.broadcast %235 : f32 to vector<16x128xf32>
    %237 = arith.mulf %236, %29 : vector<16x128xf32>
    %238 = arith.addf %234, %237 : vector<16x128xf32>
    %239 = arith.index_cast %arg0 : i32 to index
    %c8_110 = arith.constant 8 : index
    %240 = memref.load %arg5[%239, %c8_110] : memref<2x32xf32, #tpu.memory_space<smem>>
    %241 = vector.broadcast %240 : f32 to vector<16x128xf32>
    %242 = arith.addf %238, %241 : vector<16x128xf32>
    %cst_111 = arith.constant 0.000000e+00 : f32
    %243 = vector.broadcast %cst_111 : f32 to vector<16x128xf32>
    %244 = arith.maximumf %242, %243 : vector<16x128xf32>
    %c0_112 = arith.constant 0 : index
    %c8_113 = arith.constant 8 : index
    %245 = memref.load %arg7[%c0_112, %c8_113] : memref<2x32xf32, #tpu.memory_space<smem>>
    %246 = vector.broadcast %245 : f32 to vector<16x128xf32>
    %247 = arith.mulf %246, %244 : vector<16x128xf32>
    %c1_114 = arith.constant 1 : index
    %c8_115 = arith.constant 8 : index
    %248 = memref.load %arg7[%c1_114, %c8_115] : memref<2x32xf32, #tpu.memory_space<smem>>
    %249 = vector.broadcast %248 : f32 to vector<16x128xf32>
    %250 = arith.mulf %249, %244 : vector<16x128xf32>
    %251 = arith.addf %226, %247 : vector<16x128xf32>
    %252 = arith.addf %227, %250 : vector<16x128xf32>
    %c9 = arith.constant 9 : index
    %c0_116 = arith.constant 0 : index
    %253 = memref.load %arg6[%c9, %c0_116] : memref<32x3xf32, #tpu.memory_space<smem>>
    %254 = vector.broadcast %253 : f32 to vector<16x128xf32>
    %255 = arith.mulf %254, %18 : vector<16x128xf32>
    %c9_117 = arith.constant 9 : index
    %c1_118 = arith.constant 1 : index
    %256 = memref.load %arg6[%c9_117, %c1_118] : memref<32x3xf32, #tpu.memory_space<smem>>
    %257 = vector.broadcast %256 : f32 to vector<16x128xf32>
    %258 = arith.mulf %257, %21 : vector<16x128xf32>
    %259 = arith.addf %255, %258 : vector<16x128xf32>
    %c9_119 = arith.constant 9 : index
    %c2_120 = arith.constant 2 : index
    %260 = memref.load %arg6[%c9_119, %c2_120] : memref<32x3xf32, #tpu.memory_space<smem>>
    %261 = vector.broadcast %260 : f32 to vector<16x128xf32>
    %262 = arith.mulf %261, %29 : vector<16x128xf32>
    %263 = arith.addf %259, %262 : vector<16x128xf32>
    %264 = arith.index_cast %arg0 : i32 to index
    %c9_121 = arith.constant 9 : index
    %265 = memref.load %arg5[%264, %c9_121] : memref<2x32xf32, #tpu.memory_space<smem>>
    %266 = vector.broadcast %265 : f32 to vector<16x128xf32>
    %267 = arith.addf %263, %266 : vector<16x128xf32>
    %cst_122 = arith.constant 0.000000e+00 : f32
    %268 = vector.broadcast %cst_122 : f32 to vector<16x128xf32>
    %269 = arith.maximumf %267, %268 : vector<16x128xf32>
    %c0_123 = arith.constant 0 : index
    %c9_124 = arith.constant 9 : index
    %270 = memref.load %arg7[%c0_123, %c9_124] : memref<2x32xf32, #tpu.memory_space<smem>>
    %271 = vector.broadcast %270 : f32 to vector<16x128xf32>
    %272 = arith.mulf %271, %269 : vector<16x128xf32>
    %c1_125 = arith.constant 1 : index
    %c9_126 = arith.constant 9 : index
    %273 = memref.load %arg7[%c1_125, %c9_126] : memref<2x32xf32, #tpu.memory_space<smem>>
    %274 = vector.broadcast %273 : f32 to vector<16x128xf32>
    %275 = arith.mulf %274, %269 : vector<16x128xf32>
    %276 = arith.addf %251, %272 : vector<16x128xf32>
    %277 = arith.addf %252, %275 : vector<16x128xf32>
    %c10 = arith.constant 10 : index
    %c0_127 = arith.constant 0 : index
    %278 = memref.load %arg6[%c10, %c0_127] : memref<32x3xf32, #tpu.memory_space<smem>>
    %279 = vector.broadcast %278 : f32 to vector<16x128xf32>
    %280 = arith.mulf %279, %18 : vector<16x128xf32>
    %c10_128 = arith.constant 10 : index
    %c1_129 = arith.constant 1 : index
    %281 = memref.load %arg6[%c10_128, %c1_129] : memref<32x3xf32, #tpu.memory_space<smem>>
    %282 = vector.broadcast %281 : f32 to vector<16x128xf32>
    %283 = arith.mulf %282, %21 : vector<16x128xf32>
    %284 = arith.addf %280, %283 : vector<16x128xf32>
    %c10_130 = arith.constant 10 : index
    %c2_131 = arith.constant 2 : index
    %285 = memref.load %arg6[%c10_130, %c2_131] : memref<32x3xf32, #tpu.memory_space<smem>>
    %286 = vector.broadcast %285 : f32 to vector<16x128xf32>
    %287 = arith.mulf %286, %29 : vector<16x128xf32>
    %288 = arith.addf %284, %287 : vector<16x128xf32>
    %289 = arith.index_cast %arg0 : i32 to index
    %c10_132 = arith.constant 10 : index
    %290 = memref.load %arg5[%289, %c10_132] : memref<2x32xf32, #tpu.memory_space<smem>>
    %291 = vector.broadcast %290 : f32 to vector<16x128xf32>
    %292 = arith.addf %288, %291 : vector<16x128xf32>
    %cst_133 = arith.constant 0.000000e+00 : f32
    %293 = vector.broadcast %cst_133 : f32 to vector<16x128xf32>
    %294 = arith.maximumf %292, %293 : vector<16x128xf32>
    %c0_134 = arith.constant 0 : index
    %c10_135 = arith.constant 10 : index
    %295 = memref.load %arg7[%c0_134, %c10_135] : memref<2x32xf32, #tpu.memory_space<smem>>
    %296 = vector.broadcast %295 : f32 to vector<16x128xf32>
    %297 = arith.mulf %296, %294 : vector<16x128xf32>
    %c1_136 = arith.constant 1 : index
    %c10_137 = arith.constant 10 : index
    %298 = memref.load %arg7[%c1_136, %c10_137] : memref<2x32xf32, #tpu.memory_space<smem>>
    %299 = vector.broadcast %298 : f32 to vector<16x128xf32>
    %300 = arith.mulf %299, %294 : vector<16x128xf32>
    %301 = arith.addf %276, %297 : vector<16x128xf32>
    %302 = arith.addf %277, %300 : vector<16x128xf32>
    %c11 = arith.constant 11 : index
    %c0_138 = arith.constant 0 : index
    %303 = memref.load %arg6[%c11, %c0_138] : memref<32x3xf32, #tpu.memory_space<smem>>
    %304 = vector.broadcast %303 : f32 to vector<16x128xf32>
    %305 = arith.mulf %304, %18 : vector<16x128xf32>
    %c11_139 = arith.constant 11 : index
    %c1_140 = arith.constant 1 : index
    %306 = memref.load %arg6[%c11_139, %c1_140] : memref<32x3xf32, #tpu.memory_space<smem>>
    %307 = vector.broadcast %306 : f32 to vector<16x128xf32>
    %308 = arith.mulf %307, %21 : vector<16x128xf32>
    %309 = arith.addf %305, %308 : vector<16x128xf32>
    %c11_141 = arith.constant 11 : index
    %c2_142 = arith.constant 2 : index
    %310 = memref.load %arg6[%c11_141, %c2_142] : memref<32x3xf32, #tpu.memory_space<smem>>
    %311 = vector.broadcast %310 : f32 to vector<16x128xf32>
    %312 = arith.mulf %311, %29 : vector<16x128xf32>
    %313 = arith.addf %309, %312 : vector<16x128xf32>
    %314 = arith.index_cast %arg0 : i32 to index
    %c11_143 = arith.constant 11 : index
    %315 = memref.load %arg5[%314, %c11_143] : memref<2x32xf32, #tpu.memory_space<smem>>
    %316 = vector.broadcast %315 : f32 to vector<16x128xf32>
    %317 = arith.addf %313, %316 : vector<16x128xf32>
    %cst_144 = arith.constant 0.000000e+00 : f32
    %318 = vector.broadcast %cst_144 : f32 to vector<16x128xf32>
    %319 = arith.maximumf %317, %318 : vector<16x128xf32>
    %c0_145 = arith.constant 0 : index
    %c11_146 = arith.constant 11 : index
    %320 = memref.load %arg7[%c0_145, %c11_146] : memref<2x32xf32, #tpu.memory_space<smem>>
    %321 = vector.broadcast %320 : f32 to vector<16x128xf32>
    %322 = arith.mulf %321, %319 : vector<16x128xf32>
    %c1_147 = arith.constant 1 : index
    %c11_148 = arith.constant 11 : index
    %323 = memref.load %arg7[%c1_147, %c11_148] : memref<2x32xf32, #tpu.memory_space<smem>>
    %324 = vector.broadcast %323 : f32 to vector<16x128xf32>
    %325 = arith.mulf %324, %319 : vector<16x128xf32>
    %326 = arith.addf %301, %322 : vector<16x128xf32>
    %327 = arith.addf %302, %325 : vector<16x128xf32>
    %c12 = arith.constant 12 : index
    %c0_149 = arith.constant 0 : index
    %328 = memref.load %arg6[%c12, %c0_149] : memref<32x3xf32, #tpu.memory_space<smem>>
    %329 = vector.broadcast %328 : f32 to vector<16x128xf32>
    %330 = arith.mulf %329, %18 : vector<16x128xf32>
    %c12_150 = arith.constant 12 : index
    %c1_151 = arith.constant 1 : index
    %331 = memref.load %arg6[%c12_150, %c1_151] : memref<32x3xf32, #tpu.memory_space<smem>>
    %332 = vector.broadcast %331 : f32 to vector<16x128xf32>
    %333 = arith.mulf %332, %21 : vector<16x128xf32>
    %334 = arith.addf %330, %333 : vector<16x128xf32>
    %c12_152 = arith.constant 12 : index
    %c2_153 = arith.constant 2 : index
    %335 = memref.load %arg6[%c12_152, %c2_153] : memref<32x3xf32, #tpu.memory_space<smem>>
    %336 = vector.broadcast %335 : f32 to vector<16x128xf32>
    %337 = arith.mulf %336, %29 : vector<16x128xf32>
    %338 = arith.addf %334, %337 : vector<16x128xf32>
    %339 = arith.index_cast %arg0 : i32 to index
    %c12_154 = arith.constant 12 : index
    %340 = memref.load %arg5[%339, %c12_154] : memref<2x32xf32, #tpu.memory_space<smem>>
    %341 = vector.broadcast %340 : f32 to vector<16x128xf32>
    %342 = arith.addf %338, %341 : vector<16x128xf32>
    %cst_155 = arith.constant 0.000000e+00 : f32
    %343 = vector.broadcast %cst_155 : f32 to vector<16x128xf32>
    %344 = arith.maximumf %342, %343 : vector<16x128xf32>
    %c0_156 = arith.constant 0 : index
    %c12_157 = arith.constant 12 : index
    %345 = memref.load %arg7[%c0_156, %c12_157] : memref<2x32xf32, #tpu.memory_space<smem>>
    %346 = vector.broadcast %345 : f32 to vector<16x128xf32>
    %347 = arith.mulf %346, %344 : vector<16x128xf32>
    %c1_158 = arith.constant 1 : index
    %c12_159 = arith.constant 12 : index
    %348 = memref.load %arg7[%c1_158, %c12_159] : memref<2x32xf32, #tpu.memory_space<smem>>
    %349 = vector.broadcast %348 : f32 to vector<16x128xf32>
    %350 = arith.mulf %349, %344 : vector<16x128xf32>
    %351 = arith.addf %326, %347 : vector<16x128xf32>
    %352 = arith.addf %327, %350 : vector<16x128xf32>
    %c13 = arith.constant 13 : index
    %c0_160 = arith.constant 0 : index
    %353 = memref.load %arg6[%c13, %c0_160] : memref<32x3xf32, #tpu.memory_space<smem>>
    %354 = vector.broadcast %353 : f32 to vector<16x128xf32>
    %355 = arith.mulf %354, %18 : vector<16x128xf32>
    %c13_161 = arith.constant 13 : index
    %c1_162 = arith.constant 1 : index
    %356 = memref.load %arg6[%c13_161, %c1_162] : memref<32x3xf32, #tpu.memory_space<smem>>
    %357 = vector.broadcast %356 : f32 to vector<16x128xf32>
    %358 = arith.mulf %357, %21 : vector<16x128xf32>
    %359 = arith.addf %355, %358 : vector<16x128xf32>
    %c13_163 = arith.constant 13 : index
    %c2_164 = arith.constant 2 : index
    %360 = memref.load %arg6[%c13_163, %c2_164] : memref<32x3xf32, #tpu.memory_space<smem>>
    %361 = vector.broadcast %360 : f32 to vector<16x128xf32>
    %362 = arith.mulf %361, %29 : vector<16x128xf32>
    %363 = arith.addf %359, %362 : vector<16x128xf32>
    %364 = arith.index_cast %arg0 : i32 to index
    %c13_165 = arith.constant 13 : index
    %365 = memref.load %arg5[%364, %c13_165] : memref<2x32xf32, #tpu.memory_space<smem>>
    %366 = vector.broadcast %365 : f32 to vector<16x128xf32>
    %367 = arith.addf %363, %366 : vector<16x128xf32>
    %cst_166 = arith.constant 0.000000e+00 : f32
    %368 = vector.broadcast %cst_166 : f32 to vector<16x128xf32>
    %369 = arith.maximumf %367, %368 : vector<16x128xf32>
    %c0_167 = arith.constant 0 : index
    %c13_168 = arith.constant 13 : index
    %370 = memref.load %arg7[%c0_167, %c13_168] : memref<2x32xf32, #tpu.memory_space<smem>>
    %371 = vector.broadcast %370 : f32 to vector<16x128xf32>
    %372 = arith.mulf %371, %369 : vector<16x128xf32>
    %c1_169 = arith.constant 1 : index
    %c13_170 = arith.constant 13 : index
    %373 = memref.load %arg7[%c1_169, %c13_170] : memref<2x32xf32, #tpu.memory_space<smem>>
    %374 = vector.broadcast %373 : f32 to vector<16x128xf32>
    %375 = arith.mulf %374, %369 : vector<16x128xf32>
    %376 = arith.addf %351, %372 : vector<16x128xf32>
    %377 = arith.addf %352, %375 : vector<16x128xf32>
    %c14 = arith.constant 14 : index
    %c0_171 = arith.constant 0 : index
    %378 = memref.load %arg6[%c14, %c0_171] : memref<32x3xf32, #tpu.memory_space<smem>>
    %379 = vector.broadcast %378 : f32 to vector<16x128xf32>
    %380 = arith.mulf %379, %18 : vector<16x128xf32>
    %c14_172 = arith.constant 14 : index
    %c1_173 = arith.constant 1 : index
    %381 = memref.load %arg6[%c14_172, %c1_173] : memref<32x3xf32, #tpu.memory_space<smem>>
    %382 = vector.broadcast %381 : f32 to vector<16x128xf32>
    %383 = arith.mulf %382, %21 : vector<16x128xf32>
    %384 = arith.addf %380, %383 : vector<16x128xf32>
    %c14_174 = arith.constant 14 : index
    %c2_175 = arith.constant 2 : index
    %385 = memref.load %arg6[%c14_174, %c2_175] : memref<32x3xf32, #tpu.memory_space<smem>>
    %386 = vector.broadcast %385 : f32 to vector<16x128xf32>
    %387 = arith.mulf %386, %29 : vector<16x128xf32>
    %388 = arith.addf %384, %387 : vector<16x128xf32>
    %389 = arith.index_cast %arg0 : i32 to index
    %c14_176 = arith.constant 14 : index
    %390 = memref.load %arg5[%389, %c14_176] : memref<2x32xf32, #tpu.memory_space<smem>>
    %391 = vector.broadcast %390 : f32 to vector<16x128xf32>
    %392 = arith.addf %388, %391 : vector<16x128xf32>
    %cst_177 = arith.constant 0.000000e+00 : f32
    %393 = vector.broadcast %cst_177 : f32 to vector<16x128xf32>
    %394 = arith.maximumf %392, %393 : vector<16x128xf32>
    %c0_178 = arith.constant 0 : index
    %c14_179 = arith.constant 14 : index
    %395 = memref.load %arg7[%c0_178, %c14_179] : memref<2x32xf32, #tpu.memory_space<smem>>
    %396 = vector.broadcast %395 : f32 to vector<16x128xf32>
    %397 = arith.mulf %396, %394 : vector<16x128xf32>
    %c1_180 = arith.constant 1 : index
    %c14_181 = arith.constant 14 : index
    %398 = memref.load %arg7[%c1_180, %c14_181] : memref<2x32xf32, #tpu.memory_space<smem>>
    %399 = vector.broadcast %398 : f32 to vector<16x128xf32>
    %400 = arith.mulf %399, %394 : vector<16x128xf32>
    %401 = arith.addf %376, %397 : vector<16x128xf32>
    %402 = arith.addf %377, %400 : vector<16x128xf32>
    %c15 = arith.constant 15 : index
    %c0_182 = arith.constant 0 : index
    %403 = memref.load %arg6[%c15, %c0_182] : memref<32x3xf32, #tpu.memory_space<smem>>
    %404 = vector.broadcast %403 : f32 to vector<16x128xf32>
    %405 = arith.mulf %404, %18 : vector<16x128xf32>
    %c15_183 = arith.constant 15 : index
    %c1_184 = arith.constant 1 : index
    %406 = memref.load %arg6[%c15_183, %c1_184] : memref<32x3xf32, #tpu.memory_space<smem>>
    %407 = vector.broadcast %406 : f32 to vector<16x128xf32>
    %408 = arith.mulf %407, %21 : vector<16x128xf32>
    %409 = arith.addf %405, %408 : vector<16x128xf32>
    %c15_185 = arith.constant 15 : index
    %c2_186 = arith.constant 2 : index
    %410 = memref.load %arg6[%c15_185, %c2_186] : memref<32x3xf32, #tpu.memory_space<smem>>
    %411 = vector.broadcast %410 : f32 to vector<16x128xf32>
    %412 = arith.mulf %411, %29 : vector<16x128xf32>
    %413 = arith.addf %409, %412 : vector<16x128xf32>
    %414 = arith.index_cast %arg0 : i32 to index
    %c15_187 = arith.constant 15 : index
    %415 = memref.load %arg5[%414, %c15_187] : memref<2x32xf32, #tpu.memory_space<smem>>
    %416 = vector.broadcast %415 : f32 to vector<16x128xf32>
    %417 = arith.addf %413, %416 : vector<16x128xf32>
    %cst_188 = arith.constant 0.000000e+00 : f32
    %418 = vector.broadcast %cst_188 : f32 to vector<16x128xf32>
    %419 = arith.maximumf %417, %418 : vector<16x128xf32>
    %c0_189 = arith.constant 0 : index
    %c15_190 = arith.constant 15 : index
    %420 = memref.load %arg7[%c0_189, %c15_190] : memref<2x32xf32, #tpu.memory_space<smem>>
    %421 = vector.broadcast %420 : f32 to vector<16x128xf32>
    %422 = arith.mulf %421, %419 : vector<16x128xf32>
    %c1_191 = arith.constant 1 : index
    %c15_192 = arith.constant 15 : index
    %423 = memref.load %arg7[%c1_191, %c15_192] : memref<2x32xf32, #tpu.memory_space<smem>>
    %424 = vector.broadcast %423 : f32 to vector<16x128xf32>
    %425 = arith.mulf %424, %419 : vector<16x128xf32>
    %426 = arith.addf %401, %422 : vector<16x128xf32>
    %427 = arith.addf %402, %425 : vector<16x128xf32>
    %c16 = arith.constant 16 : index
    %c0_193 = arith.constant 0 : index
    %428 = memref.load %arg6[%c16, %c0_193] : memref<32x3xf32, #tpu.memory_space<smem>>
    %429 = vector.broadcast %428 : f32 to vector<16x128xf32>
    %430 = arith.mulf %429, %18 : vector<16x128xf32>
    %c16_194 = arith.constant 16 : index
    %c1_195 = arith.constant 1 : index
    %431 = memref.load %arg6[%c16_194, %c1_195] : memref<32x3xf32, #tpu.memory_space<smem>>
    %432 = vector.broadcast %431 : f32 to vector<16x128xf32>
    %433 = arith.mulf %432, %21 : vector<16x128xf32>
    %434 = arith.addf %430, %433 : vector<16x128xf32>
    %c16_196 = arith.constant 16 : index
    %c2_197 = arith.constant 2 : index
    %435 = memref.load %arg6[%c16_196, %c2_197] : memref<32x3xf32, #tpu.memory_space<smem>>
    %436 = vector.broadcast %435 : f32 to vector<16x128xf32>
    %437 = arith.mulf %436, %29 : vector<16x128xf32>
    %438 = arith.addf %434, %437 : vector<16x128xf32>
    %439 = arith.index_cast %arg0 : i32 to index
    %c16_198 = arith.constant 16 : index
    %440 = memref.load %arg5[%439, %c16_198] : memref<2x32xf32, #tpu.memory_space<smem>>
    %441 = vector.broadcast %440 : f32 to vector<16x128xf32>
    %442 = arith.addf %438, %441 : vector<16x128xf32>
    %cst_199 = arith.constant 0.000000e+00 : f32
    %443 = vector.broadcast %cst_199 : f32 to vector<16x128xf32>
    %444 = arith.maximumf %442, %443 : vector<16x128xf32>
    %c0_200 = arith.constant 0 : index
    %c16_201 = arith.constant 16 : index
    %445 = memref.load %arg7[%c0_200, %c16_201] : memref<2x32xf32, #tpu.memory_space<smem>>
    %446 = vector.broadcast %445 : f32 to vector<16x128xf32>
    %447 = arith.mulf %446, %444 : vector<16x128xf32>
    %c1_202 = arith.constant 1 : index
    %c16_203 = arith.constant 16 : index
    %448 = memref.load %arg7[%c1_202, %c16_203] : memref<2x32xf32, #tpu.memory_space<smem>>
    %449 = vector.broadcast %448 : f32 to vector<16x128xf32>
    %450 = arith.mulf %449, %444 : vector<16x128xf32>
    %451 = arith.addf %426, %447 : vector<16x128xf32>
    %452 = arith.addf %427, %450 : vector<16x128xf32>
    %c17 = arith.constant 17 : index
    %c0_204 = arith.constant 0 : index
    %453 = memref.load %arg6[%c17, %c0_204] : memref<32x3xf32, #tpu.memory_space<smem>>
    %454 = vector.broadcast %453 : f32 to vector<16x128xf32>
    %455 = arith.mulf %454, %18 : vector<16x128xf32>
    %c17_205 = arith.constant 17 : index
    %c1_206 = arith.constant 1 : index
    %456 = memref.load %arg6[%c17_205, %c1_206] : memref<32x3xf32, #tpu.memory_space<smem>>
    %457 = vector.broadcast %456 : f32 to vector<16x128xf32>
    %458 = arith.mulf %457, %21 : vector<16x128xf32>
    %459 = arith.addf %455, %458 : vector<16x128xf32>
    %c17_207 = arith.constant 17 : index
    %c2_208 = arith.constant 2 : index
    %460 = memref.load %arg6[%c17_207, %c2_208] : memref<32x3xf32, #tpu.memory_space<smem>>
    %461 = vector.broadcast %460 : f32 to vector<16x128xf32>
    %462 = arith.mulf %461, %29 : vector<16x128xf32>
    %463 = arith.addf %459, %462 : vector<16x128xf32>
    %464 = arith.index_cast %arg0 : i32 to index
    %c17_209 = arith.constant 17 : index
    %465 = memref.load %arg5[%464, %c17_209] : memref<2x32xf32, #tpu.memory_space<smem>>
    %466 = vector.broadcast %465 : f32 to vector<16x128xf32>
    %467 = arith.addf %463, %466 : vector<16x128xf32>
    %cst_210 = arith.constant 0.000000e+00 : f32
    %468 = vector.broadcast %cst_210 : f32 to vector<16x128xf32>
    %469 = arith.maximumf %467, %468 : vector<16x128xf32>
    %c0_211 = arith.constant 0 : index
    %c17_212 = arith.constant 17 : index
    %470 = memref.load %arg7[%c0_211, %c17_212] : memref<2x32xf32, #tpu.memory_space<smem>>
    %471 = vector.broadcast %470 : f32 to vector<16x128xf32>
    %472 = arith.mulf %471, %469 : vector<16x128xf32>
    %c1_213 = arith.constant 1 : index
    %c17_214 = arith.constant 17 : index
    %473 = memref.load %arg7[%c1_213, %c17_214] : memref<2x32xf32, #tpu.memory_space<smem>>
    %474 = vector.broadcast %473 : f32 to vector<16x128xf32>
    %475 = arith.mulf %474, %469 : vector<16x128xf32>
    %476 = arith.addf %451, %472 : vector<16x128xf32>
    %477 = arith.addf %452, %475 : vector<16x128xf32>
    %c18 = arith.constant 18 : index
    %c0_215 = arith.constant 0 : index
    %478 = memref.load %arg6[%c18, %c0_215] : memref<32x3xf32, #tpu.memory_space<smem>>
    %479 = vector.broadcast %478 : f32 to vector<16x128xf32>
    %480 = arith.mulf %479, %18 : vector<16x128xf32>
    %c18_216 = arith.constant 18 : index
    %c1_217 = arith.constant 1 : index
    %481 = memref.load %arg6[%c18_216, %c1_217] : memref<32x3xf32, #tpu.memory_space<smem>>
    %482 = vector.broadcast %481 : f32 to vector<16x128xf32>
    %483 = arith.mulf %482, %21 : vector<16x128xf32>
    %484 = arith.addf %480, %483 : vector<16x128xf32>
    %c18_218 = arith.constant 18 : index
    %c2_219 = arith.constant 2 : index
    %485 = memref.load %arg6[%c18_218, %c2_219] : memref<32x3xf32, #tpu.memory_space<smem>>
    %486 = vector.broadcast %485 : f32 to vector<16x128xf32>
    %487 = arith.mulf %486, %29 : vector<16x128xf32>
    %488 = arith.addf %484, %487 : vector<16x128xf32>
    %489 = arith.index_cast %arg0 : i32 to index
    %c18_220 = arith.constant 18 : index
    %490 = memref.load %arg5[%489, %c18_220] : memref<2x32xf32, #tpu.memory_space<smem>>
    %491 = vector.broadcast %490 : f32 to vector<16x128xf32>
    %492 = arith.addf %488, %491 : vector<16x128xf32>
    %cst_221 = arith.constant 0.000000e+00 : f32
    %493 = vector.broadcast %cst_221 : f32 to vector<16x128xf32>
    %494 = arith.maximumf %492, %493 : vector<16x128xf32>
    %c0_222 = arith.constant 0 : index
    %c18_223 = arith.constant 18 : index
    %495 = memref.load %arg7[%c0_222, %c18_223] : memref<2x32xf32, #tpu.memory_space<smem>>
    %496 = vector.broadcast %495 : f32 to vector<16x128xf32>
    %497 = arith.mulf %496, %494 : vector<16x128xf32>
    %c1_224 = arith.constant 1 : index
    %c18_225 = arith.constant 18 : index
    %498 = memref.load %arg7[%c1_224, %c18_225] : memref<2x32xf32, #tpu.memory_space<smem>>
    %499 = vector.broadcast %498 : f32 to vector<16x128xf32>
    %500 = arith.mulf %499, %494 : vector<16x128xf32>
    %501 = arith.addf %476, %497 : vector<16x128xf32>
    %502 = arith.addf %477, %500 : vector<16x128xf32>
    %c19 = arith.constant 19 : index
    %c0_226 = arith.constant 0 : index
    %503 = memref.load %arg6[%c19, %c0_226] : memref<32x3xf32, #tpu.memory_space<smem>>
    %504 = vector.broadcast %503 : f32 to vector<16x128xf32>
    %505 = arith.mulf %504, %18 : vector<16x128xf32>
    %c19_227 = arith.constant 19 : index
    %c1_228 = arith.constant 1 : index
    %506 = memref.load %arg6[%c19_227, %c1_228] : memref<32x3xf32, #tpu.memory_space<smem>>
    %507 = vector.broadcast %506 : f32 to vector<16x128xf32>
    %508 = arith.mulf %507, %21 : vector<16x128xf32>
    %509 = arith.addf %505, %508 : vector<16x128xf32>
    %c19_229 = arith.constant 19 : index
    %c2_230 = arith.constant 2 : index
    %510 = memref.load %arg6[%c19_229, %c2_230] : memref<32x3xf32, #tpu.memory_space<smem>>
    %511 = vector.broadcast %510 : f32 to vector<16x128xf32>
    %512 = arith.mulf %511, %29 : vector<16x128xf32>
    %513 = arith.addf %509, %512 : vector<16x128xf32>
    %514 = arith.index_cast %arg0 : i32 to index
    %c19_231 = arith.constant 19 : index
    %515 = memref.load %arg5[%514, %c19_231] : memref<2x32xf32, #tpu.memory_space<smem>>
    %516 = vector.broadcast %515 : f32 to vector<16x128xf32>
    %517 = arith.addf %513, %516 : vector<16x128xf32>
    %cst_232 = arith.constant 0.000000e+00 : f32
    %518 = vector.broadcast %cst_232 : f32 to vector<16x128xf32>
    %519 = arith.maximumf %517, %518 : vector<16x128xf32>
    %c0_233 = arith.constant 0 : index
    %c19_234 = arith.constant 19 : index
    %520 = memref.load %arg7[%c0_233, %c19_234] : memref<2x32xf32, #tpu.memory_space<smem>>
    %521 = vector.broadcast %520 : f32 to vector<16x128xf32>
    %522 = arith.mulf %521, %519 : vector<16x128xf32>
    %c1_235 = arith.constant 1 : index
    %c19_236 = arith.constant 19 : index
    %523 = memref.load %arg7[%c1_235, %c19_236] : memref<2x32xf32, #tpu.memory_space<smem>>
    %524 = vector.broadcast %523 : f32 to vector<16x128xf32>
    %525 = arith.mulf %524, %519 : vector<16x128xf32>
    %526 = arith.addf %501, %522 : vector<16x128xf32>
    %527 = arith.addf %502, %525 : vector<16x128xf32>
    %c20 = arith.constant 20 : index
    %c0_237 = arith.constant 0 : index
    %528 = memref.load %arg6[%c20, %c0_237] : memref<32x3xf32, #tpu.memory_space<smem>>
    %529 = vector.broadcast %528 : f32 to vector<16x128xf32>
    %530 = arith.mulf %529, %18 : vector<16x128xf32>
    %c20_238 = arith.constant 20 : index
    %c1_239 = arith.constant 1 : index
    %531 = memref.load %arg6[%c20_238, %c1_239] : memref<32x3xf32, #tpu.memory_space<smem>>
    %532 = vector.broadcast %531 : f32 to vector<16x128xf32>
    %533 = arith.mulf %532, %21 : vector<16x128xf32>
    %534 = arith.addf %530, %533 : vector<16x128xf32>
    %c20_240 = arith.constant 20 : index
    %c2_241 = arith.constant 2 : index
    %535 = memref.load %arg6[%c20_240, %c2_241] : memref<32x3xf32, #tpu.memory_space<smem>>
    %536 = vector.broadcast %535 : f32 to vector<16x128xf32>
    %537 = arith.mulf %536, %29 : vector<16x128xf32>
    %538 = arith.addf %534, %537 : vector<16x128xf32>
    %539 = arith.index_cast %arg0 : i32 to index
    %c20_242 = arith.constant 20 : index
    %540 = memref.load %arg5[%539, %c20_242] : memref<2x32xf32, #tpu.memory_space<smem>>
    %541 = vector.broadcast %540 : f32 to vector<16x128xf32>
    %542 = arith.addf %538, %541 : vector<16x128xf32>
    %cst_243 = arith.constant 0.000000e+00 : f32
    %543 = vector.broadcast %cst_243 : f32 to vector<16x128xf32>
    %544 = arith.maximumf %542, %543 : vector<16x128xf32>
    %c0_244 = arith.constant 0 : index
    %c20_245 = arith.constant 20 : index
    %545 = memref.load %arg7[%c0_244, %c20_245] : memref<2x32xf32, #tpu.memory_space<smem>>
    %546 = vector.broadcast %545 : f32 to vector<16x128xf32>
    %547 = arith.mulf %546, %544 : vector<16x128xf32>
    %c1_246 = arith.constant 1 : index
    %c20_247 = arith.constant 20 : index
    %548 = memref.load %arg7[%c1_246, %c20_247] : memref<2x32xf32, #tpu.memory_space<smem>>
    %549 = vector.broadcast %548 : f32 to vector<16x128xf32>
    %550 = arith.mulf %549, %544 : vector<16x128xf32>
    %551 = arith.addf %526, %547 : vector<16x128xf32>
    %552 = arith.addf %527, %550 : vector<16x128xf32>
    %c21 = arith.constant 21 : index
    %c0_248 = arith.constant 0 : index
    %553 = memref.load %arg6[%c21, %c0_248] : memref<32x3xf32, #tpu.memory_space<smem>>
    %554 = vector.broadcast %553 : f32 to vector<16x128xf32>
    %555 = arith.mulf %554, %18 : vector<16x128xf32>
    %c21_249 = arith.constant 21 : index
    %c1_250 = arith.constant 1 : index
    %556 = memref.load %arg6[%c21_249, %c1_250] : memref<32x3xf32, #tpu.memory_space<smem>>
    %557 = vector.broadcast %556 : f32 to vector<16x128xf32>
    %558 = arith.mulf %557, %21 : vector<16x128xf32>
    %559 = arith.addf %555, %558 : vector<16x128xf32>
    %c21_251 = arith.constant 21 : index
    %c2_252 = arith.constant 2 : index
    %560 = memref.load %arg6[%c21_251, %c2_252] : memref<32x3xf32, #tpu.memory_space<smem>>
    %561 = vector.broadcast %560 : f32 to vector<16x128xf32>
    %562 = arith.mulf %561, %29 : vector<16x128xf32>
    %563 = arith.addf %559, %562 : vector<16x128xf32>
    %564 = arith.index_cast %arg0 : i32 to index
    %c21_253 = arith.constant 21 : index
    %565 = memref.load %arg5[%564, %c21_253] : memref<2x32xf32, #tpu.memory_space<smem>>
    %566 = vector.broadcast %565 : f32 to vector<16x128xf32>
    %567 = arith.addf %563, %566 : vector<16x128xf32>
    %cst_254 = arith.constant 0.000000e+00 : f32
    %568 = vector.broadcast %cst_254 : f32 to vector<16x128xf32>
    %569 = arith.maximumf %567, %568 : vector<16x128xf32>
    %c0_255 = arith.constant 0 : index
    %c21_256 = arith.constant 21 : index
    %570 = memref.load %arg7[%c0_255, %c21_256] : memref<2x32xf32, #tpu.memory_space<smem>>
    %571 = vector.broadcast %570 : f32 to vector<16x128xf32>
    %572 = arith.mulf %571, %569 : vector<16x128xf32>
    %c1_257 = arith.constant 1 : index
    %c21_258 = arith.constant 21 : index
    %573 = memref.load %arg7[%c1_257, %c21_258] : memref<2x32xf32, #tpu.memory_space<smem>>
    %574 = vector.broadcast %573 : f32 to vector<16x128xf32>
    %575 = arith.mulf %574, %569 : vector<16x128xf32>
    %576 = arith.addf %551, %572 : vector<16x128xf32>
    %577 = arith.addf %552, %575 : vector<16x128xf32>
    %c22 = arith.constant 22 : index
    %c0_259 = arith.constant 0 : index
    %578 = memref.load %arg6[%c22, %c0_259] : memref<32x3xf32, #tpu.memory_space<smem>>
    %579 = vector.broadcast %578 : f32 to vector<16x128xf32>
    %580 = arith.mulf %579, %18 : vector<16x128xf32>
    %c22_260 = arith.constant 22 : index
    %c1_261 = arith.constant 1 : index
    %581 = memref.load %arg6[%c22_260, %c1_261] : memref<32x3xf32, #tpu.memory_space<smem>>
    %582 = vector.broadcast %581 : f32 to vector<16x128xf32>
    %583 = arith.mulf %582, %21 : vector<16x128xf32>
    %584 = arith.addf %580, %583 : vector<16x128xf32>
    %c22_262 = arith.constant 22 : index
    %c2_263 = arith.constant 2 : index
    %585 = memref.load %arg6[%c22_262, %c2_263] : memref<32x3xf32, #tpu.memory_space<smem>>
    %586 = vector.broadcast %585 : f32 to vector<16x128xf32>
    %587 = arith.mulf %586, %29 : vector<16x128xf32>
    %588 = arith.addf %584, %587 : vector<16x128xf32>
    %589 = arith.index_cast %arg0 : i32 to index
    %c22_264 = arith.constant 22 : index
    %590 = memref.load %arg5[%589, %c22_264] : memref<2x32xf32, #tpu.memory_space<smem>>
    %591 = vector.broadcast %590 : f32 to vector<16x128xf32>
    %592 = arith.addf %588, %591 : vector<16x128xf32>
    %cst_265 = arith.constant 0.000000e+00 : f32
    %593 = vector.broadcast %cst_265 : f32 to vector<16x128xf32>
    %594 = arith.maximumf %592, %593 : vector<16x128xf32>
    %c0_266 = arith.constant 0 : index
    %c22_267 = arith.constant 22 : index
    %595 = memref.load %arg7[%c0_266, %c22_267] : memref<2x32xf32, #tpu.memory_space<smem>>
    %596 = vector.broadcast %595 : f32 to vector<16x128xf32>
    %597 = arith.mulf %596, %594 : vector<16x128xf32>
    %c1_268 = arith.constant 1 : index
    %c22_269 = arith.constant 22 : index
    %598 = memref.load %arg7[%c1_268, %c22_269] : memref<2x32xf32, #tpu.memory_space<smem>>
    %599 = vector.broadcast %598 : f32 to vector<16x128xf32>
    %600 = arith.mulf %599, %594 : vector<16x128xf32>
    %601 = arith.addf %576, %597 : vector<16x128xf32>
    %602 = arith.addf %577, %600 : vector<16x128xf32>
    %c23 = arith.constant 23 : index
    %c0_270 = arith.constant 0 : index
    %603 = memref.load %arg6[%c23, %c0_270] : memref<32x3xf32, #tpu.memory_space<smem>>
    %604 = vector.broadcast %603 : f32 to vector<16x128xf32>
    %605 = arith.mulf %604, %18 : vector<16x128xf32>
    %c23_271 = arith.constant 23 : index
    %c1_272 = arith.constant 1 : index
    %606 = memref.load %arg6[%c23_271, %c1_272] : memref<32x3xf32, #tpu.memory_space<smem>>
    %607 = vector.broadcast %606 : f32 to vector<16x128xf32>
    %608 = arith.mulf %607, %21 : vector<16x128xf32>
    %609 = arith.addf %605, %608 : vector<16x128xf32>
    %c23_273 = arith.constant 23 : index
    %c2_274 = arith.constant 2 : index
    %610 = memref.load %arg6[%c23_273, %c2_274] : memref<32x3xf32, #tpu.memory_space<smem>>
    %611 = vector.broadcast %610 : f32 to vector<16x128xf32>
    %612 = arith.mulf %611, %29 : vector<16x128xf32>
    %613 = arith.addf %609, %612 : vector<16x128xf32>
    %614 = arith.index_cast %arg0 : i32 to index
    %c23_275 = arith.constant 23 : index
    %615 = memref.load %arg5[%614, %c23_275] : memref<2x32xf32, #tpu.memory_space<smem>>
    %616 = vector.broadcast %615 : f32 to vector<16x128xf32>
    %617 = arith.addf %613, %616 : vector<16x128xf32>
    %cst_276 = arith.constant 0.000000e+00 : f32
    %618 = vector.broadcast %cst_276 : f32 to vector<16x128xf32>
    %619 = arith.maximumf %617, %618 : vector<16x128xf32>
    %c0_277 = arith.constant 0 : index
    %c23_278 = arith.constant 23 : index
    %620 = memref.load %arg7[%c0_277, %c23_278] : memref<2x32xf32, #tpu.memory_space<smem>>
    %621 = vector.broadcast %620 : f32 to vector<16x128xf32>
    %622 = arith.mulf %621, %619 : vector<16x128xf32>
    %c1_279 = arith.constant 1 : index
    %c23_280 = arith.constant 23 : index
    %623 = memref.load %arg7[%c1_279, %c23_280] : memref<2x32xf32, #tpu.memory_space<smem>>
    %624 = vector.broadcast %623 : f32 to vector<16x128xf32>
    %625 = arith.mulf %624, %619 : vector<16x128xf32>
    %626 = arith.addf %601, %622 : vector<16x128xf32>
    %627 = arith.addf %602, %625 : vector<16x128xf32>
    %c24 = arith.constant 24 : index
    %c0_281 = arith.constant 0 : index
    %628 = memref.load %arg6[%c24, %c0_281] : memref<32x3xf32, #tpu.memory_space<smem>>
    %629 = vector.broadcast %628 : f32 to vector<16x128xf32>
    %630 = arith.mulf %629, %18 : vector<16x128xf32>
    %c24_282 = arith.constant 24 : index
    %c1_283 = arith.constant 1 : index
    %631 = memref.load %arg6[%c24_282, %c1_283] : memref<32x3xf32, #tpu.memory_space<smem>>
    %632 = vector.broadcast %631 : f32 to vector<16x128xf32>
    %633 = arith.mulf %632, %21 : vector<16x128xf32>
    %634 = arith.addf %630, %633 : vector<16x128xf32>
    %c24_284 = arith.constant 24 : index
    %c2_285 = arith.constant 2 : index
    %635 = memref.load %arg6[%c24_284, %c2_285] : memref<32x3xf32, #tpu.memory_space<smem>>
    %636 = vector.broadcast %635 : f32 to vector<16x128xf32>
    %637 = arith.mulf %636, %29 : vector<16x128xf32>
    %638 = arith.addf %634, %637 : vector<16x128xf32>
    %639 = arith.index_cast %arg0 : i32 to index
    %c24_286 = arith.constant 24 : index
    %640 = memref.load %arg5[%639, %c24_286] : memref<2x32xf32, #tpu.memory_space<smem>>
    %641 = vector.broadcast %640 : f32 to vector<16x128xf32>
    %642 = arith.addf %638, %641 : vector<16x128xf32>
    %cst_287 = arith.constant 0.000000e+00 : f32
    %643 = vector.broadcast %cst_287 : f32 to vector<16x128xf32>
    %644 = arith.maximumf %642, %643 : vector<16x128xf32>
    %c0_288 = arith.constant 0 : index
    %c24_289 = arith.constant 24 : index
    %645 = memref.load %arg7[%c0_288, %c24_289] : memref<2x32xf32, #tpu.memory_space<smem>>
    %646 = vector.broadcast %645 : f32 to vector<16x128xf32>
    %647 = arith.mulf %646, %644 : vector<16x128xf32>
    %c1_290 = arith.constant 1 : index
    %c24_291 = arith.constant 24 : index
    %648 = memref.load %arg7[%c1_290, %c24_291] : memref<2x32xf32, #tpu.memory_space<smem>>
    %649 = vector.broadcast %648 : f32 to vector<16x128xf32>
    %650 = arith.mulf %649, %644 : vector<16x128xf32>
    %651 = arith.addf %626, %647 : vector<16x128xf32>
    %652 = arith.addf %627, %650 : vector<16x128xf32>
    %c25 = arith.constant 25 : index
    %c0_292 = arith.constant 0 : index
    %653 = memref.load %arg6[%c25, %c0_292] : memref<32x3xf32, #tpu.memory_space<smem>>
    %654 = vector.broadcast %653 : f32 to vector<16x128xf32>
    %655 = arith.mulf %654, %18 : vector<16x128xf32>
    %c25_293 = arith.constant 25 : index
    %c1_294 = arith.constant 1 : index
    %656 = memref.load %arg6[%c25_293, %c1_294] : memref<32x3xf32, #tpu.memory_space<smem>>
    %657 = vector.broadcast %656 : f32 to vector<16x128xf32>
    %658 = arith.mulf %657, %21 : vector<16x128xf32>
    %659 = arith.addf %655, %658 : vector<16x128xf32>
    %c25_295 = arith.constant 25 : index
    %c2_296 = arith.constant 2 : index
    %660 = memref.load %arg6[%c25_295, %c2_296] : memref<32x3xf32, #tpu.memory_space<smem>>
    %661 = vector.broadcast %660 : f32 to vector<16x128xf32>
    %662 = arith.mulf %661, %29 : vector<16x128xf32>
    %663 = arith.addf %659, %662 : vector<16x128xf32>
    %664 = arith.index_cast %arg0 : i32 to index
    %c25_297 = arith.constant 25 : index
    %665 = memref.load %arg5[%664, %c25_297] : memref<2x32xf32, #tpu.memory_space<smem>>
    %666 = vector.broadcast %665 : f32 to vector<16x128xf32>
    %667 = arith.addf %663, %666 : vector<16x128xf32>
    %cst_298 = arith.constant 0.000000e+00 : f32
    %668 = vector.broadcast %cst_298 : f32 to vector<16x128xf32>
    %669 = arith.maximumf %667, %668 : vector<16x128xf32>
    %c0_299 = arith.constant 0 : index
    %c25_300 = arith.constant 25 : index
    %670 = memref.load %arg7[%c0_299, %c25_300] : memref<2x32xf32, #tpu.memory_space<smem>>
    %671 = vector.broadcast %670 : f32 to vector<16x128xf32>
    %672 = arith.mulf %671, %669 : vector<16x128xf32>
    %c1_301 = arith.constant 1 : index
    %c25_302 = arith.constant 25 : index
    %673 = memref.load %arg7[%c1_301, %c25_302] : memref<2x32xf32, #tpu.memory_space<smem>>
    %674 = vector.broadcast %673 : f32 to vector<16x128xf32>
    %675 = arith.mulf %674, %669 : vector<16x128xf32>
    %676 = arith.addf %651, %672 : vector<16x128xf32>
    %677 = arith.addf %652, %675 : vector<16x128xf32>
    %c26 = arith.constant 26 : index
    %c0_303 = arith.constant 0 : index
    %678 = memref.load %arg6[%c26, %c0_303] : memref<32x3xf32, #tpu.memory_space<smem>>
    %679 = vector.broadcast %678 : f32 to vector<16x128xf32>
    %680 = arith.mulf %679, %18 : vector<16x128xf32>
    %c26_304 = arith.constant 26 : index
    %c1_305 = arith.constant 1 : index
    %681 = memref.load %arg6[%c26_304, %c1_305] : memref<32x3xf32, #tpu.memory_space<smem>>
    %682 = vector.broadcast %681 : f32 to vector<16x128xf32>
    %683 = arith.mulf %682, %21 : vector<16x128xf32>
    %684 = arith.addf %680, %683 : vector<16x128xf32>
    %c26_306 = arith.constant 26 : index
    %c2_307 = arith.constant 2 : index
    %685 = memref.load %arg6[%c26_306, %c2_307] : memref<32x3xf32, #tpu.memory_space<smem>>
    %686 = vector.broadcast %685 : f32 to vector<16x128xf32>
    %687 = arith.mulf %686, %29 : vector<16x128xf32>
    %688 = arith.addf %684, %687 : vector<16x128xf32>
    %689 = arith.index_cast %arg0 : i32 to index
    %c26_308 = arith.constant 26 : index
    %690 = memref.load %arg5[%689, %c26_308] : memref<2x32xf32, #tpu.memory_space<smem>>
    %691 = vector.broadcast %690 : f32 to vector<16x128xf32>
    %692 = arith.addf %688, %691 : vector<16x128xf32>
    %cst_309 = arith.constant 0.000000e+00 : f32
    %693 = vector.broadcast %cst_309 : f32 to vector<16x128xf32>
    %694 = arith.maximumf %692, %693 : vector<16x128xf32>
    %c0_310 = arith.constant 0 : index
    %c26_311 = arith.constant 26 : index
    %695 = memref.load %arg7[%c0_310, %c26_311] : memref<2x32xf32, #tpu.memory_space<smem>>
    %696 = vector.broadcast %695 : f32 to vector<16x128xf32>
    %697 = arith.mulf %696, %694 : vector<16x128xf32>
    %c1_312 = arith.constant 1 : index
    %c26_313 = arith.constant 26 : index
    %698 = memref.load %arg7[%c1_312, %c26_313] : memref<2x32xf32, #tpu.memory_space<smem>>
    %699 = vector.broadcast %698 : f32 to vector<16x128xf32>
    %700 = arith.mulf %699, %694 : vector<16x128xf32>
    %701 = arith.addf %676, %697 : vector<16x128xf32>
    %702 = arith.addf %677, %700 : vector<16x128xf32>
    %c27 = arith.constant 27 : index
    %c0_314 = arith.constant 0 : index
    %703 = memref.load %arg6[%c27, %c0_314] : memref<32x3xf32, #tpu.memory_space<smem>>
    %704 = vector.broadcast %703 : f32 to vector<16x128xf32>
    %705 = arith.mulf %704, %18 : vector<16x128xf32>
    %c27_315 = arith.constant 27 : index
    %c1_316 = arith.constant 1 : index
    %706 = memref.load %arg6[%c27_315, %c1_316] : memref<32x3xf32, #tpu.memory_space<smem>>
    %707 = vector.broadcast %706 : f32 to vector<16x128xf32>
    %708 = arith.mulf %707, %21 : vector<16x128xf32>
    %709 = arith.addf %705, %708 : vector<16x128xf32>
    %c27_317 = arith.constant 27 : index
    %c2_318 = arith.constant 2 : index
    %710 = memref.load %arg6[%c27_317, %c2_318] : memref<32x3xf32, #tpu.memory_space<smem>>
    %711 = vector.broadcast %710 : f32 to vector<16x128xf32>
    %712 = arith.mulf %711, %29 : vector<16x128xf32>
    %713 = arith.addf %709, %712 : vector<16x128xf32>
    %714 = arith.index_cast %arg0 : i32 to index
    %c27_319 = arith.constant 27 : index
    %715 = memref.load %arg5[%714, %c27_319] : memref<2x32xf32, #tpu.memory_space<smem>>
    %716 = vector.broadcast %715 : f32 to vector<16x128xf32>
    %717 = arith.addf %713, %716 : vector<16x128xf32>
    %cst_320 = arith.constant 0.000000e+00 : f32
    %718 = vector.broadcast %cst_320 : f32 to vector<16x128xf32>
    %719 = arith.maximumf %717, %718 : vector<16x128xf32>
    %c0_321 = arith.constant 0 : index
    %c27_322 = arith.constant 27 : index
    %720 = memref.load %arg7[%c0_321, %c27_322] : memref<2x32xf32, #tpu.memory_space<smem>>
    %721 = vector.broadcast %720 : f32 to vector<16x128xf32>
    %722 = arith.mulf %721, %719 : vector<16x128xf32>
    %c1_323 = arith.constant 1 : index
    %c27_324 = arith.constant 27 : index
    %723 = memref.load %arg7[%c1_323, %c27_324] : memref<2x32xf32, #tpu.memory_space<smem>>
    %724 = vector.broadcast %723 : f32 to vector<16x128xf32>
    %725 = arith.mulf %724, %719 : vector<16x128xf32>
    %726 = arith.addf %701, %722 : vector<16x128xf32>
    %727 = arith.addf %702, %725 : vector<16x128xf32>
    %c28 = arith.constant 28 : index
    %c0_325 = arith.constant 0 : index
    %728 = memref.load %arg6[%c28, %c0_325] : memref<32x3xf32, #tpu.memory_space<smem>>
    %729 = vector.broadcast %728 : f32 to vector<16x128xf32>
    %730 = arith.mulf %729, %18 : vector<16x128xf32>
    %c28_326 = arith.constant 28 : index
    %c1_327 = arith.constant 1 : index
    %731 = memref.load %arg6[%c28_326, %c1_327] : memref<32x3xf32, #tpu.memory_space<smem>>
    %732 = vector.broadcast %731 : f32 to vector<16x128xf32>
    %733 = arith.mulf %732, %21 : vector<16x128xf32>
    %734 = arith.addf %730, %733 : vector<16x128xf32>
    %c28_328 = arith.constant 28 : index
    %c2_329 = arith.constant 2 : index
    %735 = memref.load %arg6[%c28_328, %c2_329] : memref<32x3xf32, #tpu.memory_space<smem>>
    %736 = vector.broadcast %735 : f32 to vector<16x128xf32>
    %737 = arith.mulf %736, %29 : vector<16x128xf32>
    %738 = arith.addf %734, %737 : vector<16x128xf32>
    %739 = arith.index_cast %arg0 : i32 to index
    %c28_330 = arith.constant 28 : index
    %740 = memref.load %arg5[%739, %c28_330] : memref<2x32xf32, #tpu.memory_space<smem>>
    %741 = vector.broadcast %740 : f32 to vector<16x128xf32>
    %742 = arith.addf %738, %741 : vector<16x128xf32>
    %cst_331 = arith.constant 0.000000e+00 : f32
    %743 = vector.broadcast %cst_331 : f32 to vector<16x128xf32>
    %744 = arith.maximumf %742, %743 : vector<16x128xf32>
    %c0_332 = arith.constant 0 : index
    %c28_333 = arith.constant 28 : index
    %745 = memref.load %arg7[%c0_332, %c28_333] : memref<2x32xf32, #tpu.memory_space<smem>>
    %746 = vector.broadcast %745 : f32 to vector<16x128xf32>
    %747 = arith.mulf %746, %744 : vector<16x128xf32>
    %c1_334 = arith.constant 1 : index
    %c28_335 = arith.constant 28 : index
    %748 = memref.load %arg7[%c1_334, %c28_335] : memref<2x32xf32, #tpu.memory_space<smem>>
    %749 = vector.broadcast %748 : f32 to vector<16x128xf32>
    %750 = arith.mulf %749, %744 : vector<16x128xf32>
    %751 = arith.addf %726, %747 : vector<16x128xf32>
    %752 = arith.addf %727, %750 : vector<16x128xf32>
    %c29 = arith.constant 29 : index
    %c0_336 = arith.constant 0 : index
    %753 = memref.load %arg6[%c29, %c0_336] : memref<32x3xf32, #tpu.memory_space<smem>>
    %754 = vector.broadcast %753 : f32 to vector<16x128xf32>
    %755 = arith.mulf %754, %18 : vector<16x128xf32>
    %c29_337 = arith.constant 29 : index
    %c1_338 = arith.constant 1 : index
    %756 = memref.load %arg6[%c29_337, %c1_338] : memref<32x3xf32, #tpu.memory_space<smem>>
    %757 = vector.broadcast %756 : f32 to vector<16x128xf32>
    %758 = arith.mulf %757, %21 : vector<16x128xf32>
    %759 = arith.addf %755, %758 : vector<16x128xf32>
    %c29_339 = arith.constant 29 : index
    %c2_340 = arith.constant 2 : index
    %760 = memref.load %arg6[%c29_339, %c2_340] : memref<32x3xf32, #tpu.memory_space<smem>>
    %761 = vector.broadcast %760 : f32 to vector<16x128xf32>
    %762 = arith.mulf %761, %29 : vector<16x128xf32>
    %763 = arith.addf %759, %762 : vector<16x128xf32>
    %764 = arith.index_cast %arg0 : i32 to index
    %c29_341 = arith.constant 29 : index
    %765 = memref.load %arg5[%764, %c29_341] : memref<2x32xf32, #tpu.memory_space<smem>>
    %766 = vector.broadcast %765 : f32 to vector<16x128xf32>
    %767 = arith.addf %763, %766 : vector<16x128xf32>
    %cst_342 = arith.constant 0.000000e+00 : f32
    %768 = vector.broadcast %cst_342 : f32 to vector<16x128xf32>
    %769 = arith.maximumf %767, %768 : vector<16x128xf32>
    %c0_343 = arith.constant 0 : index
    %c29_344 = arith.constant 29 : index
    %770 = memref.load %arg7[%c0_343, %c29_344] : memref<2x32xf32, #tpu.memory_space<smem>>
    %771 = vector.broadcast %770 : f32 to vector<16x128xf32>
    %772 = arith.mulf %771, %769 : vector<16x128xf32>
    %c1_345 = arith.constant 1 : index
    %c29_346 = arith.constant 29 : index
    %773 = memref.load %arg7[%c1_345, %c29_346] : memref<2x32xf32, #tpu.memory_space<smem>>
    %774 = vector.broadcast %773 : f32 to vector<16x128xf32>
    %775 = arith.mulf %774, %769 : vector<16x128xf32>
    %776 = arith.addf %751, %772 : vector<16x128xf32>
    %777 = arith.addf %752, %775 : vector<16x128xf32>
    %c30 = arith.constant 30 : index
    %c0_347 = arith.constant 0 : index
    %778 = memref.load %arg6[%c30, %c0_347] : memref<32x3xf32, #tpu.memory_space<smem>>
    %779 = vector.broadcast %778 : f32 to vector<16x128xf32>
    %780 = arith.mulf %779, %18 : vector<16x128xf32>
    %c30_348 = arith.constant 30 : index
    %c1_349 = arith.constant 1 : index
    %781 = memref.load %arg6[%c30_348, %c1_349] : memref<32x3xf32, #tpu.memory_space<smem>>
    %782 = vector.broadcast %781 : f32 to vector<16x128xf32>
    %783 = arith.mulf %782, %21 : vector<16x128xf32>
    %784 = arith.addf %780, %783 : vector<16x128xf32>
    %c30_350 = arith.constant 30 : index
    %c2_351 = arith.constant 2 : index
    %785 = memref.load %arg6[%c30_350, %c2_351] : memref<32x3xf32, #tpu.memory_space<smem>>
    %786 = vector.broadcast %785 : f32 to vector<16x128xf32>
    %787 = arith.mulf %786, %29 : vector<16x128xf32>
    %788 = arith.addf %784, %787 : vector<16x128xf32>
    %789 = arith.index_cast %arg0 : i32 to index
    %c30_352 = arith.constant 30 : index
    %790 = memref.load %arg5[%789, %c30_352] : memref<2x32xf32, #tpu.memory_space<smem>>
    %791 = vector.broadcast %790 : f32 to vector<16x128xf32>
    %792 = arith.addf %788, %791 : vector<16x128xf32>
    %cst_353 = arith.constant 0.000000e+00 : f32
    %793 = vector.broadcast %cst_353 : f32 to vector<16x128xf32>
    %794 = arith.maximumf %792, %793 : vector<16x128xf32>
    %c0_354 = arith.constant 0 : index
    %c30_355 = arith.constant 30 : index
    %795 = memref.load %arg7[%c0_354, %c30_355] : memref<2x32xf32, #tpu.memory_space<smem>>
    %796 = vector.broadcast %795 : f32 to vector<16x128xf32>
    %797 = arith.mulf %796, %794 : vector<16x128xf32>
    %c1_356 = arith.constant 1 : index
    %c30_357 = arith.constant 30 : index
    %798 = memref.load %arg7[%c1_356, %c30_357] : memref<2x32xf32, #tpu.memory_space<smem>>
    %799 = vector.broadcast %798 : f32 to vector<16x128xf32>
    %800 = arith.mulf %799, %794 : vector<16x128xf32>
    %801 = arith.addf %776, %797 : vector<16x128xf32>
    %802 = arith.addf %777, %800 : vector<16x128xf32>
    %c31 = arith.constant 31 : index
    %c0_358 = arith.constant 0 : index
    %803 = memref.load %arg6[%c31, %c0_358] : memref<32x3xf32, #tpu.memory_space<smem>>
    %804 = vector.broadcast %803 : f32 to vector<16x128xf32>
    %805 = arith.mulf %804, %18 : vector<16x128xf32>
    %c31_359 = arith.constant 31 : index
    %c1_360 = arith.constant 1 : index
    %806 = memref.load %arg6[%c31_359, %c1_360] : memref<32x3xf32, #tpu.memory_space<smem>>
    %807 = vector.broadcast %806 : f32 to vector<16x128xf32>
    %808 = arith.mulf %807, %21 : vector<16x128xf32>
    %809 = arith.addf %805, %808 : vector<16x128xf32>
    %c31_361 = arith.constant 31 : index
    %c2_362 = arith.constant 2 : index
    %810 = memref.load %arg6[%c31_361, %c2_362] : memref<32x3xf32, #tpu.memory_space<smem>>
    %811 = vector.broadcast %810 : f32 to vector<16x128xf32>
    %812 = arith.mulf %811, %29 : vector<16x128xf32>
    %813 = arith.addf %809, %812 : vector<16x128xf32>
    %814 = arith.index_cast %arg0 : i32 to index
    %c31_363 = arith.constant 31 : index
    %815 = memref.load %arg5[%814, %c31_363] : memref<2x32xf32, #tpu.memory_space<smem>>
    %816 = vector.broadcast %815 : f32 to vector<16x128xf32>
    %817 = arith.addf %813, %816 : vector<16x128xf32>
    %cst_364 = arith.constant 0.000000e+00 : f32
    %818 = vector.broadcast %cst_364 : f32 to vector<16x128xf32>
    %819 = arith.maximumf %817, %818 : vector<16x128xf32>
    %c0_365 = arith.constant 0 : index
    %c31_366 = arith.constant 31 : index
    %820 = memref.load %arg7[%c0_365, %c31_366] : memref<2x32xf32, #tpu.memory_space<smem>>
    %821 = vector.broadcast %820 : f32 to vector<16x128xf32>
    %822 = arith.mulf %821, %819 : vector<16x128xf32>
    %c1_367 = arith.constant 1 : index
    %c31_368 = arith.constant 31 : index
    %823 = memref.load %arg7[%c1_367, %c31_368] : memref<2x32xf32, #tpu.memory_space<smem>>
    %824 = vector.broadcast %823 : f32 to vector<16x128xf32>
    %825 = arith.mulf %824, %819 : vector<16x128xf32>
    %826 = arith.addf %801, %822 : vector<16x128xf32>
    %827 = arith.addf %802, %825 : vector<16x128xf32>
    %828 = vector.broadcast %7 : f32 to vector<16x128xf32>
    %829 = arith.addf %826, %828 : vector<16x128xf32>
    %830 = vector.broadcast %8 : f32 to vector<16x128xf32>
    %831 = arith.addf %827, %830 : vector<16x128xf32>
    %832 = arith.negf %831 : vector<16x128xf32>
    %833 = math.exp %832 : vector<16x128xf32>
    %cst_369 = arith.constant 1.000000e+00 : f32
    %834 = vector.broadcast %cst_369 : f32 to vector<16x128xf32>
    %835 = arith.addf %834, %833 : vector<16x128xf32>
    %836 = arith.divf %834, %835 : vector<16x128xf32>
    %837 = arith.subf %24, %829 : vector<16x128xf32>
    %838 = math.absf %837 : vector<16x128xf32>
    %839 = arith.subf %15, %18 : vector<16x128xf32>
    %cst_370 = arith.constant 5.000000e-01 : f32
    %840 = vector.broadcast %cst_370 : f32 to vector<16x128xf32>
    %841 = arith.mulf %839, %840 : vector<16x128xf32>
    %cst_371 = arith.constant 5.000000e-02 : f32
    %842 = vector.broadcast %cst_371 : f32 to vector<16x128xf32>
    %843 = arith.cmpf oge, %841, %842 : vector<16x128xf32>
    %844 = arith.extui %843 : vector<16x128xi1> to vector<16x128xi32>
    %845 = arith.sitofp %844 : vector<16x128xi32> to vector<16x128xf32>
    %846 = arith.subf %836, %845 : vector<16x128xf32>
    %847 = math.absf %846 : vector<16x128xf32>
    %848 = tpu.iota {dimensions = array<i32: 0>} : vector<16x128xi32>
    %849 = tpu.iota {dimensions = array<i32: 1>} : vector<16x128xi32>
    %850 = arith.addi %9, %12 : i32
    %851 = vector.broadcast %850 : i32 to vector<16x128xi32>
    %852 = arith.addi %851, %848 : vector<16x128xi32>
    %c128_i32 = arith.constant 128 : i32
    %853 = vector.broadcast %c128_i32 : i32 to vector<16x128xi32>
    %854 = arith.muli %852, %853 : vector<16x128xi32>
    %855 = arith.addi %854, %849 : vector<16x128xi32>
    %c256_i32 = arith.constant 256 : i32
    %856 = vector.broadcast %c256_i32 : i32 to vector<16x128xi32>
    %857 = arith.cmpi slt, %855, %856 : vector<16x128xi32>
    %cst_372 = arith.constant 0.000000e+00 : f32
    %858 = vector.broadcast %cst_372 : f32 to vector<16x128xf32>
    %859 = arith.select %857, %838, %858 : vector<16x128xi1>, vector<16x128xf32>
    %cst_373 = arith.constant 0.000000e+00 : f32
    %860 = vector.broadcast %cst_373 : f32 to vector<16x128xf32>
    %861 = arith.select %857, %847, %860 : vector<16x128xi1>, vector<16x128xf32>
    %862 = vector.shape_cast %859 : vector<16x128xf32> to vector<2x8x128xf32>
    %cst_374 = arith.constant dense<0.000000e+00> : vector<8x128xf32>
    %863 = vector.multi_reduction <add>, %862, %cst_374 [0] : vector<2x8x128xf32> to vector<8x128xf32>
    %864 = vector.shape_cast %861 : vector<16x128xf32> to vector<2x8x128xf32>
    %cst_375 = arith.constant dense<0.000000e+00> : vector<8x128xf32>
    %865 = vector.multi_reduction <add>, %864, %cst_375 [0] : vector<2x8x128xf32> to vector<8x128xf32>
    %866 = arith.addf %10, %863 : vector<8x128xf32>
    %867 = arith.addf %10, %865 : vector<8x128xf32>
    %c1_i32 = arith.constant 1 : i32
    %c0_376 = arith.constant 0 : index
    %c0_377 = arith.constant 0 : index
    %c0_378 = arith.constant 0 : index
    %c0_379 = arith.constant 0 : index
    %868 = vector.load %arg9[%c0_376, %c0_377, %c0_378, %c0_379] : memref<1x2x8x128xf32, #tpu.memory_space<vmem>>, vector<1x1x8x128xf32>
    %869 = vector.shape_cast %868 : vector<1x1x8x128xf32> to vector<8x128xf32>
    %870 = arith.addf %869, %866 : vector<8x128xf32>
    %c0_380 = arith.constant 0 : index
    %c0_381 = arith.constant 0 : index
    %c0_382 = arith.constant 0 : index
    %c0_383 = arith.constant 0 : index
    %871 = vector.load %arg9[%c0_380, %c0_381, %c0_382, %c0_383] : memref<1x2x8x128xf32, #tpu.memory_space<vmem>>, vector<1x1x8x128xf32>
    %872 = vector.shape_cast %871 : vector<1x1x8x128xf32> to vector<8x128xf32>
    %873 = vector.shape_cast %870 : vector<8x128xf32> to vector<1x1x8x128xf32>
    tpu.vector_store %arg9[%c0_380, %c0_381, %c0_382, %c0_383], %873 {strides = array<i32>} : memref<1x2x8x128xf32, #tpu.memory_space<vmem>>, vector<1x1x8x128xf32>,
    %c0_384 = arith.constant 0 : index
    %c1_385 = arith.constant 1 : index
    %c0_386 = arith.constant 0 : index
    %c0_387 = arith.constant 0 : index
    %874 = vector.load %arg9[%c0_384, %c1_385, %c0_386, %c0_387] : memref<1x2x8x128xf32, #tpu.memory_space<vmem>>, vector<1x1x8x128xf32>
    %875 = vector.shape_cast %874 : vector<1x1x8x128xf32> to vector<8x128xf32>
    %876 = arith.addf %875, %867 : vector<8x128xf32>
    %c0_388 = arith.constant 0 : index
    %c1_389 = arith.constant 1 : index
    %c0_390 = arith.constant 0 : index
    %c0_391 = arith.constant 0 : index
    %877 = vector.load %arg9[%c0_388, %c1_389, %c0_390, %c0_391] : memref<1x2x8x128xf32, #tpu.memory_space<vmem>>, vector<1x1x8x128xf32>
    %878 = vector.shape_cast %877 : vector<1x1x8x128xf32> to vector<8x128xf32>
    %879 = vector.shape_cast %876 : vector<8x128xf32> to vector<1x1x8x128xf32>
    tpu.vector_store %arg9[%c0_388, %c1_389, %c0_390, %c0_391], %879 {strides = array<i32>} : memref<1x2x8x128xf32, #tpu.memory_space<vmem>>, vector<1x1x8x128xf32>,
    return
  }
  func.func @transform_0(%arg0: i32, %arg1: i32) -> (i32, i32, i32, i32) {
    %c0_i32 = arith.constant 0 : i32
    %c0_i32_0 = arith.constant 0 : i32
    %c0_i32_1 = arith.constant 0 : i32
    return %arg0, %c0_i32, %arg1, %c0_i32_0 : i32, i32, i32, i32
  }
  func.func @transform_1(%arg0: i32, %arg1: i32) -> i32 {
    %c0_i32 = arith.constant 0 : i32
    %c0_i32_0 = arith.constant 0 : i32
    return %c0_i32 : i32
  }
  func.func @transform_2(%arg0: i32, %arg1: i32) -> i32 {
    %c0_i32 = arith.constant 0 : i32
    %c0_i32_0 = arith.constant 0 : i32
    return %c0_i32 : i32
  }
  func.func @transform_3(%arg0: i32, %arg1: i32) -> (i32, i32) {
    %c0_i32 = arith.constant 0 : i32
    %c0_i32_0 = arith.constant 0 : i32
    %c0_i32_1 = arith.constant 0 : i32
    return %c0_i32, %c0_i32_0 : i32, i32
  }
  func.func @transform_4(%arg0: i32, %arg1: i32) -> (i32, i32) {
    %c0_i32 = arith.constant 0 : i32
    %c0_i32_0 = arith.constant 0 : i32
    %c0_i32_1 = arith.constant 0 : i32
    return %c0_i32, %c0_i32_0 : i32, i32
  }
  func.func @transform_5(%arg0: i32, %arg1: i32) -> (i32, i32) {
    %c0_i32 = arith.constant 0 : i32
    %c0_i32_0 = arith.constant 0 : i32
    %c0_i32_1 = arith.constant 0 : i32
    return %c0_i32, %c0_i32_0 : i32, i32
  }
  func.func @transform_6(%arg0: i32, %arg1: i32) -> i32 {
    %c0_i32 = arith.constant 0 : i32
    %c0_i32_0 = arith.constant 0 : i32
    return %c0_i32 : i32
  }
  func.func @transform_7(%arg0: i32, %arg1: i32) -> (i32, i32, i32, i32) {
    %c0_i32 = arith.constant 0 : i32
    %c0_i32_0 = arith.constant 0 : i32
    %c0_i32_1 = arith.constant 0 : i32
    %c0_i32_2 = arith.constant 0 : i32
    return %arg0, %c0_i32, %c0_i32_0, %c0_i32_1 : i32, i32, i32, i32
  }
}

</mosaic_0001>

<bundles_post_ra>
// kernel: tpu_custom_call.1
= control target key start
LH: loop header
LB: loop body
LE: loop exit
PB: predicated region body
PF: predicated region fallthrough
CT: control target
= control target key end

     0   :  { %s3486_s0 = inlined_call_operand.hbm [shape: f32[2,4,16,128], index: 0, kind: input, shape index: {}]   ;;  %s3487_s1 = inlined_call_operand.vmem [shape: f32[2], index: 1, kind: input, shape index: {}]   ;;  %s3488_s2 = inlined_call_operand.vmem [shape: f32[2], index: 2, kind: input, shape index: {}]   ;;  %s3489_s3 = inlined_call_operand.vmem [shape: f32[2,32], index: 3, kind: input, shape index: {}]   ;;  %s3490_s4 = inlined_call_operand.vmem [shape: f32[32,3], index: 4, kind: input, shape index: {}]   ;;  %s3491_s5 = inlined_call_operand.vmem [shape: f32[2,32], index: 5, kind: input, shape index: {}]   ;;  %s3492_s6 = inlined_call_operand.vmem [shape: f32[2], index: 6, kind: input, shape index: {}]   ;;  %s3493_s7 = inlined_call_operand.hbm [shape: f32[2,2,8,128], index: 7, kind: output, shape index: {}]  }
   0x1   :  { %3499 = sst [smem:[#allocation22_spill]] %s3487_s1 }
   0x2   :  { %3500 = sst [smem:[#allocation23_spill]] %s3488_s2 }
   0x3   :  { %3501 = sst [smem:[#allocation24_spill]] %s3489_s3 }
   0x4   :  { %3502 = sst [smem:[#allocation25_spill]] %s3490_s4 }
   0x5   :  { %12 = vsyncpa [#allocation3], 0 }
   0x6   :  { %14 = vsyncpa [#allocation3 + $0x1], 0 }
   0x7   :  { %15 = vsyncpa [#allocation5], 0 }
   0x8   :  { %16 = vsyncpa [#allocation8], 0 }
   0x9   :  { %17 = vsyncpa [#allocation11], 0 }
   0xa   :  { %18 = vsyncpa [#allocation14], 0 }
   0xb   :  { %19 = vsyncpa [#allocation4], 0 }
   0xc   :  { %21 = vsyncpa [#allocation4 + $0x1], 0  ;;  %s2387_s24 = smov 0   ;;  %s2389_s25 = smov 0  }
   0xd   :  { %s2391_s26 = smov 0   ;;  %s2393_s27 = smov 0  }
   0xe   :  { %s2395_s28 = smov 0   ;;  %s2397_s29 = smov 0  }
   0xf LB: > { %s3503_s2 = sld [smem:[#allocation23_spill]]  ;;  %s1769_s10 = sadd.s32 4294967295, %s2332_s29   ;;  %s2332_s29 = sphi %s2397_s29, %s27_s29   ;;  %s2328_s28 = sphi %s2395_s28, %s3526_s28   ;;  %s2324_s27 = sphi %s2393_s27, %s3525_s27   ;;  %s2320_s26 = sphi %s2391_s26, %s3524_s26   ;;  %s2316_s25 = sphi %s2389_s25, %s3523_s25   ;;  %s2312_s24 = sphi %s2387_s24, %s3522_s24  }
  0x10   : > { %p1771_p0 = scmp.ge.s32.totalorder %s2332_s29, 1  ;;  %p2424_p1 = scmp.eq.s32.totalorder %s1769_s10, 0 }
  0x11   : > { %p224_p2 = scmp.lt.s32.totalorder %s2332_s29, 3  ;;  %s3506_s4 = sld [smem:[#allocation25_spill]] }
  0x12   : > { %s3504_s11 = scalar_select %p2424_p1, 1, 0 }
  0x13   : > { %p2429_p3 = pnand %p1771_p0, %p224_p2  ;;  %s3508_s1 = sld [smem:[#allocation22_spill]] }
  0x15   : > { %s248_s9 = sshll.u32 %s3503_s2, 4  ;;  %p1998_p5 = pneg %p2429_p3  ;;  %s249_s9 = int_to_ptr.vmem [resolvable:$true] %s248_s9 }
  0x16   : > { %s3505_s12 = scalar_select %p2429_p3, 1, 0 }
  0x17   : > { %s269_s15 = sshll.u32 %s3506_s4, 4  ;;  %p2443_p6 = pnand %p1998_p5, %p2424_p1  ;;  %s2439_s15 = int_to_ptr.vmem [resolvable:$true] %s269_s15 }
  0x18   : > { %s2118_s20 = scalar_lea.vmem %s249_s9, 16  ;;  %p2126_p11 = scmp.lt.s32.totalorder %s249_s9, %s249_s9 }
  0x19   : > { %s237_s19 = sshll.u32 %s3508_s1, 4  ;;  %p2119_p7 = scmp.ne.s32.totalorder %s249_s9, %s2118_s20  ;;  %s2450_s19 = int_to_ptr.vmem [resolvable:$true] %s237_s19 }
  0x1a   : > { %p2454_p8 = pneg %p2443_p6  ;;  %p2127_p12 = scmp.lt.s32.totalorder %s2118_s20, %s2118_s20 }
  0x1c   : > { %p2121_p9 = pnand %p2454_p8, %p2119_p7  ;;  %p2128_p13 = por %p2127_p12, %p2126_p11 }
  0x1e   : > { %p2122_p10 = pneg %p2121_p9 }
  0x20   : > { %p2129_p0 = pnand %p2128_p13, %p2122_p10 }
  0x22   : > { %2132 = shalt.err (!%p2129_p0)
}
  0x23   : > { %s2334_s22 = smov [#allocation7]   ;;  %s2133_s23 = scalar_lea.vmem %s2439_s15, 512 }
  0x24   : > { %2004 = dma.vmem_to_smem (!%p2443_p6), %s249_s9, 16, %s2334_s22, [#allocation8]  }
  0x25   : > { %p2134_p2 = scmp.ne.s32.totalorder %s2439_s15, %s2133_s23  ;;  %p2141_p7 = scmp.lt.s32.totalorder %s2439_s15, %s2439_s15 }
  0x26   : > { %p2142_p9 = scmp.lt.s32.totalorder %s2133_s23, %s2133_s23 }
  0x27   : > { %p2136_p5 = pnand %p2134_p2, %p2454_p8 }
  0x28   : > { %p2143_p3 = por %p2142_p9, %p2141_p7 }
  0x29   : > { %p2137_p4 = pneg %p2136_p5 }
  0x2b   : > { %p2144_p11 = pnand %p2143_p3, %p2137_p4 }
  0x2d   : > { %2147 = shalt.err (!%p2144_p11)
}
  0x2e   : > { %s2335_s30 = smov [#allocation10]   ;;  %s3497_s8 = smov 128  }
  0x2f   : > { %s3498_s9 = smov 8   ;;  %s3510_s3 = sld [smem:[#allocation24_spill]] }
  0x30   : > { %2010 = dma.vmem_to_smem (!%p2443_p6), %s2439_s15, 512, %s2335_s30, [#allocation11], %s3497_s8, %s3497_s8, %s3498_s9  }
  0x31   : > { %s2148_s18 = scalar_lea.vmem %s2450_s19, 16  ;;  %p2156_p12 = scmp.lt.s32.totalorder %s2450_s19, %s2450_s19 }
  0x32   : > { %p2149_p3 = scmp.ne.s32.totalorder %s2450_s19, %s2148_s18  ;;  %p2157_p13 = scmp.lt.s32.totalorder %s2148_s18, %s2148_s18 }
  0x34   : > { %p2151_p4 = pnand %p2149_p3, %p2454_p8  ;;  %p2158_p0 = por %p2157_p13, %p2156_p12 }
  0x35   : > { %s259_s17 = sshll.u32 %s3510_s3, 4  ;;  %s260_s17 = int_to_ptr.vmem [resolvable:$true] %s259_s17 }
  0x36   : > { %p2152_p10 = pneg %p2151_p4 }
  0x38   : > { %p2159_p2 = pnand %p2158_p0, %p2152_p10 }
  0x3a   : > { %2162 = shalt.err (!%p2159_p2)
}
  0x3b   : > { %s2338_s20 = smov [#allocation6]   ;;  %s2163_s15 = scalar_lea.vmem %s260_s17, 32 }
  0x3c   : > { %2001 = dma.vmem_to_smem (!%p2443_p6), %s2450_s19, 16, %s2338_s20, [#allocation5]  }
  0x3d   : > { %p2164_p5 = scmp.ne.s32.totalorder %s260_s17, %s2163_s15  ;;  %p2171_p11 = scmp.lt.s32.totalorder %s260_s17, %s260_s17 }
  0x3e   : > { %p2172_p3 = scmp.lt.s32.totalorder %s2163_s15, %s2163_s15 }
  0x3f   : > { %p2166_p7 = pnand %p2164_p5, %p2454_p8 }
  0x40   : > { %p2173_p4 = por %p2172_p3, %p2171_p11 }
  0x41   : > { %p2167_p9 = pneg %p2166_p7 }
  0x43   : > { %p2174_p1 = pnand %p2173_p4, %p2167_p9 }
  0x45   : > { %2177 = shalt.err (!%p2174_p1)
}
  0x46   : > { %s2339_s22 = smov [#allocation9]   ;;  %s283_s19 = sshll.u32 %s3491_s5, 4  ;;  %s284_s19 = int_to_ptr.vmem [resolvable:$true] %s283_s19 }
  0x47   : > { %2007 = dma.vmem_to_smem (!%p2443_p6), %s260_s17, 32, %s2339_s22, [#allocation8]  }
  0x48   : > { %s294_s18 = sshll.u32 %s3492_s6, 4  ;;  %s2178_s20 = scalar_lea.vmem %s284_s19, 32  ;;  %s295_s18 = int_to_ptr.vmem [resolvable:$true] %s294_s18 }
  0x49   : > { %p2179_p10 = scmp.ne.s32.totalorder %s284_s19, %s2178_s20  ;;  %p2186_p1 = scmp.lt.s32.totalorder %s284_s19, %s284_s19 }
  0x4a   : > { %p2187_p0 = scmp.lt.s32.totalorder %s2178_s20, %s2178_s20 }
  0x4b   : > { %p2181_p12 = pnand %p2179_p10, %p2454_p8 }
  0x4c   : > { %p2188_p2 = por %p2187_p0, %p2186_p1 }
  0x4d   : > { %p2182_p13 = pneg %p2181_p12 }
  0x4f   : > { %p2189_p5 = pnand %p2188_p2, %p2182_p13 }
  0x51   : > { %2192 = shalt.err (!%p2189_p5)
}
  0x52   : > { %s2340_s17 = smov [#allocation12]   ;;  %s2193_s15 = scalar_lea.vmem %s295_s18, 16 }
  0x53   : > { %2013 = dma.vmem_to_smem (!%p2443_p6), %s284_s19, 32, %s2340_s17, [#allocation11]  }
  0x54   : > { %p2194_p7 = scmp.ne.s32.totalorder %s295_s18, %s2193_s15  ;;  %p2201_p3 = scmp.lt.s32.totalorder %s295_s18, %s295_s18 }
  0x55   : > { %p2202_p4 = scmp.lt.s32.totalorder %s2193_s15, %s2193_s15 }
  0x56   : > { %p2196_p9 = pnand %p2194_p7, %p2454_p8 }
  0x57   : > { %p2203_p10 = por %p2202_p4, %p2201_p3 }
  0x58   : > { %p2197_p11 = pneg %p2196_p9 }
  0x5a   : > { %p2204_p12 = pnand %p2203_p10, %p2197_p11 }
  0x5c   : > { %2207 = shalt.err (!%p2204_p12)
}
  0x5d   : > { %s2341_s22 = smov [#allocation13]   ;;  %s1770_s21 = sadd.s32 4294967294, %s2332_s29  }
  0x5e   : > { %2016 = dma.vmem_to_smem (!%p2443_p6), %s295_s18, 16, %s2341_s22, [#allocation14]  }
  0x5f   : > { %s39_s23 = sadd.s32 1, %s2328_s28  ;;  %s48_s30 = sadd.s32 1, %s2320_s26 }
  0x60   : > { %p41_p8 = scmp.ge.s32.totalorder %s39_s23, 2  ;;  %p55_p13 = scmp.ne.s32.totalorder %s2320_s26, %s2316_s25 }
  0x61   : > { %p56_p1 = scmp.eq.s32.totalorder %s2332_s29, 0  ;;  %p61_p2 = scmp.ne.s32.totalorder %s2316_s25, %s2312_s24 }
  0x62   : > { %s3528_s23 = smov (%p41_p8, %s39_s23), 0  ;;  %p211_p6 = scmp.eq.s32.totalorder %s1769_s10, 1 }
  0x63   : > { %p2512_p0 = por %p56_p1, %p55_p13  ;;  %s43_s19 = ssub.s32 %s2328_s28, %s3528_s23 }
  0x64   : > { %p46_p5 = scmp.eq.s32.totalorder %s43_s19, 0  ;;  %p3512_p7 = scmp.ne.s32.totalorder %s3504_s11, 0 }
  0x65   : > { %p2528_p11 = por %p211_p6, %p55_p13  ;;  %p217_p3 = scmp.eq.s32.totalorder %s1770_s21, 1 }
  0x66   : > { %p2524_p9 = por %p3512_p7, %p61_p2  ;;  %p2031_p10 = scmp.lt.s32.totalorder %s2332_s29, 2 }
  0x67   : > { %s2533_s18 = scalar_select %p46_p5, %s2320_s26, %s48_s30  }
  0x68   : > { %p2535_p4 = por %p217_p3, %p61_p2  ;;  %s305_s17 = sand.u32 1, %s2320_s26  }
  0x69   : > { %s1968_s10 = sshll.u32 %s2328_s28, 10  ;;  %s1779_s15 = sshll.u32 %s305_s17, 6 }
  0x6a   : > { %s317_s8 = scalar_lea.hbm %s3486_s0, %s1968_s10  ;;  %s309_s9 = scalar_lea.vmem [#allocation2], %s1779_s15 }
  0x6b   : > { %s318_s1 = sshll.u32 %s309_s9, 4  ;;  %p2547_p12 = pnand %p2031_p10, %p2512_p0  ;;  %s319_s1 = int_to_ptr.vmem [resolvable:$true] %s318_s1 }
  0x6c   : > { %s306_s21 = scalar_lea.sflag [#allocation3], %s305_s17  ;;  %s2221_s30 = scalar_lea.vmem %s319_s1, 1024 }
  0x6d   : > { %p2210_p8 = pneg %p2547_p12  ;;  %p2222_p13 = scmp.ne.s32.totalorder %s319_s1, %s2221_s30 }
  0x6e   : > { %s2342_s3 = smov [#allocation2]  }
  0x6f   : > { %p2224_p1 = pnand %p2222_p13, %p2210_p8  ;;  %s2226_s4 = sshll.u32 %s2342_s3, 4  ;;  %s2227_s4 = int_to_ptr.vmem [resolvable:$false] %s2226_s4 }
  0x70   : > { %s2228_s10 = scalar_lea.vmem %s2227_s4, 2048  ;;  %p2229_p6 = scmp.lt.s32.totalorder %s319_s1, %s2227_s4 }
  0x71   : > { %p2225_p2 = pneg %p2224_p1  ;;  %p2230_p5 = scmp.lt.s32.totalorder %s2228_s10, %s2221_s30 }
  0x73   : > { %p2231_p7 = por %p2230_p5, %p2229_p6 }
  0x75   : > { %p2232_p0 = pnand %p2231_p7, %p2225_p2 }
  0x77   : > { %2235 = shalt.err (!%p2232_p0)
}
  0x78   : > { %s3517_s9 = smov 8   ;;  %s3518_s16 = smov 128  }
  0x79   : > { %2020 = dma.hbm_to_vmem [thread:$0]  (!%p2547_p12), %s317_s8, 1024, %s319_s1, %s306_s21, %s3518_s16, %s3518_s16, %s3517_s9  }
  0x7a   : > { %p3519_p3 = scmp.ne.s32.totalorder %s3505_s12, 0 }
  0x7b   : > { %s2561_s17 = sand.u32 (!%p3519_p3), 1, %s2316_s25  }
  0x7c   : > { %330 = sbr.rel (%p3519_p3) target bundleno = 436 (0x1b4), region = 48  ;;  %s1783_s3 = sshll.u32 (!%p3519_p3), %s2561_s17, 6 }
  0x7d   : > { %s333_s4 = scalar_lea.sflag (!%p3519_p3), [#allocation3], %s2561_s17  ;;  %s2565_s15 = scalar_lea.vmem (!%p3519_p3), [#allocation2], %s1783_s3 }
  0x81   : > { %2287 = dma.done.wait (%p2524_p9), %s333_s4, 1024  }
  0x82   : > { %2289 = vsyncadd (%p2524_p9), %s333_s4, 4294966272  ;;  %p3520_p10 = scmp.ne.s32.totalorder %s3504_s11, 0 }
  0x84   : > { %2291 = dma.done.wait (%p3520_p10), [#allocation5], 16  }
  0x85   : > { %2293 = vsyncadd (%p3520_p10), [#allocation5], 4294967280 }
  0x86   : > { %2295 = dma.done.wait (%p3520_p10), [#allocation8], 48  }
  0x87   : > { %2297 = vsyncadd (%p3520_p10), [#allocation8], 4294967248 }
  0x88   : > { %2299 = dma.done.wait (%p3520_p10), [#allocation11], 544  }
  0x89   : > { %2301 = vsyncadd (%p3520_p10), [#allocation11], 4294966752 }
  0x8a   : > { %2303 = dma.done.wait (%p3520_p10), [#allocation14], 16  }
  0x8b   : > { %2305 = vsyncadd (%p3520_p10), [#allocation14], 4294967280 }
  0x8c   : > { %365 = sfence }
  0x8d   : > { %s399_s1 = sld [smem:[#allocation6 + %s2324_s27]]  ;;  %v404_v0 = vld [vmem:[%s2565_s15] sm:$0xff]  ;;  %v405_v1 = vld [vmem:[%s2565_s15 + $0x8] sm:$0xff]  ;;  %s2592_s8 = sshll.u32 %s2324_s27, 7  ;;  %v1796_v2 = vld [vmem:[%s2565_s15 + $0x30] sm:$0xff] }
  0x8e   : > { %s400_s2 = sld [smem:[#allocation7 + %s2324_s27]]  ;;  %v1797_v3 = vld [vmem:[%s2565_s15 + $0x38] sm:$0xff]  ;;  %v2600_v8 = vld [vmem:[%s2565_s15 + $0x10] sm:$0xff]  ;;  %v2608_v12 = vld [vmem:[%s2565_s15 + $0x20] sm:$0xff]  ;;  %s473_s10 = sadd.s32 1, %s2592_s8 }
  0x8f   : > { %s426_s12 = sld [smem:[#allocation10]]  ;;  %v2603_v9 = vld [vmem:[%s2565_s15 + $0x18] sm:$0xff]  ;;  %v2611_v13 = vld [vmem:[%s2565_s15 + $0x28] sm:$0xff] }
  0x90   : > { %s1798_s11 = sld [smem:[#allocation10 + $0x1]] }
  0x91   : > { %s1799_s13 = sld [smem:[#allocation10 + $0x2]] }
  0x92   : > { %s2597_s22 = sld [smem:[#allocation9 + %s2592_s8]] }
  0x93   : > { %v418_v4 = vstv %s399_s1  ;;  %s2605_s19 = sld [smem:[#allocation12]] }
  0x94   : > { %v419_v5 = vmul.f32 %v418_v4, %v404_v0  ;;  %v420_v6 = vmul.f32 %v418_v4, %v405_v1  ;;  %v421_v7 = vstv %s400_s2  ;;  %s2613_s21 = sld [smem:[#allocation12 + $0x80]] }
  0x95   : > { %v422_v10 = vmul.f32 %v1796_v2, %v421_v7  ;;  %v423_v11 = vmul.f32 %v1797_v3, %v421_v7  ;;  %v427_v16 = vstv %s426_s12  ;;  %s1802_s30 = sld [smem:[#allocation10 + $0x80]]  ;;  %s508_s12 = sadd.s32 2, %s2592_s8 }
  0x96   : > { %v428_v17 = vmul.f32 %v2600_v8, %v427_v16  ;;  %v429_v18 = vmul.f32 %v2603_v9, %v427_v16  ;;  %v431_v19 = vstv %s1798_s11  ;;  %s1803_s9 = sld [smem:[#allocation10 + $0x81]] }
  0x97   : > { %v2615_v14 = vadd.f32 %v422_v10, %v419_v5  ;;  %v2617_v15 = vadd.f32 %v423_v11, %v420_v6  ;;  %v432_v20 = vmul.f32 %v2608_v12, %v431_v19  ;;  %v433_v21 = vmul.f32 %v2611_v13, %v431_v19  ;;  %s2624_s16 = sld [smem:[#allocation10 + $0x82]] }
  0x98   : > { %v437_v22 = vstv %s1799_s13  ;;  %s2628_s3 = sld [smem:[#allocation9 + %s473_s10]]  ;;  %v444_v27 = vstv %s2597_s22 }
  0x99   : > { %v438_v23 = vmul.f32 %v437_v22, %v2615_v14  ;;  %v439_v24 = vmul.f32 %v437_v22, %v2617_v15  ;;  %v434_v25 = vadd.f32 %v432_v20, %v428_v17  ;;  %v435_v26 = vadd.f32 %v433_v21, %v429_v18  ;;  %s2630_s4 = sld [smem:[#allocation12 + $0x1]] }
  0x9a   : > { %s2633_s1 = sld [smem:[#allocation12 + $0x81]]  ;;  %v450_v41 = vstv %s2605_s19  ;;  %v454_v42 = vstv %s2613_s21 }
  0x9b   : > { %v440_v28 = vadd.f32 %v438_v23, %v434_v25  ;;  %v441_v29 = vadd.f32 %v439_v24, %v435_v26  ;;  %v458_v30 = vstv %s1802_s30  ;;  %s2635_s2 = sld [smem:[#allocation10 + $0x100]] }
  0x9c   : > { %v459_v31 = vmul.f32 %v2600_v8, %v458_v30  ;;  %v460_v32 = vmul.f32 %v2603_v9, %v458_v30  ;;  %v462_v33 = vstv %s1803_s9  ;;  %s1808_s11 = sld [smem:[#allocation10 + $0x101]] }
  0x9d   : > { %v445_v34 = vadd.f32 %v444_v27, %v440_v28  ;;  %v446_v35 = vadd.f32 %v444_v27, %v441_v29  ;;  %v463_v36 = vmul.f32 %v2608_v12, %v462_v33  ;;  %v464_v37 = vmul.f32 %v2611_v13, %v462_v33  ;;  %s2642_s13 = sld [smem:[#allocation10 + $0x102]] }
  0x9e   : > { %v468_v38 = vstv %s2624_s16  ;;  %s2645_s22 = sld [smem:[#allocation9 + %s508_s12]]  ;;  %v475_v47 = vstv %s2628_s3  ;;  %s543_s16 = sadd.s32 3, %s2592_s8 }
  0x9f   : > { %v465_v39 = vadd.f32 %v463_v36, %v459_v31  ;;  %v466_v40 = vadd.f32 %v464_v37, %v460_v32  ;;  %s2647_s30 = sld [smem:[#allocation12 + $0x2]]  ;;  %v469_v43 = vmul.f32 %v468_v38, %v2615_v14  ;;  %v470_v44 = vmul.f32 %v468_v38, %v2617_v15  ;;  %s578_s12 = sadd.s32 4, %s2592_s8 }
  0xa0   : > { %s2653_s10 = sld [smem:[#allocation12 + $0x82]]  ;;  %v447_v45 = vmax.f32 %v445_v34, 0.0  ;;  %v448_v46 = vmax.f32 %v446_v35, 0.0  ;;  %v481_v48 = vstv %s2630_s4  ;;  %v485_v59 = vstv %s2633_s1 }
  0xa1   : > { %s2657_s9 = sld [smem:[#allocation10 + $0x180]]  ;;  %v471_v49 = vadd.f32 %v469_v43, %v465_v39  ;;  %v472_v50 = vadd.f32 %v470_v44, %v466_v40  ;;  %v493_v51 = vstv %s2635_s2 }
  0xa2   : > { %v497_v52 = vstv %s1808_s11  ;;  %s2660_s19 = sld [smem:[#allocation10 + $0x181]]  ;;  %v494_v53 = vmul.f32 %v2600_v8, %v493_v51  ;;  %v495_v54 = vmul.f32 %v2603_v9, %v493_v51  ;;  %v451_v1 = vmul.f32 %v450_v41, %v447_v45 }
  0xa3   : > { %v498_v55 = vmul.f32 %v2608_v12, %v497_v52  ;;  %v499_v56 = vmul.f32 %v2611_v13, %v497_v52  ;;  %s2666_s21 = sld [smem:[#allocation10 + $0x182]]  ;;  %v476_v57 = vadd.f32 %v475_v47, %v471_v49  ;;  %v477_v58 = vadd.f32 %v475_v47, %v472_v50 }
  0xa4   : > { %v503_v60 = vstv %s2642_s13  ;;  %v510_v4 = vstv %s2645_s22  ;;  %s2674_s3 = sld [smem:[#allocation9 + %s543_s16]]  ;;  %v452_v5 = vmul.f32 %v450_v41, %v448_v46  ;;  %v455_v11 = vmul.f32 %v454_v42, %v447_v45 }
  0xa5   : > { %v500_v61 = vadd.f32 %v498_v55, %v494_v53  ;;  %v501_v62 = vadd.f32 %v499_v56, %v495_v54  ;;  %v504_v63 = vmul.f32 %v503_v60, %v2615_v14  ;;  %v505_v0 = vmul.f32 %v503_v60, %v2617_v15  ;;  %s2677_s4 = sld [smem:[#allocation10 + $0x200]] }
  0xa6   : > { %v478_v2 = vmax.f32 %v476_v57, 0.0  ;;  %v479_v3 = vmax.f32 %v477_v58, 0.0  ;;  %v456_v16 = vmul.f32 %v454_v42, %v448_v46  ;;  %v516_v17 = vstv %s2647_s30  ;;  %s2681_s1 = sld [smem:[#allocation10 + $0x201]] }
  0xa7   : > { %v506_v6 = vadd.f32 %v504_v63, %v500_v61  ;;  %v507_v7 = vadd.f32 %v505_v0, %v501_v62  ;;  %v528_v10 = vstv %s2657_s9  ;;  %v520_v18 = vstv %s2653_s10  ;;  %s2683_s2 = sld [smem:[#allocation10 + $0x202]] }
  0xa8   : > { %v482_v19 = vmul.f32 %v481_v48, %v478_v2  ;;  %v483_v20 = vmul.f32 %v481_v48, %v479_v3  ;;  %v486_v23 = vmul.f32 %v485_v59, %v478_v2  ;;  %v487_v24 = vmul.f32 %v485_v59, %v479_v3  ;;  %s2688_s11 = sld [smem:[#allocation12 + $0x3]] }
  0xa9   : > { %v511_v21 = vadd.f32 %v510_v4, %v506_v6  ;;  %v512_v22 = vadd.f32 %v510_v4, %v507_v7  ;;  %v529_v25 = vmul.f32 %v2600_v8, %v528_v10  ;;  %v530_v26 = vmul.f32 %v2603_v9, %v528_v10  ;;  %s2692_s13 = sld [smem:[#allocation12 + $0x83]] }
  0xaa   : > { %v532_v29 = vstv %s2660_s19  ;;  %v538_v30 = vstv %s2666_s21  ;;  %s2698_s22 = sld [smem:[#allocation9 + %s578_s12]]  ;;  %v488_v35 = vadd.f32 %v482_v19, %v451_v1  ;;  %v489_v36 = vadd.f32 %v483_v20, %v452_v5  ;;  %s613_s19 = sadd.s32 5, %s2592_s8 }
  0xab   : > { %v513_v27 = vmax.f32 %v511_v21, 0.0  ;;  %v514_v28 = vmax.f32 %v512_v22, 0.0  ;;  %v533_v31 = vmul.f32 %v2608_v12, %v532_v29  ;;  %v534_v32 = vmul.f32 %v2611_v13, %v532_v29  ;;  %s2700_s30 = sld [smem:[#allocation10 + $0x280]]  ;;  %s648_s12 = sadd.s32 6, %s2592_s8 }
  0xac   : > { %v539_v33 = vmul.f32 %v538_v30, %v2615_v14  ;;  %v540_v34 = vmul.f32 %v538_v30, %v2617_v15  ;;  %v490_v37 = vadd.f32 %v486_v23, %v455_v11  ;;  %v491_v38 = vadd.f32 %v487_v24, %v456_v16  ;;  %s2702_s10 = sld [smem:[#allocation10 + $0x281]] }
  0xad   : > { %v535_v39 = vadd.f32 %v533_v31, %v529_v25  ;;  %v536_v40 = vadd.f32 %v534_v32, %v530_v26  ;;  %v517_v41 = vmul.f32 %v516_v17, %v513_v27  ;;  %v518_v42 = vmul.f32 %v516_v17, %v514_v28  ;;  %s2705_s9 = sld [smem:[#allocation10 + $0x282]] }
  0xae   : > { %v521_v43 = vmul.f32 %v520_v18, %v513_v27  ;;  %v545_v44 = vstv %s2674_s3  ;;  %v522_v45 = vmul.f32 %v520_v18, %v514_v28  ;;  %v563_v48 = vstv %s2677_s4  ;;  %s2709_s21 = sld [smem:[#allocation12 + $0x4]] }
  0xaf   : > { %v541_v46 = vadd.f32 %v539_v33, %v535_v39  ;;  %v542_v47 = vadd.f32 %v540_v34, %v536_v40  ;;  %v564_v49 = vmul.f32 %v2600_v8, %v563_v48  ;;  %v565_v50 = vmul.f32 %v2603_v9, %v563_v48  ;;  %s2715_s16 = sld [smem:[#allocation12 + $0x84]] }
  0xb0   : > { %v567_v51 = vstv %s2681_s1  ;;  %v573_v52 = vstv %s2683_s2  ;;  %s2719_s3 = sld [smem:[#allocation9 + %s613_s19]]  ;;  %v523_v57 = vadd.f32 %v517_v41, %v488_v35  ;;  %v551_v58 = vstv %s2688_s11  ;;  %s683_s19 = sadd.s32 7, %s2592_s8 }
  0xb1   : > { %v546_v53 = vadd.f32 %v545_v44, %v541_v46  ;;  %v547_v54 = vadd.f32 %v545_v44, %v542_v47  ;;  %v568_v55 = vmul.f32 %v2608_v12, %v567_v51  ;;  %v569_v56 = vmul.f32 %v2611_v13, %v567_v51  ;;  %s2724_s4 = sld [smem:[#allocation10 + $0x300]] }
  0xb2   : > { %v574_v59 = vmul.f32 %v573_v52, %v2615_v14  ;;  %v575_v60 = vmul.f32 %v573_v52, %v2617_v15  ;;  %s2726_s1 = sld [smem:[#allocation10 + $0x301]]  ;;  %v524_v1 = vadd.f32 %v518_v42, %v489_v36  ;;  %v525_v2 = vadd.f32 %v521_v43, %v490_v37 }
  0xb3   : > { %v548_v61 = vmax.f32 %v546_v53, 0.0  ;;  %v549_v62 = vmax.f32 %v547_v54, 0.0  ;;  %v570_v63 = vadd.f32 %v568_v55, %v564_v49  ;;  %v571_v0 = vadd.f32 %v569_v56, %v565_v50  ;;  %s2730_s2 = sld [smem:[#allocation10 + $0x302]] }
  0xb4   : > { %v555_v3 = vstv %s2692_s13  ;;  %v598_v4 = vstv %s2700_s30  ;;  %v526_v5 = vadd.f32 %v522_v45, %v491_v38  ;;  %v580_v6 = vstv %s2698_s22  ;;  %s2738_s11 = sld [smem:[#allocation12 + $0x5]] }
  0xb5   : > { %v602_v7 = vstv %s2702_s10  ;;  %v608_v10 = vstv %s2705_s9  ;;  %v576_v11 = vadd.f32 %v574_v59, %v570_v63  ;;  %v577_v16 = vadd.f32 %v575_v60, %v571_v0  ;;  %s2740_s13 = sld [smem:[#allocation12 + $0x85]] }
  0xb6   : > { %v599_v17 = vmul.f32 %v2600_v8, %v598_v4  ;;  %v600_v18 = vmul.f32 %v2603_v9, %v598_v4  ;;  %v552_v19 = vmul.f32 %v551_v58, %v548_v61  ;;  %v553_v20 = vmul.f32 %v551_v58, %v549_v62  ;;  %s2744_s22 = sld [smem:[#allocation9 + %s648_s12]]  ;;  %s718_s12 = sadd.s32 8, %s2592_s8 }
  0xb7   : > { %v556_v21 = vmul.f32 %v555_v3, %v548_v61  ;;  %v557_v22 = vmul.f32 %v555_v3, %v549_v62  ;;  %v581_v23 = vadd.f32 %v580_v6, %v576_v11  ;;  %v582_v24 = vadd.f32 %v580_v6, %v577_v16  ;;  %s2750_s30 = sld [smem:[#allocation10 + $0x380]] }
  0xb8   : > { %v603_v25 = vmul.f32 %v2608_v12, %v602_v7  ;;  %v604_v26 = vmul.f32 %v2611_v13, %v602_v7  ;;  %v586_v27 = vstv %s2709_s21  ;;  %v590_v28 = vstv %s2715_s16  ;;  %s2752_s10 = sld [smem:[#allocation10 + $0x381]] }
  0xb9   : > { %v609_v29 = vmul.f32 %v608_v10, %v2615_v14  ;;  %v610_v30 = vmul.f32 %v608_v10, %v2617_v15  ;;  %v583_v31 = vmax.f32 %v581_v23, 0.0  ;;  %v584_v32 = vmax.f32 %v582_v24, 0.0  ;;  %s2755_s9 = sld [smem:[#allocation10 + $0x382]] }
  0xba   : > { %v605_v33 = vadd.f32 %v603_v25, %v599_v17  ;;  %v606_v34 = vadd.f32 %v604_v26, %v600_v18  ;;  %v558_v35 = vadd.f32 %v552_v19, %v523_v57  ;;  %v559_v36 = vadd.f32 %v553_v20, %v524_v1  ;;  %s2763_s21 = sld [smem:[#allocation12 + $0x6]] }
  0xbb   : > { %v560_v37 = vadd.f32 %v556_v21, %v525_v2  ;;  %v633_v38 = vstv %s2724_s4  ;;  %v561_v39 = vadd.f32 %v557_v22, %v526_v5  ;;  %v615_v40 = vstv %s2719_s3  ;;  %s2765_s16 = sld [smem:[#allocation12 + $0x86]] }
  0xbc   : > { %v637_v41 = vstv %s2726_s1  ;;  %v643_v42 = vstv %s2730_s2  ;;  %v611_v43 = vadd.f32 %v609_v29, %v605_v33  ;;  %v612_v44 = vadd.f32 %v610_v30, %v606_v34  ;;  %s2769_s3 = sld [smem:[#allocation9 + %s683_s19]]  ;;  %s753_s19 = sadd.s32 9, %s2592_s8 }
  0xbd   : > { %v634_v45 = vmul.f32 %v2600_v8, %v633_v38  ;;  %v635_v46 = vmul.f32 %v2603_v9, %v633_v38  ;;  %v587_v47 = vmul.f32 %v586_v27, %v583_v31  ;;  %v588_v48 = vmul.f32 %v586_v27, %v584_v32  ;;  %s2775_s4 = sld [smem:[#allocation10 + $0x400]] }
  0xbe   : > { %v591_v49 = vmul.f32 %v590_v28, %v583_v31  ;;  %v592_v50 = vmul.f32 %v590_v28, %v584_v32  ;;  %v616_v51 = vadd.f32 %v615_v40, %v611_v43  ;;  %v617_v52 = vadd.f32 %v615_v40, %v612_v44  ;;  %s2777_s1 = sld [smem:[#allocation10 + $0x401]] }
  0xbf   : > { %v638_v53 = vmul.f32 %v2608_v12, %v637_v41  ;;  %v639_v54 = vmul.f32 %v2611_v13, %v637_v41  ;;  %v621_v55 = vstv %s2738_s11  ;;  %v625_v56 = vstv %s2740_s13  ;;  %s2780_s2 = sld [smem:[#allocation10 + $0x402]] }
  0xc0   : > { %v644_v57 = vmul.f32 %v643_v42, %v2615_v14  ;;  %v645_v58 = vmul.f32 %v643_v42, %v2617_v15  ;;  %v618_v59 = vmax.f32 %v616_v51, 0.0  ;;  %v619_v60 = vmax.f32 %v617_v52, 0.0  ;;  %s2788_s11 = sld [smem:[#allocation12 + $0x7]] }
  0xc1   : > { %v640_v61 = vadd.f32 %v638_v53, %v634_v45  ;;  %v641_v62 = vadd.f32 %v639_v54, %v635_v46  ;;  %v593_v63 = vadd.f32 %v587_v47, %v558_v35  ;;  %v594_v0 = vadd.f32 %v588_v48, %v559_v36  ;;  %s2790_s13 = sld [smem:[#allocation12 + $0x87]] }
  0xc2   : > { %v595_v1 = vadd.f32 %v591_v49, %v560_v37  ;;  %v668_v2 = vstv %s2750_s30  ;;  %v596_v3 = vadd.f32 %v592_v50, %v561_v39  ;;  %v650_v4 = vstv %s2744_s22  ;;  %s2794_s22 = sld [smem:[#allocation9 + %s718_s12]]  ;;  %s788_s12 = sadd.s32 10, %s2592_s8 }
  0xc3   : > { %v672_v5 = vstv %s2752_s10  ;;  %v678_v6 = vstv %s2755_s9  ;;  %v646_v7 = vadd.f32 %v644_v57, %v640_v61  ;;  %v647_v10 = vadd.f32 %v645_v58, %v641_v62  ;;  %s2800_s30 = sld [smem:[#allocation10 + $0x480]] }
  0xc4   : > { %v669_v11 = vmul.f32 %v2600_v8, %v668_v2  ;;  %v670_v16 = vmul.f32 %v2603_v9, %v668_v2  ;;  %v622_v17 = vmul.f32 %v621_v55, %v618_v59  ;;  %v623_v18 = vmul.f32 %v621_v55, %v619_v60  ;;  %s2802_s10 = sld [smem:[#allocation10 + $0x481]] }
  0xc5   : > { %v626_v19 = vmul.f32 %v625_v56, %v618_v59  ;;  %v627_v20 = vmul.f32 %v625_v56, %v619_v60  ;;  %v651_v21 = vadd.f32 %v650_v4, %v646_v7  ;;  %v652_v22 = vadd.f32 %v650_v4, %v647_v10  ;;  %s2805_s9 = sld [smem:[#allocation10 + $0x482]] }
  0xc6   : > { %v673_v23 = vmul.f32 %v2608_v12, %v672_v5  ;;  %v674_v24 = vmul.f32 %v2611_v13, %v672_v5  ;;  %v656_v25 = vstv %s2763_s21  ;;  %v660_v26 = vstv %s2765_s16  ;;  %s2813_s21 = sld [smem:[#allocation12 + $0x8]] }
  0xc7   : > { %v679_v27 = vmul.f32 %v678_v6, %v2615_v14  ;;  %v680_v28 = vmul.f32 %v678_v6, %v2617_v15  ;;  %v653_v29 = vmax.f32 %v651_v21, 0.0  ;;  %v654_v30 = vmax.f32 %v652_v22, 0.0  ;;  %s2815_s16 = sld [smem:[#allocation12 + $0x88]] }
  0xc8   : > { %v675_v31 = vadd.f32 %v673_v23, %v669_v11  ;;  %v676_v32 = vadd.f32 %v674_v24, %v670_v16  ;;  %v628_v33 = vadd.f32 %v622_v17, %v593_v63  ;;  %v629_v34 = vadd.f32 %v623_v18, %v594_v0 }
  0xc9   : > { %v630_v35 = vadd.f32 %v626_v19, %v595_v1  ;;  %v703_v36 = vstv %s2775_s4  ;;  %v631_v37 = vadd.f32 %v627_v20, %v596_v3  ;;  %v685_v38 = vstv %s2769_s3  ;;  %s2819_s3 = sld [smem:[#allocation9 + %s753_s19]]  ;;  %s823_s19 = sadd.s32 11, %s2592_s8 }
  0xca   : > { %v707_v39 = vstv %s2777_s1  ;;  %v713_v40 = vstv %s2780_s2  ;;  %v681_v41 = vadd.f32 %v679_v27, %v675_v31  ;;  %v682_v42 = vadd.f32 %v680_v28, %v676_v32  ;;  %s2825_s4 = sld [smem:[#allocation10 + $0x500]] }
  0xcb   : > { %v704_v43 = vmul.f32 %v2600_v8, %v703_v36  ;;  %v705_v44 = vmul.f32 %v2603_v9, %v703_v36  ;;  %v657_v45 = vmul.f32 %v656_v25, %v653_v29  ;;  %v658_v46 = vmul.f32 %v656_v25, %v654_v30  ;;  %s2827_s1 = sld [smem:[#allocation10 + $0x501]] }
  0xcc   : > { %v661_v47 = vmul.f32 %v660_v26, %v653_v29  ;;  %v662_v48 = vmul.f32 %v660_v26, %v654_v30  ;;  %v686_v49 = vadd.f32 %v685_v38, %v681_v41  ;;  %v687_v50 = vadd.f32 %v685_v38, %v682_v42  ;;  %s2830_s2 = sld [smem:[#allocation10 + $0x502]] }
  0xcd   : > { %v708_v51 = vmul.f32 %v2608_v12, %v707_v39  ;;  %v709_v52 = vmul.f32 %v2611_v13, %v707_v39  ;;  %v691_v53 = vstv %s2788_s11  ;;  %v695_v54 = vstv %s2790_s13  ;;  %s2838_s11 = sld [smem:[#allocation12 + $0x9]] }
  0xce   : > { %v714_v55 = vmul.f32 %v713_v40, %v2615_v14  ;;  %v715_v56 = vmul.f32 %v713_v40, %v2617_v15  ;;  %v688_v57 = vmax.f32 %v686_v49, 0.0  ;;  %v689_v58 = vmax.f32 %v687_v50, 0.0  ;;  %s2840_s13 = sld [smem:[#allocation12 + $0x89]] }
  0xcf   : > { %v710_v59 = vadd.f32 %v708_v51, %v704_v43  ;;  %v711_v60 = vadd.f32 %v709_v52, %v705_v44  ;;  %v663_v61 = vadd.f32 %v657_v45, %v628_v33  ;;  %v664_v62 = vadd.f32 %v658_v46, %v629_v34 }
  0xd0   : > { %v665_v63 = vadd.f32 %v661_v47, %v630_v35  ;;  %v738_v0 = vstv %s2800_s30  ;;  %v666_v1 = vadd.f32 %v662_v48, %v631_v37  ;;  %v720_v2 = vstv %s2794_s22  ;;  %s2844_s22 = sld [smem:[#allocation9 + %s788_s12]]  ;;  %s858_s12 = sadd.s32 12, %s2592_s8 }
  0xd1   : > { %v742_v3 = vstv %s2802_s10  ;;  %v748_v4 = vstv %s2805_s9  ;;  %v716_v5 = vadd.f32 %v714_v55, %v710_v59  ;;  %v717_v6 = vadd.f32 %v715_v56, %v711_v60  ;;  %s2850_s30 = sld [smem:[#allocation10 + $0x580]] }
  0xd2   : > { %v739_v7 = vmul.f32 %v2600_v8, %v738_v0  ;;  %v740_v10 = vmul.f32 %v2603_v9, %v738_v0  ;;  %v692_v11 = vmul.f32 %v691_v53, %v688_v57  ;;  %v693_v16 = vmul.f32 %v691_v53, %v689_v58  ;;  %s2852_s10 = sld [smem:[#allocation10 + $0x581]] }
  0xd3   : > { %v696_v17 = vmul.f32 %v695_v54, %v688_v57  ;;  %v697_v18 = vmul.f32 %v695_v54, %v689_v58  ;;  %v721_v19 = vadd.f32 %v720_v2, %v716_v5  ;;  %v722_v20 = vadd.f32 %v720_v2, %v717_v6  ;;  %s2855_s9 = sld [smem:[#allocation10 + $0x582]] }
  0xd4   : > { %v743_v21 = vmul.f32 %v2608_v12, %v742_v3  ;;  %v744_v22 = vmul.f32 %v2611_v13, %v742_v3  ;;  %v726_v23 = vstv %s2813_s21  ;;  %v730_v24 = vstv %s2815_s16  ;;  %s2863_s21 = sld [smem:[#allocation12 + $0xa]] }
  0xd5   : > { %v749_v25 = vmul.f32 %v748_v4, %v2615_v14  ;;  %v750_v26 = vmul.f32 %v748_v4, %v2617_v15  ;;  %v723_v27 = vmax.f32 %v721_v19, 0.0  ;;  %v724_v28 = vmax.f32 %v722_v20, 0.0  ;;  %s2865_s16 = sld [smem:[#allocation12 + $0x8a]] }
  0xd6   : > { %v745_v29 = vadd.f32 %v743_v21, %v739_v7  ;;  %v746_v30 = vadd.f32 %v744_v22, %v740_v10  ;;  %v698_v31 = vadd.f32 %v692_v11, %v663_v61  ;;  %v699_v32 = vadd.f32 %v693_v16, %v664_v62 }
  0xd7   : > { %v700_v33 = vadd.f32 %v696_v17, %v665_v63  ;;  %v773_v34 = vstv %s2825_s4  ;;  %v701_v35 = vadd.f32 %v697_v18, %v666_v1  ;;  %v755_v36 = vstv %s2819_s3  ;;  %s2869_s3 = sld [smem:[#allocation9 + %s823_s19]]  ;;  %s893_s19 = sadd.s32 13, %s2592_s8 }
  0xd8   : > { %v777_v37 = vstv %s2827_s1  ;;  %v783_v38 = vstv %s2830_s2  ;;  %v751_v39 = vadd.f32 %v749_v25, %v745_v29  ;;  %v752_v40 = vadd.f32 %v750_v26, %v746_v30  ;;  %s2875_s4 = sld [smem:[#allocation10 + $0x600]] }
  0xd9   : > { %v774_v41 = vmul.f32 %v2600_v8, %v773_v34  ;;  %v775_v42 = vmul.f32 %v2603_v9, %v773_v34  ;;  %v727_v43 = vmul.f32 %v726_v23, %v723_v27  ;;  %v728_v44 = vmul.f32 %v726_v23, %v724_v28  ;;  %s2877_s1 = sld [smem:[#allocation10 + $0x601]] }
  0xda   : > { %v731_v45 = vmul.f32 %v730_v24, %v723_v27  ;;  %v732_v46 = vmul.f32 %v730_v24, %v724_v28  ;;  %v756_v47 = vadd.f32 %v755_v36, %v751_v39  ;;  %v757_v48 = vadd.f32 %v755_v36, %v752_v40  ;;  %s2880_s2 = sld [smem:[#allocation10 + $0x602]] }
  0xdb   : > { %v778_v49 = vmul.f32 %v2608_v12, %v777_v37  ;;  %v779_v50 = vmul.f32 %v2611_v13, %v777_v37  ;;  %v761_v51 = vstv %s2838_s11  ;;  %v765_v52 = vstv %s2840_s13  ;;  %s2888_s11 = sld [smem:[#allocation12 + $0xb]] }
  0xdc   : > { %v784_v53 = vmul.f32 %v783_v38, %v2615_v14  ;;  %v785_v54 = vmul.f32 %v783_v38, %v2617_v15  ;;  %v758_v55 = vmax.f32 %v756_v47, 0.0  ;;  %v759_v56 = vmax.f32 %v757_v48, 0.0  ;;  %s2890_s13 = sld [smem:[#allocation12 + $0x8b]] }
  0xdd   : > { %v780_v57 = vadd.f32 %v778_v49, %v774_v41  ;;  %v781_v58 = vadd.f32 %v779_v50, %v775_v42  ;;  %v733_v59 = vadd.f32 %v727_v43, %v698_v31  ;;  %v734_v60 = vadd.f32 %v728_v44, %v699_v32 }
  0xde   : > { %v735_v61 = vadd.f32 %v731_v45, %v700_v33  ;;  %v808_v62 = vstv %s2850_s30  ;;  %v736_v63 = vadd.f32 %v732_v46, %v701_v35  ;;  %v790_v0 = vstv %s2844_s22  ;;  %s2894_s22 = sld [smem:[#allocation9 + %s858_s12]]  ;;  %s928_s12 = sadd.s32 14, %s2592_s8 }
  0xdf   : > { %v812_v1 = vstv %s2852_s10  ;;  %v818_v2 = vstv %s2855_s9  ;;  %v786_v3 = vadd.f32 %v784_v53, %v780_v57  ;;  %v787_v4 = vadd.f32 %v785_v54, %v781_v58  ;;  %s2900_s30 = sld [smem:[#allocation10 + $0x680]] }
  0xe0   : > { %v809_v5 = vmul.f32 %v2600_v8, %v808_v62  ;;  %v810_v6 = vmul.f32 %v2603_v9, %v808_v62  ;;  %v762_v7 = vmul.f32 %v761_v51, %v758_v55  ;;  %v763_v10 = vmul.f32 %v761_v51, %v759_v56  ;;  %s2902_s10 = sld [smem:[#allocation10 + $0x681]] }
  0xe1   : > { %v766_v11 = vmul.f32 %v765_v52, %v758_v55  ;;  %v767_v16 = vmul.f32 %v765_v52, %v759_v56  ;;  %v791_v17 = vadd.f32 %v790_v0, %v786_v3  ;;  %v792_v18 = vadd.f32 %v790_v0, %v787_v4  ;;  %s2905_s9 = sld [smem:[#allocation10 + $0x682]] }
  0xe2   : > { %v813_v19 = vmul.f32 %v2608_v12, %v812_v1  ;;  %v814_v20 = vmul.f32 %v2611_v13, %v812_v1  ;;  %v796_v21 = vstv %s2863_s21  ;;  %v800_v22 = vstv %s2865_s16  ;;  %s2913_s21 = sld [smem:[#allocation12 + $0xc]] }
  0xe3   : > { %v819_v23 = vmul.f32 %v818_v2, %v2615_v14  ;;  %v820_v24 = vmul.f32 %v818_v2, %v2617_v15  ;;  %v793_v25 = vmax.f32 %v791_v17, 0.0  ;;  %v794_v26 = vmax.f32 %v792_v18, 0.0  ;;  %s2915_s16 = sld [smem:[#allocation12 + $0x8c]] }
  0xe4   : > { %v815_v27 = vadd.f32 %v813_v19, %v809_v5  ;;  %v816_v28 = vadd.f32 %v814_v20, %v810_v6  ;;  %v768_v29 = vadd.f32 %v762_v7, %v733_v59  ;;  %v769_v30 = vadd.f32 %v763_v10, %v734_v60 }
  0xe5   : > { %v770_v31 = vadd.f32 %v766_v11, %v735_v61  ;;  %v843_v32 = vstv %s2875_s4  ;;  %v771_v33 = vadd.f32 %v767_v16, %v736_v63  ;;  %v825_v34 = vstv %s2869_s3  ;;  %s2919_s3 = sld [smem:[#allocation9 + %s893_s19]]  ;;  %s963_s19 = sadd.s32 15, %s2592_s8 }
  0xe6   : > { %v847_v35 = vstv %s2877_s1  ;;  %v853_v36 = vstv %s2880_s2  ;;  %v821_v37 = vadd.f32 %v819_v23, %v815_v27  ;;  %v822_v38 = vadd.f32 %v820_v24, %v816_v28  ;;  %s2925_s4 = sld [smem:[#allocation10 + $0x700]] }
  0xe7   : > { %v844_v39 = vmul.f32 %v2600_v8, %v843_v32  ;;  %v845_v40 = vmul.f32 %v2603_v9, %v843_v32  ;;  %v797_v41 = vmul.f32 %v796_v21, %v793_v25  ;;  %v798_v42 = vmul.f32 %v796_v21, %v794_v26  ;;  %s2927_s1 = sld [smem:[#allocation10 + $0x701]] }
  0xe8   : > { %v801_v43 = vmul.f32 %v800_v22, %v793_v25  ;;  %v802_v44 = vmul.f32 %v800_v22, %v794_v26  ;;  %v826_v45 = vadd.f32 %v825_v34, %v821_v37  ;;  %v827_v46 = vadd.f32 %v825_v34, %v822_v38  ;;  %s2930_s2 = sld [smem:[#allocation10 + $0x702]] }
  0xe9   : > { %v848_v47 = vmul.f32 %v2608_v12, %v847_v35  ;;  %v849_v48 = vmul.f32 %v2611_v13, %v847_v35  ;;  %v831_v49 = vstv %s2888_s11  ;;  %v835_v50 = vstv %s2890_s13  ;;  %s2938_s11 = sld [smem:[#allocation12 + $0xd]] }
  0xea   : > { %v854_v51 = vmul.f32 %v853_v36, %v2615_v14  ;;  %v855_v52 = vmul.f32 %v853_v36, %v2617_v15  ;;  %v828_v53 = vmax.f32 %v826_v45, 0.0  ;;  %v829_v54 = vmax.f32 %v827_v46, 0.0  ;;  %s2940_s13 = sld [smem:[#allocation12 + $0x8d]] }
  0xeb   : > { %v850_v55 = vadd.f32 %v848_v47, %v844_v39  ;;  %v851_v56 = vadd.f32 %v849_v48, %v845_v40  ;;  %v803_v57 = vadd.f32 %v797_v41, %v768_v29  ;;  %v804_v58 = vadd.f32 %v798_v42, %v769_v30 }
  0xec   : > { %v805_v59 = vadd.f32 %v801_v43, %v770_v31  ;;  %v878_v60 = vstv %s2900_s30  ;;  %v806_v61 = vadd.f32 %v802_v44, %v771_v33  ;;  %v860_v62 = vstv %s2894_s22  ;;  %s2944_s22 = sld [smem:[#allocation9 + %s928_s12]]  ;;  %s998_s12 = sadd.s32 16, %s2592_s8 }
  0xed   : > { %v882_v63 = vstv %s2902_s10  ;;  %v888_v0 = vstv %s2905_s9  ;;  %v856_v1 = vadd.f32 %v854_v51, %v850_v55  ;;  %v857_v2 = vadd.f32 %v855_v52, %v851_v56  ;;  %s2950_s30 = sld [smem:[#allocation10 + $0x780]] }
  0xee   : > { %v879_v3 = vmul.f32 %v2600_v8, %v878_v60  ;;  %v880_v4 = vmul.f32 %v2603_v9, %v878_v60  ;;  %v832_v5 = vmul.f32 %v831_v49, %v828_v53  ;;  %v833_v6 = vmul.f32 %v831_v49, %v829_v54  ;;  %s2952_s10 = sld [smem:[#allocation10 + $0x781]] }
  0xef   : > { %v836_v7 = vmul.f32 %v835_v50, %v828_v53  ;;  %v837_v10 = vmul.f32 %v835_v50, %v829_v54  ;;  %v861_v11 = vadd.f32 %v860_v62, %v856_v1  ;;  %v862_v16 = vadd.f32 %v860_v62, %v857_v2  ;;  %s2955_s9 = sld [smem:[#allocation10 + $0x782]] }
  0xf0   : > { %v883_v17 = vmul.f32 %v2608_v12, %v882_v63  ;;  %v884_v18 = vmul.f32 %v2611_v13, %v882_v63  ;;  %v866_v19 = vstv %s2913_s21  ;;  %v870_v20 = vstv %s2915_s16  ;;  %s2963_s21 = sld [smem:[#allocation12 + $0xe]]  ;;  %v2991_v63 = vld [vmem:[%s2565_s15 + $0x18] sm:$0xff] }
  0xf1   : > { %v889_v21 = vmul.f32 %v888_v0, %v2615_v14  ;;  %v890_v22 = vmul.f32 %v888_v0, %v2617_v15  ;;  %v863_v23 = vmax.f32 %v861_v11, 0.0  ;;  %v864_v24 = vmax.f32 %v862_v16, 0.0  ;;  %s2965_s16 = sld [smem:[#allocation12 + $0x8e]]  ;;  %v3003_v11 = vld [vmem:[%s2565_s15 + $0x28] sm:$0xff] }
  0xf2   : > { %v885_v25 = vadd.f32 %v883_v17, %v879_v3  ;;  %v886_v26 = vadd.f32 %v884_v18, %v880_v4  ;;  %v838_v27 = vadd.f32 %v832_v5, %v803_v57  ;;  %v839_v28 = vadd.f32 %v833_v6, %v804_v58 }
  0xf3   : > { %v840_v29 = vadd.f32 %v836_v7, %v805_v59  ;;  %v913_v30 = vstv %s2925_s4  ;;  %v841_v31 = vadd.f32 %v837_v10, %v806_v61  ;;  %v895_v32 = vstv %s2919_s3  ;;  %s2969_s3 = sld [smem:[#allocation9 + %s963_s19]]  ;;  %v2987_v61 = vld [vmem:[%s2565_s15 + $0x10] sm:$0xff]  ;;  %v2999_v7 = vld [vmem:[%s2565_s15 + $0x20] sm:$0xff]  ;;  %s1033_s19 = sadd.s32 17, %s2592_s8 }
  0xf4   : > { %v917_v33 = vstv %s2927_s1  ;;  %v923_v34 = vstv %s2930_s2  ;;  %v891_v35 = vadd.f32 %v889_v21, %v885_v25  ;;  %v892_v36 = vadd.f32 %v890_v22, %v886_v26  ;;  %s2975_s4 = sld [smem:[#allocation10 + $0x800]] }
  0xf5   : > { %v914_v37 = vmul.f32 %v2600_v8, %v913_v30  ;;  %v915_v38 = vmul.f32 %v2603_v9, %v913_v30  ;;  %v867_v39 = vmul.f32 %v866_v19, %v863_v23  ;;  %v868_v40 = vmul.f32 %v866_v19, %v864_v24  ;;  %s2977_s1 = sld [smem:[#allocation10 + $0x801]] }
  0xf6   : > { %v871_v41 = vmul.f32 %v870_v20, %v863_v23  ;;  %v872_v42 = vmul.f32 %v870_v20, %v864_v24  ;;  %v896_v43 = vadd.f32 %v895_v32, %v891_v35  ;;  %v897_v44 = vadd.f32 %v895_v32, %v892_v36  ;;  %s2980_s2 = sld [smem:[#allocation10 + $0x802]] }
  0xf7   : > { %v918_v45 = vmul.f32 %v2608_v12, %v917_v33  ;;  %v919_v46 = vmul.f32 %v2611_v13, %v917_v33  ;;  %v901_v8 = vstv %s2938_s11  ;;  %v905_v9 = vstv %s2940_s13  ;;  %s2994_s11 = sld [smem:[#allocation12 + $0xf]] }
  0xf8   : > { %v924_v47 = vmul.f32 %v923_v34, %v2615_v14  ;;  %v925_v48 = vmul.f32 %v923_v34, %v2617_v15  ;;  %v898_v49 = vmax.f32 %v896_v43, 0.0  ;;  %v899_v50 = vmax.f32 %v897_v44, 0.0  ;;  %s2996_s13 = sld [smem:[#allocation12 + $0x8f]] }
  0xf9   : > { %v920_v12 = vadd.f32 %v918_v45, %v914_v37  ;;  %v921_v51 = vadd.f32 %v919_v46, %v915_v38  ;;  %v873_v13 = vadd.f32 %v867_v39, %v838_v27  ;;  %v874_v52 = vadd.f32 %v868_v40, %v839_v28 }
  0xfa   : > { %v875_v53 = vadd.f32 %v871_v41, %v840_v29  ;;  %v948_v54 = vstv %s2950_s30  ;;  %v876_v55 = vadd.f32 %v872_v42, %v841_v31  ;;  %v930_v56 = vstv %s2944_s22  ;;  %s3006_s22 = sld [smem:[#allocation9 + %s998_s12]]  ;;  %s1068_s12 = sadd.s32 18, %s2592_s8 }
  0xfb   : > { %v952_v57 = vstv %s2952_s10  ;;  %v958_v58 = vstv %s2955_s9  ;;  %v926_v59 = vadd.f32 %v924_v47, %v920_v12  ;;  %v927_v60 = vadd.f32 %v925_v48, %v921_v51  ;;  %s3012_s30 = sld [smem:[#allocation10 + $0x880]] }
  0xfc   : > { %v949_v62 = vmul.f32 %v2987_v61, %v948_v54  ;;  %v950_v0 = vmul.f32 %v2991_v63, %v948_v54  ;;  %v902_v1 = vmul.f32 %v901_v8, %v898_v49  ;;  %v903_v2 = vmul.f32 %v901_v8, %v899_v50  ;;  %s3014_s10 = sld [smem:[#allocation10 + $0x881]] }
  0xfd   : > { %v906_v3 = vmul.f32 %v905_v9, %v898_v49  ;;  %v907_v4 = vmul.f32 %v905_v9, %v899_v50  ;;  %v931_v5 = vadd.f32 %v930_v56, %v926_v59  ;;  %v932_v6 = vadd.f32 %v930_v56, %v927_v60  ;;  %s3017_s9 = sld [smem:[#allocation10 + $0x882]] }
  0xfe   : > { %v953_v10 = vmul.f32 %v2999_v7, %v952_v57  ;;  %v954_v16 = vmul.f32 %v3003_v11, %v952_v57  ;;  %v936_v17 = vstv %s2963_s21  ;;  %v940_v18 = vstv %s2965_s16  ;;  %s3025_s21 = sld [smem:[#allocation12 + $0x10]] }
  0xff   : > { %v959_v19 = vmul.f32 %v958_v58, %v2615_v14  ;;  %v960_v20 = vmul.f32 %v958_v58, %v2617_v15  ;;  %v933_v21 = vmax.f32 %v931_v5, 0.0  ;;  %v934_v22 = vmax.f32 %v932_v6, 0.0  ;;  %s3027_s16 = sld [smem:[#allocation12 + $0x90]] }
 0x100   : > { %v955_v23 = vadd.f32 %v953_v10, %v949_v62  ;;  %v956_v24 = vadd.f32 %v954_v16, %v950_v0  ;;  %v908_v25 = vadd.f32 %v902_v1, %v873_v13  ;;  %v909_v26 = vadd.f32 %v903_v2, %v874_v52 }
 0x101   : > { %v910_v27 = vadd.f32 %v906_v3, %v875_v53  ;;  %v983_v28 = vstv %s2975_s4  ;;  %v911_v29 = vadd.f32 %v907_v4, %v876_v55  ;;  %v965_v30 = vstv %s2969_s3  ;;  %s3031_s3 = sld [smem:[#allocation9 + %s1033_s19]]  ;;  %s1103_s19 = sadd.s32 19, %s2592_s8 }
 0x102   : > { %v987_v31 = vstv %s2977_s1  ;;  %v993_v32 = vstv %s2980_s2  ;;  %v961_v33 = vadd.f32 %v959_v19, %v955_v23  ;;  %v962_v34 = vadd.f32 %v960_v20, %v956_v24  ;;  %s3037_s4 = sld [smem:[#allocation10 + $0x900]] }
 0x103   : > { %v984_v35 = vmul.f32 %v2987_v61, %v983_v28  ;;  %v985_v36 = vmul.f32 %v2991_v63, %v983_v28  ;;  %v937_v37 = vmul.f32 %v936_v17, %v933_v21  ;;  %v938_v38 = vmul.f32 %v936_v17, %v934_v22  ;;  %s3039_s1 = sld [smem:[#allocation10 + $0x901]] }
 0x104   : > { %v941_v39 = vmul.f32 %v940_v18, %v933_v21  ;;  %v942_v40 = vmul.f32 %v940_v18, %v934_v22  ;;  %v966_v41 = vadd.f32 %v965_v30, %v961_v33  ;;  %v967_v42 = vadd.f32 %v965_v30, %v962_v34  ;;  %s3042_s2 = sld [smem:[#allocation10 + $0x902]] }
 0x105   : > { %v988_v43 = vmul.f32 %v2999_v7, %v987_v31  ;;  %v989_v44 = vmul.f32 %v3003_v11, %v987_v31  ;;  %v971_v45 = vstv %s2994_s11  ;;  %v975_v46 = vstv %s2996_s13  ;;  %s3050_s11 = sld [smem:[#allocation12 + $0x11]] }
 0x106   : > { %v994_v8 = vmul.f32 %v993_v32, %v2615_v14  ;;  %v995_v9 = vmul.f32 %v993_v32, %v2617_v15  ;;  %v968_v47 = vmax.f32 %v966_v41, 0.0  ;;  %v969_v48 = vmax.f32 %v967_v42, 0.0  ;;  %s3052_s13 = sld [smem:[#allocation12 + $0x91]] }
 0x107   : > { %v990_v49 = vadd.f32 %v988_v43, %v984_v35  ;;  %v991_v50 = vadd.f32 %v989_v44, %v985_v36  ;;  %v943_v12 = vadd.f32 %v937_v37, %v908_v25  ;;  %v944_v51 = vadd.f32 %v938_v38, %v909_v26 }
 0x108   : > { %v945_v13 = vadd.f32 %v941_v39, %v910_v27  ;;  %v1018_v52 = vstv %s3012_s30  ;;  %v946_v53 = vadd.f32 %v942_v40, %v911_v29  ;;  %v1000_v54 = vstv %s3006_s22  ;;  %s3056_s22 = sld [smem:[#allocation9 + %s1068_s12]]  ;;  %s1138_s12 = sadd.s32 20, %s2592_s8 }
 0x109   : > { %v1022_v55 = vstv %s3014_s10  ;;  %v1028_v56 = vstv %s3017_s9  ;;  %v996_v57 = vadd.f32 %v994_v8, %v990_v49  ;;  %v997_v58 = vadd.f32 %v995_v9, %v991_v50  ;;  %s3062_s30 = sld [smem:[#allocation10 + $0x980]] }
 0x10a   : > { %v1019_v59 = vmul.f32 %v2987_v61, %v1018_v52  ;;  %v1020_v60 = vmul.f32 %v2991_v63, %v1018_v52  ;;  %v972_v62 = vmul.f32 %v971_v45, %v968_v47  ;;  %v973_v0 = vmul.f32 %v971_v45, %v969_v48  ;;  %s3064_s10 = sld [smem:[#allocation10 + $0x981]] }
 0x10b   : > { %v976_v1 = vmul.f32 %v975_v46, %v968_v47  ;;  %v977_v2 = vmul.f32 %v975_v46, %v969_v48  ;;  %v1001_v3 = vadd.f32 %v1000_v54, %v996_v57  ;;  %v1002_v4 = vadd.f32 %v1000_v54, %v997_v58  ;;  %s3067_s9 = sld [smem:[#allocation10 + $0x982]] }
 0x10c   : > { %v1023_v5 = vmul.f32 %v2999_v7, %v1022_v55  ;;  %v1024_v6 = vmul.f32 %v3003_v11, %v1022_v55  ;;  %v1006_v10 = vstv %s3025_s21  ;;  %v1010_v16 = vstv %s3027_s16  ;;  %s3075_s21 = sld [smem:[#allocation12 + $0x12]] }
 0x10d   : > { %v1029_v17 = vmul.f32 %v1028_v56, %v2615_v14  ;;  %v1030_v18 = vmul.f32 %v1028_v56, %v2617_v15  ;;  %v1003_v19 = vmax.f32 %v1001_v3, 0.0  ;;  %v1004_v20 = vmax.f32 %v1002_v4, 0.0  ;;  %s3077_s16 = sld [smem:[#allocation12 + $0x92]] }
 0x10e   : > { %v1025_v21 = vadd.f32 %v1023_v5, %v1019_v59  ;;  %v1026_v22 = vadd.f32 %v1024_v6, %v1020_v60  ;;  %v978_v23 = vadd.f32 %v972_v62, %v943_v12  ;;  %v979_v24 = vadd.f32 %v973_v0, %v944_v51 }
 0x10f   : > { %v980_v25 = vadd.f32 %v976_v1, %v945_v13  ;;  %v1053_v26 = vstv %s3037_s4  ;;  %v981_v27 = vadd.f32 %v977_v2, %v946_v53  ;;  %v1035_v28 = vstv %s3031_s3  ;;  %s3081_s3 = sld [smem:[#allocation9 + %s1103_s19]]  ;;  %s1173_s19 = sadd.s32 21, %s2592_s8 }
 0x110   : > { %v1057_v29 = vstv %s3039_s1  ;;  %v1063_v30 = vstv %s3042_s2  ;;  %v1031_v31 = vadd.f32 %v1029_v17, %v1025_v21  ;;  %v1032_v32 = vadd.f32 %v1030_v18, %v1026_v22  ;;  %s3087_s4 = sld [smem:[#allocation10 + $0xa00]] }
 0x111   : > { %v1054_v33 = vmul.f32 %v2987_v61, %v1053_v26  ;;  %v1055_v34 = vmul.f32 %v2991_v63, %v1053_v26  ;;  %v1007_v35 = vmul.f32 %v1006_v10, %v1003_v19  ;;  %v1008_v36 = vmul.f32 %v1006_v10, %v1004_v20  ;;  %s3089_s1 = sld [smem:[#allocation10 + $0xa01]] }
 0x112   : > { %v1011_v37 = vmul.f32 %v1010_v16, %v1003_v19  ;;  %v1012_v38 = vmul.f32 %v1010_v16, %v1004_v20  ;;  %v1036_v39 = vadd.f32 %v1035_v28, %v1031_v31  ;;  %v1037_v40 = vadd.f32 %v1035_v28, %v1032_v32  ;;  %s3092_s2 = sld [smem:[#allocation10 + $0xa02]] }
 0x113   : > { %v1058_v41 = vmul.f32 %v2999_v7, %v1057_v29  ;;  %v1059_v42 = vmul.f32 %v3003_v11, %v1057_v29  ;;  %v1041_v43 = vstv %s3050_s11  ;;  %v1045_v44 = vstv %s3052_s13  ;;  %s3100_s11 = sld [smem:[#allocation12 + $0x13]] }
 0x114   : > { %v1064_v45 = vmul.f32 %v1063_v30, %v2615_v14  ;;  %v1065_v46 = vmul.f32 %v1063_v30, %v2617_v15  ;;  %v1038_v8 = vmax.f32 %v1036_v39, 0.0  ;;  %v1039_v9 = vmax.f32 %v1037_v40, 0.0  ;;  %s3102_s13 = sld [smem:[#allocation12 + $0x93]] }
 0x115   : > { %v1060_v47 = vadd.f32 %v1058_v41, %v1054_v33  ;;  %v1061_v48 = vadd.f32 %v1059_v42, %v1055_v34  ;;  %v1013_v49 = vadd.f32 %v1007_v35, %v978_v23  ;;  %v1014_v50 = vadd.f32 %v1008_v36, %v979_v24 }
 0x116   : > { %v1015_v12 = vadd.f32 %v1011_v37, %v980_v25  ;;  %v1088_v51 = vstv %s3062_s30  ;;  %v1016_v13 = vadd.f32 %v1012_v38, %v981_v27  ;;  %v1070_v52 = vstv %s3056_s22  ;;  %s3106_s22 = sld [smem:[#allocation9 + %s1138_s12]]  ;;  %s1208_s12 = sadd.s32 22, %s2592_s8 }
 0x117   : > { %v1092_v53 = vstv %s3064_s10  ;;  %v1098_v54 = vstv %s3067_s9  ;;  %v1066_v55 = vadd.f32 %v1064_v45, %v1060_v47  ;;  %v1067_v56 = vadd.f32 %v1065_v46, %v1061_v48  ;;  %s3112_s30 = sld [smem:[#allocation10 + $0xa80]] }
 0x118   : > { %v1089_v57 = vmul.f32 %v2987_v61, %v1088_v51  ;;  %v1090_v58 = vmul.f32 %v2991_v63, %v1088_v51  ;;  %v1042_v59 = vmul.f32 %v1041_v43, %v1038_v8  ;;  %v1043_v60 = vmul.f32 %v1041_v43, %v1039_v9  ;;  %s3114_s10 = sld [smem:[#allocation10 + $0xa81]] }
 0x119   : > { %v1046_v62 = vmul.f32 %v1045_v44, %v1038_v8  ;;  %v1047_v0 = vmul.f32 %v1045_v44, %v1039_v9  ;;  %v1071_v1 = vadd.f32 %v1070_v52, %v1066_v55  ;;  %v1072_v2 = vadd.f32 %v1070_v52, %v1067_v56  ;;  %s3117_s9 = sld [smem:[#allocation10 + $0xa82]] }
 0x11a   : > { %v1093_v3 = vmul.f32 %v2999_v7, %v1092_v53  ;;  %v1094_v4 = vmul.f32 %v3003_v11, %v1092_v53  ;;  %v1076_v5 = vstv %s3075_s21  ;;  %v1080_v6 = vstv %s3077_s16  ;;  %s3125_s21 = sld [smem:[#allocation12 + $0x14]] }
 0x11b   : > { %v1099_v10 = vmul.f32 %v1098_v54, %v2615_v14  ;;  %v1100_v16 = vmul.f32 %v1098_v54, %v2617_v15  ;;  %v1073_v17 = vmax.f32 %v1071_v1, 0.0  ;;  %v1074_v18 = vmax.f32 %v1072_v2, 0.0  ;;  %s3127_s16 = sld [smem:[#allocation12 + $0x94]] }
 0x11c   : > { %v1095_v19 = vadd.f32 %v1093_v3, %v1089_v57  ;;  %v1096_v20 = vadd.f32 %v1094_v4, %v1090_v58  ;;  %v1048_v21 = vadd.f32 %v1042_v59, %v1013_v49  ;;  %v1049_v22 = vadd.f32 %v1043_v60, %v1014_v50 }
 0x11d   : > { %v1050_v23 = vadd.f32 %v1046_v62, %v1015_v12  ;;  %v1123_v24 = vstv %s3087_s4  ;;  %v1051_v25 = vadd.f32 %v1047_v0, %v1016_v13  ;;  %v1105_v26 = vstv %s3081_s3  ;;  %s3131_s3 = sld [smem:[#allocation9 + %s1173_s19]]  ;;  %s1243_s19 = sadd.s32 23, %s2592_s8 }
 0x11e   : > { %v1127_v27 = vstv %s3089_s1  ;;  %v1133_v28 = vstv %s3092_s2  ;;  %v1101_v29 = vadd.f32 %v1099_v10, %v1095_v19  ;;  %v1102_v30 = vadd.f32 %v1100_v16, %v1096_v20  ;;  %s3137_s4 = sld [smem:[#allocation10 + $0xb00]] }
 0x11f   : > { %v1124_v31 = vmul.f32 %v2987_v61, %v1123_v24  ;;  %v1125_v32 = vmul.f32 %v2991_v63, %v1123_v24  ;;  %v1077_v33 = vmul.f32 %v1076_v5, %v1073_v17  ;;  %v1078_v34 = vmul.f32 %v1076_v5, %v1074_v18  ;;  %s3139_s1 = sld [smem:[#allocation10 + $0xb01]] }
 0x120   : > { %v1081_v35 = vmul.f32 %v1080_v6, %v1073_v17  ;;  %v1082_v36 = vmul.f32 %v1080_v6, %v1074_v18  ;;  %v1106_v37 = vadd.f32 %v1105_v26, %v1101_v29  ;;  %v1107_v38 = vadd.f32 %v1105_v26, %v1102_v30  ;;  %s3142_s2 = sld [smem:[#allocation10 + $0xb02]] }
 0x121   : > { %v1128_v39 = vmul.f32 %v2999_v7, %v1127_v27  ;;  %v1129_v40 = vmul.f32 %v3003_v11, %v1127_v27  ;;  %v1111_v41 = vstv %s3100_s11  ;;  %v1115_v42 = vstv %s3102_s13  ;;  %s3150_s11 = sld [smem:[#allocation12 + $0x15]] }
 0x122   : > { %v1134_v43 = vmul.f32 %v1133_v28, %v2615_v14  ;;  %v1135_v44 = vmul.f32 %v1133_v28, %v2617_v15  ;;  %v1108_v45 = vmax.f32 %v1106_v37, 0.0  ;;  %v1109_v46 = vmax.f32 %v1107_v38, 0.0  ;;  %s3152_s13 = sld [smem:[#allocation12 + $0x95]] }
 0x123   : > { %v1130_v8 = vadd.f32 %v1128_v39, %v1124_v31  ;;  %v1131_v9 = vadd.f32 %v1129_v40, %v1125_v32  ;;  %v1083_v47 = vadd.f32 %v1077_v33, %v1048_v21  ;;  %v1084_v48 = vadd.f32 %v1078_v34, %v1049_v22 }
 0x124   : > { %v1085_v49 = vadd.f32 %v1081_v35, %v1050_v23  ;;  %v1158_v50 = vstv %s3112_s30  ;;  %v1086_v12 = vadd.f32 %v1082_v36, %v1051_v25  ;;  %v1140_v51 = vstv %s3106_s22  ;;  %s3156_s22 = sld [smem:[#allocation9 + %s1208_s12]]  ;;  %s1278_s12 = sadd.s32 24, %s2592_s8 }
 0x125   : > { %v1162_v13 = vstv %s3114_s10  ;;  %v1168_v52 = vstv %s3117_s9  ;;  %v1136_v53 = vadd.f32 %v1134_v43, %v1130_v8  ;;  %v1137_v54 = vadd.f32 %v1135_v44, %v1131_v9  ;;  %s3162_s30 = sld [smem:[#allocation10 + $0xb80]] }
 0x126   : > { %v1159_v55 = vmul.f32 %v2987_v61, %v1158_v50  ;;  %v1160_v56 = vmul.f32 %v2991_v63, %v1158_v50  ;;  %v1112_v57 = vmul.f32 %v1111_v41, %v1108_v45  ;;  %v1113_v58 = vmul.f32 %v1111_v41, %v1109_v46  ;;  %s3164_s10 = sld [smem:[#allocation10 + $0xb81]] }
 0x127   : > { %v1116_v59 = vmul.f32 %v1115_v42, %v1108_v45  ;;  %v1117_v60 = vmul.f32 %v1115_v42, %v1109_v46  ;;  %v1141_v62 = vadd.f32 %v1140_v51, %v1136_v53  ;;  %v1142_v0 = vadd.f32 %v1140_v51, %v1137_v54  ;;  %s3167_s9 = sld [smem:[#allocation10 + $0xb82]] }
 0x128   : > { %v1163_v1 = vmul.f32 %v2999_v7, %v1162_v13  ;;  %v1164_v2 = vmul.f32 %v3003_v11, %v1162_v13  ;;  %v1146_v3 = vstv %s3125_s21  ;;  %v1150_v4 = vstv %s3127_s16  ;;  %s3175_s21 = sld [smem:[#allocation12 + $0x16]] }
 0x129   : > { %v1169_v5 = vmul.f32 %v1168_v52, %v2615_v14  ;;  %v1170_v6 = vmul.f32 %v1168_v52, %v2617_v15  ;;  %v1143_v10 = vmax.f32 %v1141_v62, 0.0  ;;  %v1144_v16 = vmax.f32 %v1142_v0, 0.0  ;;  %s3177_s16 = sld [smem:[#allocation12 + $0x96]] }
 0x12a   : > { %v1165_v17 = vadd.f32 %v1163_v1, %v1159_v55  ;;  %v1166_v18 = vadd.f32 %v1164_v2, %v1160_v56  ;;  %v1118_v19 = vadd.f32 %v1112_v57, %v1083_v47  ;;  %v1119_v20 = vadd.f32 %v1113_v58, %v1084_v48 }
 0x12b   : > { %v1120_v21 = vadd.f32 %v1116_v59, %v1085_v49  ;;  %v1193_v22 = vstv %s3137_s4  ;;  %v1121_v23 = vadd.f32 %v1117_v60, %v1086_v12  ;;  %v1175_v24 = vstv %s3131_s3  ;;  %s3181_s3 = sld [smem:[#allocation9 + %s1243_s19]]  ;;  %s1313_s19 = sadd.s32 25, %s2592_s8 }
 0x12c   : > { %v1197_v25 = vstv %s3139_s1  ;;  %v1203_v26 = vstv %s3142_s2  ;;  %v1171_v27 = vadd.f32 %v1169_v5, %v1165_v17  ;;  %v1172_v28 = vadd.f32 %v1170_v6, %v1166_v18  ;;  %s3187_s4 = sld [smem:[#allocation10 + $0xc00]] }
 0x12d   : > { %v1194_v29 = vmul.f32 %v2987_v61, %v1193_v22  ;;  %v1195_v30 = vmul.f32 %v2991_v63, %v1193_v22  ;;  %v1147_v31 = vmul.f32 %v1146_v3, %v1143_v10  ;;  %v1148_v32 = vmul.f32 %v1146_v3, %v1144_v16  ;;  %s3189_s1 = sld [smem:[#allocation10 + $0xc01]] }
 0x12e   : > { %v1151_v33 = vmul.f32 %v1150_v4, %v1143_v10  ;;  %v1152_v34 = vmul.f32 %v1150_v4, %v1144_v16  ;;  %v1176_v35 = vadd.f32 %v1175_v24, %v1171_v27  ;;  %v1177_v36 = vadd.f32 %v1175_v24, %v1172_v28  ;;  %s3192_s2 = sld [smem:[#allocation10 + $0xc02]] }
 0x12f   : > { %v1198_v37 = vmul.f32 %v2999_v7, %v1197_v25  ;;  %v1199_v38 = vmul.f32 %v3003_v11, %v1197_v25  ;;  %v1181_v39 = vstv %s3150_s11  ;;  %v1185_v40 = vstv %s3152_s13  ;;  %s3200_s11 = sld [smem:[#allocation12 + $0x17]] }
 0x130   : > { %v1204_v41 = vmul.f32 %v1203_v26, %v2615_v14  ;;  %v1205_v42 = vmul.f32 %v1203_v26, %v2617_v15  ;;  %v1178_v43 = vmax.f32 %v1176_v35, 0.0  ;;  %v1179_v44 = vmax.f32 %v1177_v36, 0.0  ;;  %s3202_s13 = sld [smem:[#allocation12 + $0x97]] }
 0x131   : > { %v1200_v45 = vadd.f32 %v1198_v37, %v1194_v29  ;;  %v1201_v46 = vadd.f32 %v1199_v38, %v1195_v30  ;;  %v1153_v8 = vadd.f32 %v1147_v31, %v1118_v19  ;;  %v1154_v9 = vadd.f32 %v1148_v32, %v1119_v20 }
 0x132   : > { %v1155_v47 = vadd.f32 %v1151_v33, %v1120_v21  ;;  %v1228_v48 = vstv %s3162_s30  ;;  %v1156_v49 = vadd.f32 %v1152_v34, %v1121_v23  ;;  %v1210_v50 = vstv %s3156_s22  ;;  %s3206_s22 = sld [smem:[#allocation9 + %s1278_s12]]  ;;  %s1348_s12 = sadd.s32 26, %s2592_s8 }
 0x133   : > { %v1232_v12 = vstv %s3164_s10  ;;  %v1238_v51 = vstv %s3167_s9  ;;  %v1206_v13 = vadd.f32 %v1204_v41, %v1200_v45  ;;  %v1207_v52 = vadd.f32 %v1205_v42, %v1201_v46  ;;  %s3212_s30 = sld [smem:[#allocation10 + $0xc80]] }
 0x134   : > { %v1229_v53 = vmul.f32 %v2987_v61, %v1228_v48  ;;  %v1230_v54 = vmul.f32 %v2991_v63, %v1228_v48  ;;  %v1182_v55 = vmul.f32 %v1181_v39, %v1178_v43  ;;  %v1183_v56 = vmul.f32 %v1181_v39, %v1179_v44  ;;  %s3214_s10 = sld [smem:[#allocation10 + $0xc81]] }
 0x135   : > { %v1186_v57 = vmul.f32 %v1185_v40, %v1178_v43  ;;  %v1187_v58 = vmul.f32 %v1185_v40, %v1179_v44  ;;  %v1211_v59 = vadd.f32 %v1210_v50, %v1206_v13  ;;  %v1212_v60 = vadd.f32 %v1210_v50, %v1207_v52  ;;  %s3217_s9 = sld [smem:[#allocation10 + $0xc82]] }
 0x136   : > { %v1233_v62 = vmul.f32 %v2999_v7, %v1232_v12  ;;  %v1234_v0 = vmul.f32 %v3003_v11, %v1232_v12  ;;  %v1216_v1 = vstv %s3175_s21  ;;  %v1220_v2 = vstv %s3177_s16  ;;  %s3225_s21 = sld [smem:[#allocation12 + $0x18]] }
 0x137   : > { %v1239_v3 = vmul.f32 %v1238_v51, %v2615_v14  ;;  %v1240_v4 = vmul.f32 %v1238_v51, %v2617_v15  ;;  %v1213_v5 = vmax.f32 %v1211_v59, 0.0  ;;  %v1214_v6 = vmax.f32 %v1212_v60, 0.0  ;;  %s3227_s16 = sld [smem:[#allocation12 + $0x98]] }
 0x138   : > { %v1235_v10 = vadd.f32 %v1233_v62, %v1229_v53  ;;  %v1236_v16 = vadd.f32 %v1234_v0, %v1230_v54  ;;  %v1188_v17 = vadd.f32 %v1182_v55, %v1153_v8  ;;  %v1189_v18 = vadd.f32 %v1183_v56, %v1154_v9 }
 0x139   : > { %v1190_v19 = vadd.f32 %v1186_v57, %v1155_v47  ;;  %v1263_v20 = vstv %s3187_s4  ;;  %v1191_v21 = vadd.f32 %v1187_v58, %v1156_v49  ;;  %v1245_v22 = vstv %s3181_s3  ;;  %s3231_s3 = sld [smem:[#allocation9 + %s1313_s19]]  ;;  %s1383_s19 = sadd.s32 27, %s2592_s8 }
 0x13a   : > { %v1267_v23 = vstv %s3189_s1  ;;  %v1273_v24 = vstv %s3192_s2  ;;  %v1241_v25 = vadd.f32 %v1239_v3, %v1235_v10  ;;  %v1242_v26 = vadd.f32 %v1240_v4, %v1236_v16  ;;  %s3237_s4 = sld [smem:[#allocation10 + $0xd00]] }
 0x13b   : > { %v1264_v27 = vmul.f32 %v2987_v61, %v1263_v20  ;;  %v1265_v28 = vmul.f32 %v2991_v63, %v1263_v20  ;;  %v1217_v29 = vmul.f32 %v1216_v1, %v1213_v5  ;;  %v1218_v30 = vmul.f32 %v1216_v1, %v1214_v6  ;;  %s3239_s1 = sld [smem:[#allocation10 + $0xd01]] }
 0x13c   : > { %v1221_v31 = vmul.f32 %v1220_v2, %v1213_v5  ;;  %v1222_v32 = vmul.f32 %v1220_v2, %v1214_v6  ;;  %v1246_v33 = vadd.f32 %v1245_v22, %v1241_v25  ;;  %v1247_v34 = vadd.f32 %v1245_v22, %v1242_v26  ;;  %s3242_s2 = sld [smem:[#allocation10 + $0xd02]] }
 0x13d   : > { %v1268_v35 = vmul.f32 %v2999_v7, %v1267_v23  ;;  %v1269_v36 = vmul.f32 %v3003_v11, %v1267_v23  ;;  %v1251_v37 = vstv %s3200_s11  ;;  %v1255_v38 = vstv %s3202_s13  ;;  %s3250_s11 = sld [smem:[#allocation12 + $0x19]] }
 0x13e   : > { %v1274_v39 = vmul.f32 %v1273_v24, %v2615_v14  ;;  %v1275_v40 = vmul.f32 %v1273_v24, %v2617_v15  ;;  %v1248_v41 = vmax.f32 %v1246_v33, 0.0  ;;  %v1249_v42 = vmax.f32 %v1247_v34, 0.0  ;;  %s3252_s13 = sld [smem:[#allocation12 + $0x99]] }
 0x13f   : > { %v1270_v43 = vadd.f32 %v1268_v35, %v1264_v27  ;;  %v1271_v44 = vadd.f32 %v1269_v36, %v1265_v28  ;;  %v1223_v45 = vadd.f32 %v1217_v29, %v1188_v17  ;;  %v1224_v46 = vadd.f32 %v1218_v30, %v1189_v18 }
 0x140   : > { %v1225_v8 = vadd.f32 %v1221_v31, %v1190_v19  ;;  %v1298_v9 = vstv %s3212_s30  ;;  %v1226_v47 = vadd.f32 %v1222_v32, %v1191_v21  ;;  %v1280_v48 = vstv %s3206_s22  ;;  %s3256_s22 = sld [smem:[#allocation9 + %s1348_s12]]  ;;  %s1418_s12 = sadd.s32 28, %s2592_s8 }
 0x141   : > { %v1302_v49 = vstv %s3214_s10  ;;  %v1308_v50 = vstv %s3217_s9  ;;  %v1276_v12 = vadd.f32 %v1274_v39, %v1270_v43  ;;  %v1277_v51 = vadd.f32 %v1275_v40, %v1271_v44  ;;  %s3262_s30 = sld [smem:[#allocation10 + $0xd80]] }
 0x142   : > { %v1299_v13 = vmul.f32 %v2987_v61, %v1298_v9  ;;  %v1300_v52 = vmul.f32 %v2991_v63, %v1298_v9  ;;  %v1252_v53 = vmul.f32 %v1251_v37, %v1248_v41  ;;  %v1253_v54 = vmul.f32 %v1251_v37, %v1249_v42  ;;  %s3264_s10 = sld [smem:[#allocation10 + $0xd81]] }
 0x143   : > { %v1256_v55 = vmul.f32 %v1255_v38, %v1248_v41  ;;  %v1257_v56 = vmul.f32 %v1255_v38, %v1249_v42  ;;  %v1281_v57 = vadd.f32 %v1280_v48, %v1276_v12  ;;  %v1282_v58 = vadd.f32 %v1280_v48, %v1277_v51  ;;  %s3267_s9 = sld [smem:[#allocation10 + $0xd82]] }
 0x144   : > { %v1303_v59 = vmul.f32 %v2999_v7, %v1302_v49  ;;  %v1304_v60 = vmul.f32 %v3003_v11, %v1302_v49  ;;  %v1286_v62 = vstv %s3225_s21  ;;  %v1290_v0 = vstv %s3227_s16  ;;  %s3275_s21 = sld [smem:[#allocation12 + $0x1a]] }
 0x145   : > { %v1309_v1 = vmul.f32 %v1308_v50, %v2615_v14  ;;  %v1310_v2 = vmul.f32 %v1308_v50, %v2617_v15  ;;  %v1283_v3 = vmax.f32 %v1281_v57, 0.0  ;;  %v1284_v4 = vmax.f32 %v1282_v58, 0.0  ;;  %s3277_s16 = sld [smem:[#allocation12 + $0x9a]] }
 0x146   : > { %v1305_v5 = vadd.f32 %v1303_v59, %v1299_v13  ;;  %v1306_v6 = vadd.f32 %v1304_v60, %v1300_v52  ;;  %v1258_v10 = vadd.f32 %v1252_v53, %v1223_v45  ;;  %v1259_v16 = vadd.f32 %v1253_v54, %v1224_v46 }
 0x147   : > { %v1260_v17 = vadd.f32 %v1256_v55, %v1225_v8  ;;  %v1333_v18 = vstv %s3237_s4  ;;  %v1261_v19 = vadd.f32 %v1257_v56, %v1226_v47  ;;  %v1315_v20 = vstv %s3231_s3  ;;  %s3281_s3 = sld [smem:[#allocation9 + %s1383_s19]]  ;;  %s1453_s19 = sadd.s32 29, %s2592_s8 }
 0x148   : > { %v1337_v21 = vstv %s3239_s1  ;;  %v1343_v22 = vstv %s3242_s2  ;;  %v1311_v23 = vadd.f32 %v1309_v1, %v1305_v5  ;;  %v1312_v24 = vadd.f32 %v1310_v2, %v1306_v6  ;;  %s3287_s4 = sld [smem:[#allocation10 + $0xe00]] }
 0x149   : > { %v1334_v25 = vmul.f32 %v2987_v61, %v1333_v18  ;;  %v1335_v26 = vmul.f32 %v2991_v63, %v1333_v18  ;;  %v1287_v27 = vmul.f32 %v1286_v62, %v1283_v3  ;;  %v1288_v28 = vmul.f32 %v1286_v62, %v1284_v4  ;;  %s3289_s1 = sld [smem:[#allocation10 + $0xe01]] }
 0x14a   : > { %v1291_v29 = vmul.f32 %v1290_v0, %v1283_v3  ;;  %v1292_v30 = vmul.f32 %v1290_v0, %v1284_v4  ;;  %v1316_v31 = vadd.f32 %v1315_v20, %v1311_v23  ;;  %v1317_v32 = vadd.f32 %v1315_v20, %v1312_v24  ;;  %s3292_s2 = sld [smem:[#allocation10 + $0xe02]] }
 0x14b   : > { %v1338_v33 = vmul.f32 %v2999_v7, %v1337_v21  ;;  %v1339_v34 = vmul.f32 %v3003_v11, %v1337_v21  ;;  %v1321_v35 = vstv %s3250_s11  ;;  %v1325_v36 = vstv %s3252_s13  ;;  %s3300_s11 = sld [smem:[#allocation12 + $0x1b]] }
 0x14c   : > { %v1344_v37 = vmul.f32 %v1343_v22, %v2615_v14  ;;  %v1345_v38 = vmul.f32 %v1343_v22, %v2617_v15  ;;  %v1318_v39 = vmax.f32 %v1316_v31, 0.0  ;;  %v1319_v40 = vmax.f32 %v1317_v32, 0.0  ;;  %s3302_s13 = sld [smem:[#allocation12 + $0x9b]] }
 0x14d   : > { %v1340_v41 = vadd.f32 %v1338_v33, %v1334_v25  ;;  %v1341_v42 = vadd.f32 %v1339_v34, %v1335_v26  ;;  %v1293_v43 = vadd.f32 %v1287_v27, %v1258_v10  ;;  %v1294_v44 = vadd.f32 %v1288_v28, %v1259_v16 }
 0x14e   : > { %v1295_v45 = vadd.f32 %v1291_v29, %v1260_v17  ;;  %v1368_v46 = vstv %s3262_s30  ;;  %v1296_v8 = vadd.f32 %v1292_v30, %v1261_v19  ;;  %v1350_v9 = vstv %s3256_s22  ;;  %s3306_s22 = sld [smem:[#allocation9 + %s1418_s12]]  ;;  %s1488_s12 = sadd.s32 30, %s2592_s8 }
 0x14f   : > { %v1372_v47 = vstv %s3264_s10  ;;  %v1378_v48 = vstv %s3267_s9  ;;  %v1346_v49 = vadd.f32 %v1344_v37, %v1340_v41  ;;  %v1347_v50 = vadd.f32 %v1345_v38, %v1341_v42  ;;  %s3312_s30 = sld [smem:[#allocation10 + $0xe80]] }
 0x150   : > { %v1369_v12 = vmul.f32 %v2987_v61, %v1368_v46  ;;  %v1370_v51 = vmul.f32 %v2991_v63, %v1368_v46  ;;  %v1322_v13 = vmul.f32 %v1321_v35, %v1318_v39  ;;  %v1323_v52 = vmul.f32 %v1321_v35, %v1319_v40  ;;  %s3314_s10 = sld [smem:[#allocation10 + $0xe81]] }
 0x151   : > { %v1326_v53 = vmul.f32 %v1325_v36, %v1318_v39  ;;  %v1327_v54 = vmul.f32 %v1325_v36, %v1319_v40  ;;  %v1351_v55 = vadd.f32 %v1350_v9, %v1346_v49  ;;  %v1352_v56 = vadd.f32 %v1350_v9, %v1347_v50  ;;  %s3317_s9 = sld [smem:[#allocation10 + $0xe82]] }
 0x152   : > { %v1373_v57 = vmul.f32 %v2999_v7, %v1372_v47  ;;  %v1374_v58 = vmul.f32 %v3003_v11, %v1372_v47  ;;  %v1356_v59 = vstv %s3275_s21  ;;  %v1360_v60 = vstv %s3277_s16  ;;  %s3325_s21 = sld [smem:[#allocation12 + $0x1c]] }
 0x153   : > { %v1379_v62 = vmul.f32 %v1378_v48, %v2615_v14  ;;  %v1380_v0 = vmul.f32 %v1378_v48, %v2617_v15  ;;  %v1353_v1 = vmax.f32 %v1351_v55, 0.0  ;;  %v1354_v2 = vmax.f32 %v1352_v56, 0.0  ;;  %s3327_s16 = sld [smem:[#allocation12 + $0x9c]] }
 0x154   : > { %v1375_v3 = vadd.f32 %v1373_v57, %v1369_v12  ;;  %v1376_v4 = vadd.f32 %v1374_v58, %v1370_v51  ;;  %v1328_v5 = vadd.f32 %v1322_v13, %v1293_v43  ;;  %v1329_v6 = vadd.f32 %v1323_v52, %v1294_v44 }
 0x155   : > { %v1330_v10 = vadd.f32 %v1326_v53, %v1295_v45  ;;  %v1403_v16 = vstv %s3287_s4  ;;  %v1331_v17 = vadd.f32 %v1327_v54, %v1296_v8  ;;  %v1385_v18 = vstv %s3281_s3  ;;  %s3331_s3 = sld [smem:[#allocation9 + %s1453_s19]] }
 0x156   : > { %v1407_v19 = vstv %s3289_s1  ;;  %v1413_v20 = vstv %s3292_s2  ;;  %v1381_v21 = vadd.f32 %v1379_v62, %v1375_v3  ;;  %v1382_v22 = vadd.f32 %v1380_v0, %v1376_v4  ;;  %s3337_s4 = sld [smem:[#allocation10 + $0xf00]] }
 0x157   : > { %v1404_v23 = vmul.f32 %v2987_v61, %v1403_v16  ;;  %v1405_v24 = vmul.f32 %v2991_v63, %v1403_v16  ;;  %v1357_v25 = vmul.f32 %v1356_v59, %v1353_v1  ;;  %v1358_v26 = vmul.f32 %v1356_v59, %v1354_v2  ;;  %s3339_s1 = sld [smem:[#allocation10 + $0xf01]] }
 0x158   : > { %v1361_v27 = vmul.f32 %v1360_v60, %v1353_v1  ;;  %v1362_v28 = vmul.f32 %v1360_v60, %v1354_v2  ;;  %v1386_v29 = vadd.f32 %v1385_v18, %v1381_v21  ;;  %v1387_v30 = vadd.f32 %v1385_v18, %v1382_v22  ;;  %s3342_s2 = sld [smem:[#allocation10 + $0xf02]] }
 0x159   : > { %v1408_v31 = vmul.f32 %v2999_v7, %v1407_v19  ;;  %v1409_v32 = vmul.f32 %v3003_v11, %v1407_v19  ;;  %v1391_v33 = vstv %s3300_s11  ;;  %v1395_v34 = vstv %s3302_s13  ;;  %s3350_s11 = sld [smem:[#allocation12 + $0x1d]]  ;;  %v3377_v19 = vld [vmem:[%s2565_s15 + $0x18] sm:$0xff] }
 0x15a   : > { %v1414_v35 = vmul.f32 %v1413_v20, %v2615_v14  ;;  %v1415_v36 = vmul.f32 %v1413_v20, %v2617_v15  ;;  %v1388_v37 = vmax.f32 %v1386_v29, 0.0  ;;  %v1389_v38 = vmax.f32 %v1387_v30, 0.0  ;;  %s3352_s13 = sld [smem:[#allocation12 + $0x9d]]  ;;  %v2113_v29 = vld [vmem:[%s2565_s15 + $0x28] sm:$0xff] }
 0x15b   : > { %v1410_v39 = vadd.f32 %v1408_v31, %v1404_v23  ;;  %v1411_v40 = vadd.f32 %v1409_v32, %v1405_v24  ;;  %v1363_v41 = vadd.f32 %v1357_v25, %v1328_v5  ;;  %v1364_v42 = vadd.f32 %v1358_v26, %v1329_v6  ;;  %s3380_s19 = sld [smem:[#allocation12 + $0x1e]] }
 0x15c   : > { %v1365_v43 = vadd.f32 %v1361_v27, %v1330_v10  ;;  %v1438_v44 = vstv %s3312_s30  ;;  %v1366_v45 = vadd.f32 %v1362_v28, %v1331_v17  ;;  %v1420_v46 = vstv %s3306_s22  ;;  %s3356_s22 = sld [smem:[#allocation9 + %s1488_s12]]  ;;  %v3373_v17 = vld [vmem:[%s2565_s15 + $0x10] sm:$0xff]  ;;  %v2112_v27 = vld [vmem:[%s2565_s15 + $0x20] sm:$0xff]  ;;  %s1790_s12 = sshll.u32 %s2561_s17, 4 }
 0x15d   : > { %v1442_v8 = vstv %s3314_s10  ;;  %v1448_v9 = vstv %s3317_s9  ;;  %v1416_v47 = vadd.f32 %v1414_v35, %v1410_v39  ;;  %v1417_v48 = vadd.f32 %v1415_v36, %v1411_v40  ;;  %s3362_s30 = sld [smem:[#allocation10 + $0xf80]] }
 0x15e   : > { %v1439_v49 = vmul.f32 %v2987_v61, %v1438_v44  ;;  %v1440_v50 = vmul.f32 %v2991_v63, %v1438_v44  ;;  %v1392_v12 = vmul.f32 %v1391_v33, %v1388_v37  ;;  %v1393_v51 = vmul.f32 %v1391_v33, %v1389_v38  ;;  %s3364_s10 = sld [smem:[#allocation10 + $0xf81]] }
 0x15f   : > { %v1396_v13 = vmul.f32 %v1395_v34, %v1388_v37  ;;  %v1397_v52 = vmul.f32 %v1395_v34, %v1389_v38  ;;  %v1421_v53 = vadd.f32 %v1420_v46, %v1416_v47  ;;  %v1422_v54 = vadd.f32 %v1420_v46, %v1417_v48  ;;  %s3367_s9 = sld [smem:[#allocation10 + $0xf82]] }
 0x160   : > { %v1443_v55 = vmul.f32 %v2999_v7, %v1442_v8  ;;  %v1444_v56 = vmul.f32 %v3003_v11, %v1442_v8  ;;  %v1426_v61 = vstv %s3325_s21  ;;  %v1430_v63 = vstv %s3327_s16  ;;  %s3384_s21 = sld [smem:[#allocation12 + $0x9e]]  ;;  %s1523_s16 = sadd.s32 31, %s2592_s8 }
 0x161   : > { %v1449_v57 = vmul.f32 %v1448_v9, %v2615_v14  ;;  %v1450_v58 = vmul.f32 %v1448_v9, %v2617_v15  ;;  %v1423_v59 = vmax.f32 %v1421_v53, 0.0  ;;  %v1424_v60 = vmax.f32 %v1422_v54, 0.0  ;;  %s3399_s8 = sld [smem:[#allocation12 + $0x1f]] }
 0x162   : > { %v1445_v7 = vadd.f32 %v1443_v55, %v1439_v49  ;;  %v1446_v62 = vadd.f32 %v1444_v56, %v1440_v50  ;;  %v1398_v11 = vadd.f32 %v1392_v12, %v1363_v41  ;;  %v1399_v0 = vadd.f32 %v1393_v51, %v1364_v42 }
 0x163   : > { %v1400_v1 = vadd.f32 %v1396_v13, %v1365_v43  ;;  %v1473_v2 = vstv %s3337_s4  ;;  %v1401_v3 = vadd.f32 %v1397_v52, %v1366_v45  ;;  %v1455_v4 = vstv %s3331_s3  ;;  %s3392_s3 = sld [smem:[#allocation9 + %s1523_s16]] }
 0x164   : > { %v1477_v5 = vstv %s3339_s1  ;;  %v1483_v6 = vstv %s3342_s2  ;;  %v1451_v10 = vadd.f32 %v1449_v57, %v1445_v7  ;;  %v1452_v16 = vadd.f32 %v1450_v58, %v1446_v62  ;;  %s3401_s4 = sld [smem:[#allocation12 + $0x9f]] }
 0x165   : > { %v1474_v18 = vmul.f32 %v3373_v17, %v1473_v2  ;;  %v1475_v20 = vmul.f32 %v3377_v19, %v1473_v2  ;;  %v1427_v21 = vmul.f32 %v1426_v61, %v1423_v59  ;;  %v1428_v22 = vmul.f32 %v1426_v61, %v1424_v60  ;;  %s3407_s1 = sld [smem:[#allocation13]] }
 0x166   : > { %v1431_v23 = vmul.f32 %v1430_v63, %v1423_v59  ;;  %v1432_v24 = vmul.f32 %v1430_v63, %v1424_v60  ;;  %v1456_v25 = vadd.f32 %v1455_v4, %v1451_v10  ;;  %v1457_v26 = vadd.f32 %v1455_v4, %v1452_v16  ;;  %s3409_s2 = sld [smem:[#allocation13 + $0x1]] }
 0x167   : > { %v1478_v28 = vmul.f32 %v2112_v27, %v1477_v5  ;;  %v1479_v30 = vmul.f32 %v2113_v29, %v1477_v5  ;;  %v1461_v31 = vstv %s3350_s11  ;;  %v1465_v32 = vstv %s3352_s13  ;;  %s3421_s11 = scalar_lea.vmem [#allocation15], %s1790_s12 }
 0x168   : > { %v1484_v33 = vmul.f32 %v1483_v6, %v2615_v14  ;;  %v1485_v34 = vmul.f32 %v1483_v6, %v2617_v15  ;;  %v1458_v35 = vmax.f32 %v1456_v25, 0.0  ;;  %v1459_v36 = vmax.f32 %v1457_v26, 0.0  ;;  %s1622_s13 = sshll.u32 %s3421_s11, 4  ;;  %s3437_s13 = int_to_ptr.vmem [resolvable:$true] %s1622_s13 }
 0x169   : > { %v1480_v37 = vadd.f32 %v1478_v28, %v1474_v18  ;;  %v1481_v38 = vadd.f32 %v1479_v30, %v1475_v20  ;;  %v1433_v39 = vadd.f32 %v1427_v21, %v1398_v11  ;;  %v1434_v40 = vadd.f32 %v1428_v22, %v1399_v0 }
 0x16a   : > { %v1435_v41 = vadd.f32 %v1431_v23, %v1400_v1  ;;  %v1508_v42 = vstv %s3362_s30  ;;  %v1436_v43 = vadd.f32 %v1432_v24, %v1401_v3  ;;  %v1490_v44 = vstv %s3356_s22 }
 0x16b   : > { %v1512_v45 = vstv %s3364_s10  ;;  %v1518_v46 = vstv %s3367_s9  ;;  %v1486_v8 = vadd.f32 %v1484_v33, %v1480_v37  ;;  %v1487_v9 = vadd.f32 %v1485_v34, %v1481_v38  ;;  %s1609_s9 = scalar_lea.sflag [#allocation4], %s2561_s17 }
 0x16c   : > { %v1509_v47 = vmul.f32 %v3373_v17, %v1508_v42  ;;  %v1510_v48 = vmul.f32 %v3377_v19, %v1508_v42  ;;  %v1462_v49 = vmul.f32 %v1461_v31, %v1458_v35  ;;  %v1463_v50 = vmul.f32 %v1461_v31, %v1459_v36 }
 0x16d   : > { %v1466_v12 = vmul.f32 %v1465_v32, %v1458_v35  ;;  %v1467_v51 = vmul.f32 %v1465_v32, %v1459_v36  ;;  %v1491_v13 = vadd.f32 %v1490_v44, %v1486_v8  ;;  %v1492_v52 = vadd.f32 %v1490_v44, %v1487_v9 }
 0x16e   : > { %v1513_v53 = vmul.f32 %v2112_v27, %v1512_v45  ;;  %v1514_v54 = vmul.f32 %v2113_v29, %v1512_v45  ;;  %v1496_v55 = vstv %s3380_s19  ;;  %v1500_v56 = vstv %s3384_s21  ;;  %s2236_s19 = scalar_lea.vmem %s3437_s13, 256 }
 0x16f   : > { %v1519_v61 = vmul.f32 %v1518_v46, %v2615_v14  ;;  %v1520_v63 = vmul.f32 %v1518_v46, %v2617_v15  ;;  %v1493_v57 = vmax.f32 %v1491_v13, 0.0  ;;  %v1494_v58 = vmax.f32 %v1492_v52, 0.0  ;;  %p2237_p9 = scmp.ne.s32.totalorder %s3437_s13, %s2236_s19 }
 0x170   : > { %v1515_v59 = vadd.f32 %v1513_v53, %v1509_v47  ;;  %v1516_v60 = vadd.f32 %v1514_v54, %v1510_v48  ;;  %v1468_v7 = vadd.f32 %v1462_v49, %v1433_v39  ;;  %v1469_v62 = vadd.f32 %v1463_v50, %v1434_v40  ;;  %v2114_v48 = vld [vmem:[%s2565_s15 + $0x30] sm:$0xff]  ;;  %v2115_v50 = vld [vmem:[%s2565_s15 + $0x38] sm:$0xff] }
 0x171   : > { %v1470_v11 = vadd.f32 %v1466_v12, %v1435_v41  ;;  %v1471_v0 = vadd.f32 %v1467_v51, %v1436_v43  ;;  %v1497_v1 = vmul.f32 %v1496_v55, %v1493_v57  ;;  %v1498_v2 = vmul.f32 %v1496_v55, %v1494_v58  ;;  %p2238_p12 = pnand %p2237_p9, %p2528_p11 }
 0x172   : > { %v1525_v3 = vstv %s3392_s3  ;;  %v1501_v14 = vmul.f32 %v1500_v56, %v1493_v57  ;;  %v1502_v4 = vmul.f32 %v1500_v56, %v1494_v58  ;;  %v1521_v15 = vadd.f32 %v1519_v61, %v1515_v59  ;;  %v2116_v57 = vld [vmem:[%s2565_s15] sm:$0xff]  ;;  %v2117_v59 = vld [vmem:[%s2565_s15 + $0x8] sm:$0xff]  ;;  %s1969_s15 = sshll.u32 %s2324_s27, 8  ;;  %s2344_s27 = smov [#allocation15]  }
 0x173   : > { %v1522_v5 = vadd.f32 %v1520_v63, %v1516_v60  ;;  %v1531_v16 = vstv %s3399_s8  ;;  %v1503_v18 = vadd.f32 %v1497_v1, %v1468_v7  ;;  %v1504_v20 = vadd.f32 %v1498_v2, %v1469_v62  ;;  %s3435_s10 = scalar_lea.hbm %s3493_s7, %s1969_s15  ;;  %p2239_p8 = pneg %p2238_p12 }
 0x174   : > { %v1526_v6 = vadd.f32 %v1525_v3, %v1521_v15  ;;  %v1535_v21 = vstv %s3401_s4  ;;  %v1578_v22 = vlaneseq  ;;  %v1505_v23 = vadd.f32 %v1501_v14, %v1470_v11  ;;  %s2240_s21 = sshll.u32 %s2344_s27, 4  ;;  %s2241_s21 = int_to_ptr.vmem [resolvable:$false] %s2240_s21 }
 0x175   : > { %v1527_v10 = vadd.f32 %v1525_v3, %v1522_v5  ;;  %v1506_v24 = vadd.f32 %v1502_v4, %v1471_v0  ;;  %v1542_v33 = vstv %s3407_s1  ;;  %v1545_v34 = vstv %s3409_s2  ;;  %s2242_s16 = scalar_lea.vmem %s2241_s21, 512  ;;  %p2243_p13 = scmp.lt.s32.totalorder %s3437_s13, %s2241_s21 }
 0x176   : > { %v1528_v25 = vmax.f32 %v1526_v6, 0.0  ;;  %v1579_v27 = vshrl.u32 %v1578_v22, 7  ;;  %v1582_v28 = vand.u32 127, %v1578_v22  ;;  %v1564_v58 = vsub.f32 %v2116_v57, %v3373_v17  ;;  %p2244_p1 = scmp.lt.s32.totalorder %s2242_s16, %s2236_s19 }
 0x177   : > { %v1529_v26 = vmax.f32 %v1527_v10, 0.0  ;;  %v1565_v60 = vsub.f32 %v2117_v59, %v3377_v19  ;;  %v2343_v11 = vmov 0.0  }
 0x178   : > { %v1532_v29 = vmul.f32 %v1531_v16, %v1528_v25  ;;  %v1536_v31 = vmul.f32 %v1535_v21, %v1528_v25  ;;  %v1580_v35 = vadd.s32 8, %v1579_v27  ;;  %v1587_v36 = vmul.u32 128, %v1579_v27  ;;  %p2245_p2 = por %p2244_p1, %p2243_p13 }
 0x179   : > { %v1533_v30 = vmul.f32 %v1531_v16, %v1529_v26  ;;  %v1537_v32 = vmul.f32 %v1535_v21, %v1529_v26  ;;  %v1566_v7 = vmul.f32 0.5, %v1564_v58  ;;  %v1567_v62 = vmul.f32 0.5, %v1565_v60 }
 0x17a   : > { %v1538_v37 = vadd.f32 %v1532_v29, %v1503_v18  ;;  %v1540_v39 = vadd.f32 %v1536_v31, %v1505_v23  ;;  %v1588_v41 = vmul.u32 128, %v1580_v35  ;;  %v1589_v42 = vadd.s32 %v1587_v36, %v1582_v28  ;;  %p2246_p6 = pnand %p2245_p2, %p2239_p8 }
 0x17b   : > { %v1539_v38 = vadd.f32 %v1533_v30, %v1504_v20  ;;  %v1541_v40 = vadd.f32 %v1537_v32, %v1506_v24  ;;  %vm1568_vm2 = vcmp.ge.f32.partialorder %v1566_v7, 0.05  ;;  %vm1569_vm3 = vcmp.ge.f32.partialorder %v1567_v62, 0.05 }
 0x17c   : > { %v1543_v43 = vadd.f32 %v1542_v33, %v1538_v37  ;;  %v1546_v45 = vadd.f32 %v1545_v34, %v1540_v39  ;;  %v1590_v8 = vadd.s32 %v1588_v41, %v1582_v28  ;;  %vm1591_vm0 = vcmp.lt.s32.totalorder %v1589_v42, 256 }
 0x17d   : > { %v1544_v44 = vadd.f32 %v1542_v33, %v1539_v38  ;;  %v1547_v46 = vadd.f32 %v1545_v34, %v1541_v40  ;;  %v1959_v0 = vsel %vm1568_vm2, 1.0, %v2343_v11  ;;  %v1960_v1 = vsel %vm1569_vm3, 1.0, %v2343_v11 }
 0x17e   : > { %v1957_v9 = vmul.f32 -1.442695, %v1546_v45  ;;  %v1560_v49 = vsub.f32 %v2114_v48, %v1543_v43  ;;  %vm1592_vm1 = vcmp.lt.s32.totalorder %v1590_v8, 256 }
 0x17f   : > { %v1958_v47 = vmul.f32 -1.442695, %v1547_v46  ;;  %v1561_v12 = vsub.f32 %v2115_v50, %v1544_v44 }
 0x180   : > { %2098 = vpow2.f32 %v1957_v9  ;;  %v1562_v51 = vand.u32 2147483647, %v1560_v49 }
 0x181   : > { %v1563_v13 = vand.u32 2147483647, %v1561_v12  ;;  %2100 = vpow2.f32 %v1958_v47 }
 0x182   : > { %v1593_v52 = vsel %vm1591_vm0, %v1562_v51, 0.0 }
 0x183   : > { %v1594_v53 = vsel %vm1592_vm1, %v1563_v13, 0.0 }
 0x184   : > { %v1597_v54 = vadd.f32 %v1594_v53, %v1593_v52 }
 0x186   : > { %1603 = vst [vmem:[%s3421_s11] sm:$0xff] %v1597_v54 }
 0x18d   : > { %v2099_v55 = vpop.eup %2098 }
 0x18e   : > { %v2101_v56 = vpop.eup %2100  ;;  %v1554_v61 = vadd.f32 1.0, %v2099_v55 }
 0x18f   : > { %v1555_v63 = vadd.f32 1.0, %v2101_v56 }
 0x190   : > { %2102 = vrcp.f32 %v1554_v61 }
 0x191   : > { %2104 = vrcp.f32 %v1555_v63 }
 0x19d   : > { %v2103_v2 = vpop.eup %2102 }
 0x19e   : > { %v2105_v3 = vpop.eup %2104  ;;  %v1574_v14 = vsub.f32 %v2103_v2, %v1959_v0 }
 0x19f   : > { %v1575_v17 = vsub.f32 %v2105_v3, %v1960_v1 }
 0x1a0   : > { %v1576_v4 = vand.u32 2147483647, %v1574_v14 }
 0x1a1   : > { %v1577_v15 = vand.u32 2147483647, %v1575_v17 }
 0x1a2   : > { %v1595_v5 = vsel %vm1591_vm0, %v1576_v4, 0.0 }
 0x1a3   : > { %v1596_v19 = vsel %vm1592_vm1, %v1577_v15, 0.0 }
 0x1a4   : > { %v1598_v6 = vadd.f32 %v1596_v19, %v1595_v5 }
 0x1a6   : > { %1962 = vst [vmem:[%s3421_s11 + $0x8] sm:$0xff] %v1598_v6 }
 0x1a7   : > { %2249 = shalt.err (!%p2246_p6)
}
 0x1a8   : > { %s2250_s3 = scalar_lea.hbm %s3435_s10, 256  ;;  %s2254_s1 = scalar_lea.hbm %s3493_s7, 512 }
 0x1a9   : > { %p2251_p5 = scmp.ne.s32.totalorder %s3435_s10, %s2250_s3  ;;  %p2255_p3 = scmp.lt.s32.totalorder %s3435_s10, %s3493_s7 }
 0x1aa   : > { %p2256_p10 = scmp.lt.s32.totalorder %s2254_s1, %s2250_s3 }
 0x1ab   : > { %p2252_p7 = pnand %p2251_p5, %p2528_p11 }
 0x1ac   : > { %p2257_p9 = por %p2256_p10, %p2255_p3 }
 0x1ad   : > { %p2253_p0 = pneg %p2252_p7 }
 0x1af   : > { %p2258_p12 = pnand %p2257_p9, %p2253_p0 }
 0x1b1   : > { %2261 = shalt.err (!%p2258_p12)
}
 0x1b2   : > { %s2345_s11 = smov 128   ;;  %s2346_s15 = smov 8  }
 0x1b3   : > { %1996 = dma.vmem_to_hbm [thread:$0]  (%p2528_p11), %s3437_s13, 256, %s3435_s10, %s1609_s9, %s2345_s11, %s2345_s11, %s2346_s15  }
 0x1b4 PF: > { %s1637_s22 = sand.u32 1, %s2312_s24   ;;  %p3521_p8 = scmp.ge.s32.totalorder %s2332_s29, 2 }
 0x1b5   : > { %s1638_s30 = scalar_lea.sflag [#allocation4], %s1637_s22 }
 0x1b6   : > { %p2022_p13 = pnand %p3521_p8, %p2535_p4 }
 0x1b8   : > { %p2023_p1 = pneg %p2022_p13 }
 0x1ba   : > { %2307 = dma.done.wait (%p2023_p1), %s1638_s30, 256  }
 0x1bb   : > { %2309 = vsyncadd (%p2023_p1), %s1638_s30, 4294967040  ;;  %s27_s29 = sadd.s32 1, %s2332_s29   ;;  %s3522_s24 = smov %s2316_s25 }
 0x1bc   : > { %p24_p2 = scmp.ge.s32.totalorder %s27_s29, 4   ;;  %s3523_s25 = smov %s2320_s26 }
 0x1bd   : > { %s3524_s26 = smov %s2533_s18  ;;  %s3525_s27 = smov %s2328_s28 }
 0x1be   : > { %s3526_s28 = smov %s3528_s23  ;;  %26 = sbr.rel (!%p24_p2) target bundleno = 15 (0xf), region = 126 }
 0x1c3   :  { %1643 = vsyncpa [#allocation3], 1 }
 0x1c4   :  { %1645 = vsyncpa [#allocation3 + $0x1], 1 }
 0x1c5   :  { %1646 = vsyncpa [#allocation4], 1 }
 0x1c6   :  { %1648 = vsyncpa [#allocation4 + $0x1], 1 }
 0x1c7   :  { %1649 = vsyncpa [#allocation5], 1 }
 0x1c8   :  { %1651 = vsyncpa [#allocation5 + $0x1], 1 }
 0x1c9   :  { %1652 = vsyncpa [#allocation8], 1 }
 0x1ca   :  { %1653 = vsyncpa [#allocation11], 1 }
 0x1cb   :  { %1654 = vsyncpa [#allocation14], 1 }

</bundles_post_ra>
